<compile_context>
chip_gen: v7x
topology: tpu7x:2x2x1
jax: 0.10.0
libtpu: 0.0.40
codegen_flags: <defaults>
</compile_context>

<pallas_src>
import functools

import jax
import jax.numpy as jnp
import numpy as np
from jax.experimental import pallas as pl
from jax.experimental.pallas import tpu as pltpu


# ----------------------------------------------------------------------------
# Fused Pallas kernel: full GlobalFilter forward for one batch block.
# ----------------------------------------------------------------------------
def global_filter_kernel(scale_ref, bias_ref,       # SMEM (1,1) StarReLU scalars
                         x_ref,                     # (BBLK*T, D)  bf16 (or f32)
                         w1_ref, w2_ref,            # (D, M), (M, D)  bf16
                         rfft_ref,                  # (2F, T) bf16 stacked [Re; Im] rfft2 op
                         irfft_ref,                 # (T, 2F) bf16 concat  [Re | Im] irfft2 op
                         wr_ref, wi_ref,            # (F, M) bf16 learned complex filter
                         o_ref,                     # (BBLK*T, D)  f32
                         *, bblk, tokens, nfreq):
    f32, bf16 = jnp.float32, jnp.bfloat16

    # pwconv1 (bias=False) + StarReLU on the fused (BBLK*T, .) slab.
    t = jnp.dot(x_ref[...].astype(bf16), w1_ref[...], preferred_element_type=f32)
    t = scale_ref[0, 0] * jnp.square(jnp.maximum(t, 0.0)) + bias_ref[0, 0]
    tb = t.astype(bf16)                                              # (BBLK*T, M)

    wr = wr_ref[...].astype(f32)                                     # (F, M)
    wi = wi_ref[...].astype(f32)

    for b in range(bblk):                    # static unroll over the batch block
        tb_b = tb[b * tokens:(b + 1) * tokens, :]                    # (T, M)

        # rfft2 over (H, W), norm='ortho': ONE matmul with the stacked operator.
        z = jnp.dot(rfft_ref[...], tb_b, preferred_element_type=f32)  # (2F, M)
        zre = z[:nfreq, :]                    # static, 8-sublane-aligned slices
        zim = z[nfreq:, :]

        # Elementwise complex multiply with the learned filter (f32 VPU).
        yre = zre * wr - zim * wi
        yim = zre * wi + zim * wr
        y_stack = jnp.concatenate([yre, yim], axis=0).astype(bf16)    # (2F, M)

        # irfft2 (s=(H, W), norm='ortho'): ONE matmul back to token space.
        y = jnp.dot(irfft_ref[...], y_stack, preferred_element_type=f32)  # (T, M)

        # pwconv2 (bias=False); store this batch element's token rows.
        o_ref[pl.ds(b * tokens, tokens), :] = jnp.dot(
            y.astype(bf16), w2_ref[...], preferred_element_type=f32)


# ----------------------------------------------------------------------------
# Host-side precompute: exact real DFT operator matrices (float64).
#   rfft2 :  Z[k,f] = sum_{h,w} x[h,w] * exp(-i*theta) / sqrt(H*W)
#   irfft2:  y[h,w] = sum_{k,f} c_f*(ReZ*cos(theta) - ImZ*sin(theta)) / sqrt(H*W)
#   theta = 2*pi*(h*k/H + w*f/W);  c_0 = c_{W/2} = 1, else c_f = 2.
#   Flattening: spatial row = h*W + w, spectral column = k*Wf + f.
# Returned in the fused-matmul layouts: rfft_op (2F, T), irfft_op (T, 2F).
# ----------------------------------------------------------------------------
def fft_filter_operators(H, W):
    Wf = W // 2 + 1
    h = np.arange(H, dtype=np.float64)[:, None, None, None]
    w = np.arange(W, dtype=np.float64)[None, :, None, None]
    k = np.arange(H, dtype=np.float64)[None, None, :, None]
    f = np.arange(Wf, dtype=np.float64)[None, None, None, :]
    theta = 2.0 * np.pi * (h * k / H + w * f / W)          # (H, W, H, Wf)
    scale = 1.0 / np.sqrt(H * W)
    cos_t = np.cos(theta) * scale
    sin_t = np.sin(theta) * scale
    r_re = cos_t.reshape(H * W, H * Wf).T                  # (F, T)
    r_im = (-sin_t).reshape(H * W, H * Wf).T               # (F, T)
    cvec = np.full((Wf,), 2.0)
    cvec[0] = 1.0
    if W % 2 == 0:
        cvec[-1] = 1.0
    i_re = (cvec * cos_t).reshape(H * W, H * Wf)           # (T, F)
    i_im = (cvec * -sin_t).reshape(H * W, H * Wf)          # (T, F)
    rfft_op = np.concatenate([r_re, r_im], axis=0)         # (2F, T)
    irfft_op = np.concatenate([i_re, i_im], axis=1)        # (T, 2F)
    return rfft_op, irfft_op


# ----------------------------------------------------------------------------
# Wrapper: single fused pallas_call, batch-blocked grid.
# ----------------------------------------------------------------------------
def global_filter_forward(x, params):
    B, H, W, D = x.shape
    T = H * W
    M = params["w1"].shape[1]
    F = params["wr"].shape[0]

    # No wrapper-side dtype cast: the kernel accepts whatever dtype the
    # upstream layer emits (bf16 preferred); reshape of contiguous data is free.
    x2 = x.reshape(B * T, D)

    BBLK = 2 if B % 2 == 0 else 1          # batch elements per grid step
    NB = B // BBLK

    def const2d(shape):
        return pl.BlockSpec(shape, lambda i: (0, 0))

    flops = B * (4 * T * D * M + 8 * F * T * M + 6 * F * M + 3 * T * M)
    bytes_accessed = (x2.size * x2.dtype.itemsize
                      + B * T * D * 4
                      + sum(int(np.prod(params[k].shape)) * params[k].dtype.itemsize
                            for k in ("w1", "w2", "rfft_op", "irfft_op", "wr", "wi")))

    kernel = functools.partial(global_filter_kernel, bblk=BBLK, tokens=T, nfreq=F)

    out = pl.pallas_call(
        kernel,
        grid=(NB,),
        in_specs=[
            pl.BlockSpec(memory_space=pltpu.SMEM),           # StarReLU scale
            pl.BlockSpec(memory_space=pltpu.SMEM),           # StarReLU bias
            pl.BlockSpec((BBLK * T, D), lambda i: (i, 0)),   # x, per-batch-block rows
            const2d((D, M)), const2d((M, D)),                # pwconv1 / pwconv2
            const2d((2 * F, T)),                             # stacked rfft2 operator
            const2d((T, 2 * F)),                             # concat irfft2 operator
            const2d((F, M)), const2d((F, M)),                # complex filter re / im
        ],
        out_specs=pl.BlockSpec((BBLK * T, D), lambda i: (i, 0)),
        out_shape=jax.ShapeDtypeStruct((B * T, D), jnp.float32),
        compiler_params=pltpu.CompilerParams(
            dimension_semantics=(("parallel",) if NB > 1 else ("arbitrary",))),
        cost_estimate=pl.CostEstimate(flops=flops, transcendentals=0,
                                      bytes_accessed=bytes_accessed),
    )(params["sr_scale"], params["sr_bias"], x2,
      params["w1"], params["w2"],
      params["rfft_op"], params["irfft_op"],
      params["wr"], params["wi"])
    return out.reshape(B, H, W, D)


# ----------------------------------------------------------------------------
# Parameter construction (matches GlobalFilter(dim, expansion_ratio=2,
# bias=False, size=H); nn.Linear-like init, complex_weights = 0.02 * randn).
# ----------------------------------------------------------------------------
def init_params(key, dim, H, W, sr_scale=0.9, sr_bias=0.05):
    med = 2 * dim                      # expansion_ratio = 2
    Wf = W // 2 + 1
    F = H * Wf
    k1, k2, kc = jax.random.split(key, 3)
    lim1 = float(1.0 / np.sqrt(dim))
    lim2 = float(1.0 / np.sqrt(med))
    w1 = jax.random.uniform(k1, (dim, med), jnp.float32, -lim1, lim1)  # Linear(dim, med).weight.T
    w2 = jax.random.uniform(k2, (med, dim), jnp.float32, -lim2, lim2)  # Linear(med, dim).weight.T
    cw = 0.02 * jax.random.normal(kc, (H, Wf, med, 2), jnp.float32)    # complex_weights

    rfft_op, irfft_op = fft_filter_operators(H, W)
    bf16 = jnp.bfloat16
    params = dict(
        sr_scale=jnp.full((1, 1), sr_scale, jnp.float32),   # non-default values to
        sr_bias=jnp.full((1, 1), sr_bias, jnp.float32),     # exercise the SMEM path
        w1=w1.astype(bf16), w2=w2.astype(bf16),
        rfft_op=jnp.asarray(rfft_op, bf16),                 # (2F, T)
        irfft_op=jnp.asarray(irfft_op, bf16),               # (T, 2F)
        wr=cw[..., 0].reshape(F, med).astype(bf16),         # (F, M) bf16
        wi=cw[..., 1].reshape(F, med).astype(bf16),
    )
    ref = dict(w1=w1, w2=w2, cw=cw, scale=sr_scale, bias=sr_bias)
    return params, ref


# ----------------------------------------------------------------------------
# Independent NumPy (float64, np.fft) reference of the PyTorch forward.
# ----------------------------------------------------------------------------
def reference_forward_np(x, w1, w2, cw, scale, bias):
    x = np.asarray(x, np.float64)
    w1 = np.asarray(w1, np.float64)
    w2 = np.asarray(w2, np.float64)
    cw = np.asarray(cw, np.float64)
    B, H, W, _ = x.shape
    t = x @ w1                                   # pwconv1 (bias=False)
    t = scale * np.maximum(t, 0.0) ** 2 + bias   # StarReLU
    z = np.fft.rfft2(t, axes=(1, 2), norm="ortho")
    z = z * (cw[..., 0] + 1j * cw[..., 1])       # complex filter
    y = np.fft.irfft2(z, s=(H, W), axes=(1, 2), norm="ortho")
    return y @ w2                                # act2 = Identity, pwconv2


# ----------------------------------------------------------------------------
if __name__ == "__main__":
    key = jax.random.PRNGKey(0)
    kx, kp = jax.random.split(key)

    # GlobalFilter(dim=64, expansion_ratio=2, size=16)  ->  med=128, filter_size=9
    B, H, W, D = 2, 16, 16, 64
    x = jax.random.normal(kx, (B, H, W, D), jnp.float32)    # NHWC (module is channel-last)
    # "Upstream layer emits bf16": feed the kernel bf16 activations directly
    # (no wrapper-side cast pass); the f64 reference uses the SAME values.
    x_bf16 = x.astype(jnp.bfloat16)
    params, ref_p = init_params(kp, D, H, W)

    fwd = jax.jit(global_filter_forward)
    out = jax.block_until_ready(fwd(x_bf16, params))
    assert out.shape == (B, H, W, D), out.shape

    x_ref_np = np.asarray(x_bf16).astype(np.float64)
    ref = reference_forward_np(x_ref_np, ref_p["w1"], ref_p["w2"],
                               ref_p["cw"], ref_p["scale"], ref_p["bias"])
    out64 = np.asarray(out, np.float64)
    err = float(np.max(np.abs(out64 - ref)))
    # bf16 MXU operands + bf16 filter storage, f32 accumulation -> relaxed but
    # still bug-catching tolerance.
    assert np.allclose(out64, ref, rtol=2e-2, atol=1.5e-3), err

    print("KERNEL_OK")
</pallas_src>

<mosaic_0001>
module attributes {stable_mosaic.version = 11 : i64} {
  func.func @global_filter_kernel(%arg0: i32, %arg1: memref<1x1xf32, #tpu.memory_space<smem>>, %arg2: memref<1x1xf32, #tpu.memory_space<smem>>, %arg3: memref<512x64xbf16, #tpu.memory_space<vmem>>, %arg4: memref<64x128xbf16, #tpu.memory_space<vmem>>, %arg5: memref<128x64xbf16, #tpu.memory_space<vmem>>, %arg6: memref<288x256xbf16, #tpu.memory_space<vmem>>, %arg7: memref<256x288xbf16, #tpu.memory_space<vmem>>, %arg8: memref<144x128xbf16, #tpu.memory_space<vmem>>, %arg9: memref<144x128xbf16, #tpu.memory_space<vmem>>, %arg10: memref<512x64xf32, #tpu.memory_space<vmem>>) attributes {dimension_semantics = [#tpu.dimension_semantics<arbitrary>], iteration_bounds = array<i64: 1>, scalar_prefetch = 0 : i64, scratch_operands = 0 : i64, tpu.core_type = #tpu.core_type<tc>, window_params = [{transform_indices = @transform_0, window_bounds = array<i64: 1, 1>}, {transform_indices = @transform_1, window_bounds = array<i64: 1, 1>}, {transform_indices = @transform_2, window_bounds = array<i64: 512, 64>}, {pipeline_mode = #tpu.pipeline_mode<synchronous>, transform_indices = @transform_3, window_bounds = array<i64: 64, 128>}, {pipeline_mode = #tpu.pipeline_mode<synchronous>, transform_indices = @transform_4, window_bounds = array<i64: 128, 64>}, {pipeline_mode = #tpu.pipeline_mode<synchronous>, transform_indices = @transform_5, window_bounds = array<i64: 288, 256>}, {pipeline_mode = #tpu.pipeline_mode<synchronous>, transform_indices = @transform_6, window_bounds = array<i64: 256, 288>}, {pipeline_mode = #tpu.pipeline_mode<synchronous>, transform_indices = @transform_7, window_bounds = array<i64: 144, 128>}, {pipeline_mode = #tpu.pipeline_mode<synchronous>, transform_indices = @transform_8, window_bounds = array<i64: 144, 128>}, {transform_indices = @transform_9, window_bounds = array<i64: 512, 64>}]} {
    %c0 = arith.constant 0 : index
    %c0_0 = arith.constant 0 : index
    %0 = vector.load %arg3[%c0, %c0_0] : memref<512x64xbf16, #tpu.memory_space<vmem>>, vector<512x64xbf16>
    %c0_1 = arith.constant 0 : index
    %c0_2 = arith.constant 0 : index
    %1 = vector.load %arg4[%c0_1, %c0_2] : memref<64x128xbf16, #tpu.memory_space<vmem>>, vector<64x128xbf16>
    %cst = arith.constant dense<0.000000e+00> : vector<512x128xf32>
    %2 = tpu.matmul %0, %1, %cst {dimension_numbers = #tpu.dot_dimension_numbers<[1], [0], [0], [1], [0, 0, 1, 1], [], []>} : vector<512x64xbf16>, vector<64x128xbf16>, vector<512x128xf32> -> vector<512x128xf32>
    %c0_3 = arith.constant 0 : index
    %c0_4 = arith.constant 0 : index
    %3 = memref.load %arg1[%c0_3, %c0_4] : memref<1x1xf32, #tpu.memory_space<smem>>
    %cst_5 = arith.constant 0.000000e+00 : f32
    %4 = vector.broadcast %cst_5 : f32 to vector<512x128xf32>
    %5 = arith.maximumf %2, %4 : vector<512x128xf32>
    %6 = arith.mulf %5, %5 : vector<512x128xf32>
    %7 = vector.broadcast %3 : f32 to vector<512x128xf32>
    %8 = arith.mulf %7, %6 : vector<512x128xf32>
    %c0_6 = arith.constant 0 : index
    %c0_7 = arith.constant 0 : index
    %9 = memref.load %arg2[%c0_6, %c0_7] : memref<1x1xf32, #tpu.memory_space<smem>>
    %10 = vector.broadcast %9 : f32 to vector<512x128xf32>
    %11 = arith.addf %8, %10 : vector<512x128xf32>
    %12 = arith.truncf %11 : vector<512x128xf32> to vector<512x128xbf16>
    %c0_8 = arith.constant 0 : index
    %c0_9 = arith.constant 0 : index
    %13 = vector.load %arg8[%c0_8, %c0_9] : memref<144x128xbf16, #tpu.memory_space<vmem>>, vector<144x128xbf16>
    %14 = arith.extf %13 : vector<144x128xbf16> to vector<144x128xf32>
    %c0_10 = arith.constant 0 : index
    %c0_11 = arith.constant 0 : index
    %15 = vector.load %arg9[%c0_10, %c0_11] : memref<144x128xbf16, #tpu.memory_space<vmem>>, vector<144x128xbf16>
    %16 = arith.extf %15 : vector<144x128xbf16> to vector<144x128xf32>
    %17 = vector.extract_strided_slice %12 {offsets = [0, 0], sizes = [256, 128], strides = [1, 1]} : vector<512x128xbf16> to vector<256x128xbf16>
    %c0_12 = arith.constant 0 : index
    %c0_13 = arith.constant 0 : index
    %18 = vector.load %arg6[%c0_12, %c0_13] : memref<288x256xbf16, #tpu.memory_space<vmem>>, vector<288x256xbf16>
    %cst_14 = arith.constant dense<0.000000e+00> : vector<288x128xf32>
    %19 = tpu.matmul %18, %17, %cst_14 {dimension_numbers = #tpu.dot_dimension_numbers<[1], [0], [0], [1], [0, 0, 1, 1], [], []>} : vector<288x256xbf16>, vector<256x128xbf16>, vector<288x128xf32> -> vector<288x128xf32>
    %20 = vector.extract_strided_slice %19 {offsets = [0, 0], sizes = [144, 128], strides = [1, 1]} : vector<288x128xf32> to vector<144x128xf32>
    %21 = vector.extract_strided_slice %19 {offsets = [144, 0], sizes = [144, 128], strides = [1, 1]} : vector<288x128xf32> to vector<144x128xf32>
    %22 = arith.mulf %20, %14 : vector<144x128xf32>
    %23 = arith.mulf %21, %16 : vector<144x128xf32>
    %24 = arith.subf %22, %23 : vector<144x128xf32>
    %25 = arith.mulf %20, %16 : vector<144x128xf32>
    %26 = arith.mulf %21, %14 : vector<144x128xf32>
    %27 = arith.addf %25, %26 : vector<144x128xf32>
    %28 = tpu.concatenate %24, %27 in 0 : vector<144x128xf32>, vector<144x128xf32> -> vector<288x128xf32>
    %29 = arith.truncf %28 : vector<288x128xf32> to vector<288x128xbf16>
    %c0_15 = arith.constant 0 : index
    %c0_16 = arith.constant 0 : index
    %30 = vector.load %arg7[%c0_15, %c0_16] : memref<256x288xbf16, #tpu.memory_space<vmem>>, vector<256x288xbf16>
    %cst_17 = arith.constant dense<0.000000e+00> : vector<256x128xf32>
    %31 = tpu.matmul %30, %29, %cst_17 {dimension_numbers = #tpu.dot_dimension_numbers<[1], [0], [0], [1], [0, 0, 1, 1], [], []>} : vector<256x288xbf16>, vector<288x128xbf16>, vector<256x128xf32> -> vector<256x128xf32>
    %32 = arith.truncf %31 : vector<256x128xf32> to vector<256x128xbf16>
    %c0_18 = arith.constant 0 : index
    %c0_19 = arith.constant 0 : index
    %33 = vector.load %arg5[%c0_18, %c0_19] : memref<128x64xbf16, #tpu.memory_space<vmem>>, vector<128x64xbf16>
    %cst_20 = arith.constant dense<0.000000e+00> : vector<256x64xf32>
    %34 = tpu.matmul %32, %33, %cst_20 {dimension_numbers = #tpu.dot_dimension_numbers<[1], [0], [0], [1], [0, 0, 1, 1], [], []>} : vector<256x128xbf16>, vector<128x64xbf16>, vector<256x64xf32> -> vector<256x64xf32>
    %c0_21 = arith.constant 0 : index
    %c0_22 = arith.constant 0 : index
    %35 = vector.load %arg10[%c0_21, %c0_22] : memref<512x64xf32, #tpu.memory_space<vmem>>, vector<256x64xf32>
    tpu.vector_store %arg10[%c0_21, %c0_22], %34 {strides = array<i32>} : memref<512x64xf32, #tpu.memory_space<vmem>>, vector<256x64xf32>,
    %36 = vector.extract_strided_slice %12 {offsets = [256, 0], sizes = [256, 128], strides = [1, 1]} : vector<512x128xbf16> to vector<256x128xbf16>
    %c0_23 = arith.constant 0 : index
    %c0_24 = arith.constant 0 : index
    %37 = vector.load %arg6[%c0_23, %c0_24] : memref<288x256xbf16, #tpu.memory_space<vmem>>, vector<288x256xbf16>
    %cst_25 = arith.constant dense<0.000000e+00> : vector<288x128xf32>
    %38 = tpu.matmul %37, %36, %cst_25 {dimension_numbers = #tpu.dot_dimension_numbers<[1], [0], [0], [1], [0, 0, 1, 1], [], []>} : vector<288x256xbf16>, vector<256x128xbf16>, vector<288x128xf32> -> vector<288x128xf32>
    %39 = vector.extract_strided_slice %38 {offsets = [0, 0], sizes = [144, 128], strides = [1, 1]} : vector<288x128xf32> to vector<144x128xf32>
    %40 = vector.extract_strided_slice %38 {offsets = [144, 0], sizes = [144, 128], strides = [1, 1]} : vector<288x128xf32> to vector<144x128xf32>
    %41 = arith.mulf %39, %14 : vector<144x128xf32>
    %42 = arith.mulf %40, %16 : vector<144x128xf32>
    %43 = arith.subf %41, %42 : vector<144x128xf32>
    %44 = arith.mulf %39, %16 : vector<144x128xf32>
    %45 = arith.mulf %40, %14 : vector<144x128xf32>
    %46 = arith.addf %44, %45 : vector<144x128xf32>
    %47 = tpu.concatenate %43, %46 in 0 : vector<144x128xf32>, vector<144x128xf32> -> vector<288x128xf32>
    %48 = arith.truncf %47 : vector<288x128xf32> to vector<288x128xbf16>
    %c0_26 = arith.constant 0 : index
    %c0_27 = arith.constant 0 : index
    %49 = vector.load %arg7[%c0_26, %c0_27] : memref<256x288xbf16, #tpu.memory_space<vmem>>, vector<256x288xbf16>
    %cst_28 = arith.constant dense<0.000000e+00> : vector<256x128xf32>
    %50 = tpu.matmul %49, %48, %cst_28 {dimension_numbers = #tpu.dot_dimension_numbers<[1], [0], [0], [1], [0, 0, 1, 1], [], []>} : vector<256x288xbf16>, vector<288x128xbf16>, vector<256x128xf32> -> vector<256x128xf32>
    %51 = arith.truncf %50 : vector<256x128xf32> to vector<256x128xbf16>
    %c0_29 = arith.constant 0 : index
    %c0_30 = arith.constant 0 : index
    %52 = vector.load %arg5[%c0_29, %c0_30] : memref<128x64xbf16, #tpu.memory_space<vmem>>, vector<128x64xbf16>
    %cst_31 = arith.constant dense<0.000000e+00> : vector<256x64xf32>
    %53 = tpu.matmul %51, %52, %cst_31 {dimension_numbers = #tpu.dot_dimension_numbers<[1], [0], [0], [1], [0, 0, 1, 1], [], []>} : vector<256x128xbf16>, vector<128x64xbf16>, vector<256x64xf32> -> vector<256x64xf32>
    %c256 = arith.constant 256 : index
    %c0_32 = arith.constant 0 : index
    %54 = vector.load %arg10[%c256, %c0_32] : memref<512x64xf32, #tpu.memory_space<vmem>>, vector<256x64xf32>
    tpu.vector_store %arg10[%c256, %c0_32], %53 {strides = array<i32>} : memref<512x64xf32, #tpu.memory_space<vmem>>, vector<256x64xf32>,
    return
  }
  func.func @transform_0(%arg0: i32) -> (i32, i32) {
    %c0_i32 = arith.constant 0 : i32
    %c0_i32_0 = arith.constant 0 : i32
    %c0_i32_1 = arith.constant 0 : i32
    return %c0_i32, %c0_i32_0 : i32, i32
  }
  func.func @transform_1(%arg0: i32) -> (i32, i32) {
    %c0_i32 = arith.constant 0 : i32
    %c0_i32_0 = arith.constant 0 : i32
    %c0_i32_1 = arith.constant 0 : i32
    return %c0_i32, %c0_i32_0 : i32, i32
  }
  func.func @transform_2(%arg0: i32) -> (i32, i32) {
    %c0_i32 = arith.constant 0 : i32
    %c0_i32_0 = arith.constant 0 : i32
    return %arg0, %c0_i32 : i32, i32
  }
  func.func @transform_3(%arg0: i32) -> (i32, i32) {
    %c0_i32 = arith.constant 0 : i32
    %c0_i32_0 = arith.constant 0 : i32
    %c0_i32_1 = arith.constant 0 : i32
    return %c0_i32, %c0_i32_0 : i32, i32
  }
  func.func @transform_4(%arg0: i32) -> (i32, i32) {
    %c0_i32 = arith.constant 0 : i32
    %c0_i32_0 = arith.constant 0 : i32
    %c0_i32_1 = arith.constant 0 : i32
    return %c0_i32, %c0_i32_0 : i32, i32
  }
  func.func @transform_5(%arg0: i32) -> (i32, i32) {
    %c0_i32 = arith.constant 0 : i32
    %c0_i32_0 = arith.constant 0 : i32
    %c0_i32_1 = arith.constant 0 : i32
    return %c0_i32, %c0_i32_0 : i32, i32
  }
  func.func @transform_6(%arg0: i32) -> (i32, i32) {
    %c0_i32 = arith.constant 0 : i32
    %c0_i32_0 = arith.constant 0 : i32
    %c0_i32_1 = arith.constant 0 : i32
    return %c0_i32, %c0_i32_0 : i32, i32
  }
  func.func @transform_7(%arg0: i32) -> (i32, i32) {
    %c0_i32 = arith.constant 0 : i32
    %c0_i32_0 = arith.constant 0 : i32
    %c0_i32_1 = arith.constant 0 : i32
    return %c0_i32, %c0_i32_0 : i32, i32
  }
  func.func @transform_8(%arg0: i32) -> (i32, i32) {
    %c0_i32 = arith.constant 0 : i32
    %c0_i32_0 = arith.constant 0 : i32
    %c0_i32_1 = arith.constant 0 : i32
    return %c0_i32, %c0_i32_0 : i32, i32
  }
  func.func @transform_9(%arg0: i32) -> (i32, i32) {
    %c0_i32 = arith.constant 0 : i32
    %c0_i32_0 = arith.constant 0 : i32
    return %arg0, %c0_i32 : i32, i32
  }
}

</mosaic_0001>

<bundles_post_ra>
// kernel: global_filter_forward.1
= control target key start
LH: loop header
LB: loop body
LE: loop exit
PB: predicated region body
PF: predicated region fallthrough
CT: control target
= control target key end

     0   :  { %vm292_vm0 = vcmask 523264   ;;  %s7101_s0 = inlined_call_operand.<no memory space> [shape: f32[1,1], index: 0, kind: input, shape index: {}]   ;;  %s7102_s1 = inlined_call_operand.<no memory space> [shape: f32[1,1], index: 1, kind: input, shape index: {}]   ;;  %s7103_s2 = inlined_call_operand.vmem [shape: bf16[512,64], index: 2, kind: input, shape index: {}]   ;;  %s7104_s3 = inlined_call_operand.vmem [shape: bf16[64,128], index: 3, kind: input, shape index: {}]   ;;  %s7105_s4 = inlined_call_operand.vmem [shape: bf16[128,64], index: 4, kind: input, shape index: {}]   ;;  %s7106_s5 = inlined_call_operand.vmem [shape: bf16[288,256], index: 5, kind: input, shape index: {}]   ;;  %s7107_s6 = inlined_call_operand.vmem [shape: bf16[256,288], index: 6, kind: input, shape index: {}]   ;;  %s7108_s7 = inlined_call_operand.vmem [shape: bf16[144,128], index: 7, kind: input, shape index: {}]   ;;  %s7109_s8 = inlined_call_operand.vmem [shape: bf16[144,128], index: 8, kind: input, shape index: {}]   ;;  %s7110_s9 = inlined_call_operand.hbm [shape: f32[512,64], index: 9, kind: output, shape index: {}]  }
   0x1   :  { %v4967_v0 = vld [vmem:[%s7104_s3] sm:$0xff]   ;;  %v4968_v1 = vld [vmem:[%s7104_s3 + $0x8] sm:$0xff]   ;;  %v4969_v2 = vld [vmem:[%s7104_s3 + $0x10] sm:$0xff]  }
   0x2   :  { %4707 = vmatprep.subr.bf16.mxu0 %v4967_v0  ;;  %v4971_v3 = vld [vmem:[%s7103_s2] sm:$0xff]   ;;  %v4970_v4 = vld [vmem:[%s7104_s3 + $0x18] sm:$0xff]   ;;  %v4972_v5 = vld [vmem:[%s7103_s2 + $0x8] sm:$0xff]  }
   0x3   :  { %4708 = vmatpush3.bf16.msra.mxu0 %v4967_v0  ;;  %4715 = vmatprep.mubr.msk.bf16.mxu0 %vm292_vm0, %v4971_v3  ;;  %v4973_v6 = vld [vmem:[%s7103_s2 + $0x10] sm:$0xff]   ;;  %v4974_v7 = vld [vmem:[%s7103_s2 + $0x18] sm:$0xff]   ;;  %v4975_v8 = vld [vmem:[%s7103_s2 + $0x20] sm:$0xff]  }
   0x4   :  { %4709 = vmatprep.subr.bf16.mxu0 %v4968_v1  ;;  %v4976_v9 = vld [vmem:[%s7103_s2 + $0x28] sm:$0xff]   ;;  %v4977_v10 = vld [vmem:[%s7103_s2 + $0x30] sm:$0xff]   ;;  %v4978_v11 = vld [vmem:[%s7103_s2 + $0x38] sm:$0xff]  }
   0x5   :  { %v4979_v12 = vld [vmem:[%s7103_s2 + $0x40] sm:$0xff]   ;;  %v4980_v13 = vld [vmem:[%s7103_s2 + $0x48] sm:$0xff]   ;;  %v4981_v14 = vld [vmem:[%s7103_s2 + $0x50] sm:$0xff]  }
   0x6   :  { %v4982_v15 = vld [vmem:[%s7103_s2 + $0x58] sm:$0xff]   ;;  %v4983_v16 = vld [vmem:[%s7103_s2 + $0x60] sm:$0xff]   ;;  %v4984_v17 = vld [vmem:[%s7103_s2 + $0x68] sm:$0xff]  }
   0x7   :  { %4710 = vmatpush3.bf16.msra.mxu0 %v4968_v1  ;;  %v4985_v18 = vld [vmem:[%s7103_s2 + $0x70] sm:$0xff]   ;;  %v4986_v19 = vld [vmem:[%s7103_s2 + $0x78] sm:$0xff]  }
   0x8   :  { %4711 = vmatprep.subr.bf16.mxu0 %v4969_v2 }
   0xb   :  { %4712 = vmatpush3.bf16.msra.mxu0 %v4969_v2 }
   0xc   :  { %4713 = vmatprep.subr.bf16.mxu0 %v4970_v4 }
   0xf   :  { %4714 = vmatpush3.bf16.msra.mxu0 %v4970_v4 }
  0x12   :  { %4716 = vmatmul.mubr.msk.bf16.vlgmr.msra.gmra.mrb[0].mxu0 %vm292_vm0, %v4972_v5 }
  0x13   :  { %4719 = vmatprep.mubr.msk.bf16.mxu0 %vm292_vm0, %v4973_v6 }
  0x1a   :  { %4720 = vmatmul.mubr.msk.bf16.gmra.mrb[4].mxu0 %vm292_vm0, %v4974_v7 }
  0x1b   :  { %4723 = vmatprep.mubr.msk.bf16.mxu0 %vm292_vm0, %v4975_v8 }
  0x22   :  { %4724 = vmatmul.mubr.msk.bf16.gmra.mrb[8].mxu0 %vm292_vm0, %v4976_v9 }
  0x23   :  { %4727 = vmatprep.mubr.msk.bf16.mxu0 %vm292_vm0, %v4977_v10 }
  0x2a   :  { %4728 = vmatmul.mubr.msk.bf16.gmra.mrb[12].mxu0 %vm292_vm0, %v4978_v11 }
  0x2b   :  { %4731 = vmatprep.mubr.msk.bf16.mxu0 %vm292_vm0, %v4979_v12 }
  0x32   :  { %4732 = vmatmul.mubr.msk.bf16.gmra.mrb[16].mxu0 %vm292_vm0, %v4980_v13 }
  0x33   :  { %4735 = vmatprep.mubr.msk.bf16.mxu0 %vm292_vm0, %v4981_v14 }
  0x3a   :  { %4736 = vmatmul.mubr.msk.bf16.gmra.mrb[20].mxu0 %vm292_vm0, %v4982_v15 }
  0x3b   :  { %4739 = vmatprep.mubr.msk.bf16.mxu0 %vm292_vm0, %v4983_v16 }
  0x42   :  { %4740 = vmatmul.mubr.msk.bf16.gmra.mrb[24].mxu0 %vm292_vm0, %v4984_v17 }
  0x43   :  { %4743 = vmatprep.mubr.msk.bf16.mxu0 %vm292_vm0, %v4985_v18 }
  0x4a   :  { %4744 = vmatmul.mubr.msk.bf16.gmra.mrb[28].mxu0 %vm292_vm0, %v4986_v19 }
  0x4b   :  { %16 = vsyncpa [#allocation5], 0  ;;  %v7111_v20 = vmov 0   ;;  %v4989_v21 = vld [vmem:[%s7106_s5 + $0x4] ss:$8 sps:$4 sm:$0xff]   ;;  %v5416_v25 = vstv %s7101_s0  ;;  %v5422_v35 = vstv %s7102_s1  ;;  %vm1865_vm1 = vcmask 261120  }
  0x4c   :  { %1258 = vmatprep.subr.bf16.mxu1 %v7111_v20  ;;  %1290 = vmatprep.mubr.bf16.mxu1 %v4989_v21 }
  0xe5   :  { %v4717_v22 = vpop.f32.mrb[0].mxu0 }
  0xe6   :  { %v681_v23 = vmax.f32 %v4717_v22, 0.0  ;;  %v423_v24 = vpop.f32.mrb[1].mxu0 }
  0xe7   :  { %v679_v26 = vmax.f32 %v423_v24, 0.0  ;;  %v4718_v27 = vpop.f32.mrb[2].mxu0 }
  0xe8   :  { %v745_v28 = vmul.f32 %v681_v23, %v681_v23  ;;  %v682_v29 = vmax.f32 %v4718_v27, 0.0  ;;  %v426_v30 = vpop.f32.mrb[3].mxu0 }
  0xe9   :  { %v743_v31 = vmul.f32 %v679_v26, %v679_v26  ;;  %v680_v32 = vmax.f32 %v426_v30, 0.0 }
  0xea   :  { %v810_v33 = vmul.f32 %v5416_v25, %v745_v28  ;;  %v746_v34 = vmul.f32 %v682_v29, %v682_v29 }
  0xeb   :  { %v808_v36 = vmul.f32 %v5416_v25, %v743_v31  ;;  %v744_v37 = vmul.f32 %v680_v32, %v680_v32 }
  0xec   :  { %v811_v38 = vmul.f32 %v5416_v25, %v746_v34  ;;  %v876_v41 = vadd.f32 %v5422_v35, %v810_v33 }
  0xed   :  { %v809_v39 = vmul.f32 %v5416_v25, %v744_v37  ;;  %v4721_v40 = vpop.f32.mrb[4].mxu0  ;;  %v874_v47 = vadd.f32 %v5422_v35, %v808_v36 }
  0xee   :  { %v877_v42 = vadd.f32 %v5422_v35, %v811_v38  ;;  %v685_v43 = vmax.f32 %v4721_v40, 0.0  ;;  %v439_v44 = vpop.f32.mrb[5].mxu0 }
  0xef   :  { %v683_v45 = vmax.f32 %v439_v44, 0.0  ;;  %v4722_v46 = vpop.f32.mrb[6].mxu0  ;;  %v875_v48 = vadd.f32 %v5422_v35, %v809_v39 }
  0xf0   :  { %v749_v49 = vmul.f32 %v685_v43, %v685_v43  ;;  %v686_v50 = vmax.f32 %v4722_v46, 0.0  ;;  %v442_v51 = vpop.f32.mrb[7].mxu0  ;;  %v939_v52 = vpack.c.bf16 %v877_v42, %v876_v41 }
  0xf1   :  { %v747_v53 = vmul.f32 %v683_v45, %v683_v45  ;;  %v684_v54 = vmax.f32 %v442_v51, 0.0  ;;  %v938_v55 = vpack.c.bf16 %v875_v48, %v874_v47 }
  0xf2   :  { %v814_v56 = vmul.f32 %v5416_v25, %v749_v49  ;;  %v750_v57 = vmul.f32 %v686_v50, %v686_v50 }
  0xf3   :  { %v812_v58 = vmul.f32 %v5416_v25, %v747_v53  ;;  %v748_v59 = vmul.f32 %v684_v54, %v684_v54  ;;  %1259 = vmatpush1.bf16.msra.mxu1 %v938_v55 }
  0xf4   :  { %v815_v60 = vmul.f32 %v5416_v25, %v750_v57  ;;  %1260 = vmatprep.subr.bf16.mxu1 %v7111_v20  ;;  %v880_v63 = vadd.f32 %v5422_v35, %v814_v56 }
  0xf5   :  { %v813_v61 = vmul.f32 %v5416_v25, %v748_v59  ;;  %v4725_v62 = vpop.f32.mrb[8].mxu0  ;;  %v878_v3 = vadd.f32 %v5422_v35, %v812_v58 }
  0xf6   :  { %v881_v0 = vadd.f32 %v5422_v35, %v815_v60  ;;  %v689_v1 = vmax.f32 %v4725_v62, 0.0  ;;  %v455_v2 = vpop.f32.mrb[9].mxu0 }
  0xf7   :  { %v879_v4 = vadd.f32 %v5422_v35, %v813_v61  ;;  %v687_v5 = vmax.f32 %v455_v2, 0.0  ;;  %v4726_v6 = vpop.f32.mrb[10].mxu0  ;;  %1261 = vmatpush1.bf16.msra.mxu1 %v939_v52 }
  0xf8   :  { %v753_v7 = vmul.f32 %v689_v1, %v689_v1  ;;  %v690_v8 = vmax.f32 %v4726_v6, 0.0  ;;  %v458_v9 = vpop.f32.mrb[11].mxu0  ;;  %1262 = vmatprep.subr.bf16.mxu1 %v7111_v20  ;;  %v941_v10 = vpack.c.bf16 %v881_v0, %v880_v63 }
  0xf9   :  { %v751_v11 = vmul.f32 %v687_v5, %v687_v5  ;;  %v688_v12 = vmax.f32 %v458_v9, 0.0  ;;  %v940_v13 = vpack.c.bf16 %v879_v4, %v878_v3 }
  0xfa   :  { %v818_v14 = vmul.f32 %v5416_v25, %v753_v7  ;;  %v754_v15 = vmul.f32 %v690_v8, %v690_v8 }
  0xfb   :  { %v816_v16 = vmul.f32 %v5416_v25, %v751_v11  ;;  %v752_v17 = vmul.f32 %v688_v12, %v688_v12  ;;  %1263 = vmatpush1.bf16.msra.mxu1 %v940_v13 }
  0xfc   :  { %v819_v18 = vmul.f32 %v5416_v25, %v754_v15  ;;  %1264 = vmatprep.subr.bf16.mxu1 %v7111_v20  ;;  %v884_v22 = vadd.f32 %v5422_v35, %v818_v14 }
  0xfd   :  { %v817_v19 = vmul.f32 %v5416_v25, %v752_v17  ;;  %v4729_v21 = vpop.f32.mrb[12].mxu0  ;;  %v882_v27 = vadd.f32 %v5422_v35, %v816_v16 }
  0xfe   :  { %v885_v23 = vadd.f32 %v5422_v35, %v819_v18  ;;  %v693_v24 = vmax.f32 %v4729_v21, 0.0  ;;  %v471_v26 = vpop.f32.mrb[13].mxu0 }
  0xff   :  { %v883_v28 = vadd.f32 %v5422_v35, %v817_v19  ;;  %v691_v29 = vmax.f32 %v471_v26, 0.0  ;;  %v4730_v30 = vpop.f32.mrb[14].mxu0  ;;  %1265 = vmatpush1.bf16.msra.mxu1 %v941_v10 }
 0x100   :  { %v757_v31 = vmul.f32 %v693_v24, %v693_v24  ;;  %v694_v32 = vmax.f32 %v4730_v30, 0.0  ;;  %v474_v33 = vpop.f32.mrb[15].mxu0  ;;  %1266 = vmatprep.subr.bf16.mxu1 %v7111_v20  ;;  %v943_v34 = vpack.c.bf16 %v885_v23, %v884_v22 }
 0x101   :  { %v755_v36 = vmul.f32 %v691_v29, %v691_v29  ;;  %v692_v37 = vmax.f32 %v474_v33, 0.0  ;;  %v942_v38 = vpack.c.bf16 %v883_v28, %v882_v27 }
 0x102   :  { %v822_v39 = vmul.f32 %v5416_v25, %v757_v31  ;;  %v758_v40 = vmul.f32 %v694_v32, %v694_v32 }
 0x103   :  { %v820_v41 = vmul.f32 %v5416_v25, %v755_v36  ;;  %v756_v42 = vmul.f32 %v692_v37, %v692_v37  ;;  %1267 = vmatpush1.bf16.msra.mxu1 %v942_v38 }
 0x104   :  { %v823_v43 = vmul.f32 %v5416_v25, %v758_v40  ;;  %1268 = vmatprep.subr.bf16.mxu1 %v7111_v20  ;;  %v888_v46 = vadd.f32 %v5422_v35, %v822_v39 }
 0x105   :  { %v821_v44 = vmul.f32 %v5416_v25, %v756_v42  ;;  %v4733_v45 = vpop.f32.mrb[16].mxu0  ;;  %v886_v50 = vadd.f32 %v5422_v35, %v820_v41 }
 0x106   :  { %v889_v47 = vadd.f32 %v5422_v35, %v823_v43  ;;  %v697_v48 = vmax.f32 %v4733_v45, 0.0  ;;  %v487_v49 = vpop.f32.mrb[17].mxu0 }
 0x107   :  { %v887_v51 = vadd.f32 %v5422_v35, %v821_v44  ;;  %v695_v52 = vmax.f32 %v487_v49, 0.0  ;;  %v4734_v53 = vpop.f32.mrb[18].mxu0  ;;  %1269 = vmatpush1.bf16.msra.mxu1 %v943_v34 }
 0x108   :  { %v761_v54 = vmul.f32 %v697_v48, %v697_v48  ;;  %v698_v55 = vmax.f32 %v4734_v53, 0.0  ;;  %v490_v56 = vpop.f32.mrb[19].mxu0  ;;  %1270 = vmatprep.subr.bf16.mxu1 %v7111_v20  ;;  %v945_v57 = vpack.c.bf16 %v889_v47, %v888_v46 }
 0x109   :  { %v759_v58 = vmul.f32 %v695_v52, %v695_v52  ;;  %v696_v59 = vmax.f32 %v490_v56, 0.0  ;;  %v944_v60 = vpack.c.bf16 %v887_v51, %v886_v50 }
 0x10a   :  { %v826_v61 = vmul.f32 %v5416_v25, %v761_v54  ;;  %v762_v62 = vmul.f32 %v698_v55, %v698_v55 }
 0x10b   :  { %v824_v63 = vmul.f32 %v5416_v25, %v759_v58  ;;  %v760_v0 = vmul.f32 %v696_v59, %v696_v59  ;;  %1271 = vmatpush1.bf16.msra.mxu1 %v944_v60 }
 0x10c   :  { %v827_v1 = vmul.f32 %v5416_v25, %v762_v62  ;;  %1272 = vmatprep.subr.bf16.mxu1 %v7111_v20  ;;  %v892_v4 = vadd.f32 %v5422_v35, %v826_v61 }
 0x10d   :  { %v825_v2 = vmul.f32 %v5416_v25, %v760_v0  ;;  %v4737_v3 = vpop.f32.mrb[20].mxu0  ;;  %v890_v8 = vadd.f32 %v5422_v35, %v824_v63 }
 0x10e   :  { %v893_v5 = vadd.f32 %v5422_v35, %v827_v1  ;;  %v701_v6 = vmax.f32 %v4737_v3, 0.0  ;;  %v503_v7 = vpop.f32.mrb[21].mxu0 }
 0x10f   :  { %v891_v9 = vadd.f32 %v5422_v35, %v825_v2  ;;  %v699_v10 = vmax.f32 %v503_v7, 0.0  ;;  %v4738_v11 = vpop.f32.mrb[22].mxu0  ;;  %1273 = vmatpush1.bf16.msra.mxu1 %v945_v57 }
 0x110   :  { %v765_v12 = vmul.f32 %v701_v6, %v701_v6  ;;  %v702_v13 = vmax.f32 %v4738_v11, 0.0  ;;  %v506_v14 = vpop.f32.mrb[23].mxu0  ;;  %1274 = vmatprep.subr.bf16.mxu1 %v7111_v20  ;;  %v947_v15 = vpack.c.bf16 %v893_v5, %v892_v4 }
 0x111   :  { %v763_v16 = vmul.f32 %v699_v10, %v699_v10  ;;  %v700_v17 = vmax.f32 %v506_v14, 0.0  ;;  %v946_v18 = vpack.c.bf16 %v891_v9, %v890_v8  ;;  %v4987_v14 = vld [vmem:[%s7106_s5] ss:$8 sps:$4 sm:$0xff]  }
 0x112   :  { %v830_v19 = vmul.f32 %v5416_v25, %v765_v12  ;;  %v766_v21 = vmul.f32 %v702_v13, %v702_v13 }
 0x113   :  { %v828_v22 = vmul.f32 %v5416_v25, %v763_v16  ;;  %v764_v23 = vmul.f32 %v700_v17, %v700_v17  ;;  %1275 = vmatpush1.bf16.msra.mxu1 %v946_v18  ;;  %v4992_v16 = vld [vmem:[%s7106_s5 + $0x10] ss:$8 sps:$4 sm:$0xff]   ;;  %v4993_v17 = vld [vmem:[%s7106_s5 + $0x24] ss:$8 sps:$4 sm:$0xff]  }
 0x114   :  { %v831_v24 = vmul.f32 %v5416_v25, %v766_v21  ;;  %1276 = vmatprep.subr.bf16.mxu1 %v7111_v20  ;;  %v896_v28 = vadd.f32 %v5422_v35, %v830_v19  ;;  %v5041_v18 = vld [vmem:[%s7103_s2 + $0x80] sm:$0xff]   ;;  %v5042_v19 = vld [vmem:[%s7103_s2 + $0x88] sm:$0xff]   ;;  %v5043_v21 = vld [vmem:[%s7103_s2 + $0x90] sm:$0xff]  }
 0x115   :  { %v829_v26 = vmul.f32 %v5416_v25, %v764_v23  ;;  %v4741_v27 = vpop.f32.mrb[24].mxu0  ;;  %v894_v32 = vadd.f32 %v5422_v35, %v828_v22  ;;  %4747 = vmatprep.mubr.msk.bf16.mxu0 %vm292_vm0, %v5041_v18  ;;  %v4995_v22 = vld [vmem:[%s7106_s5 + $0x20] ss:$8 sps:$4 sm:$0xff]   ;;  %v4996_v23 = vld [vmem:[%s7106_s5 + $0x34] ss:$8 sps:$4 sm:$0xff]  }
 0x116   :  { %v897_v29 = vadd.f32 %v5422_v35, %v831_v24  ;;  %v705_v30 = vmax.f32 %v4741_v27, 0.0  ;;  %v519_v31 = vpop.f32.mrb[25].mxu0  ;;  %4748 = vmatmul.mubr.msk.bf16.gmra.mrb[32].mxu0 %vm292_vm0, %v5042_v19  ;;  %v5044_v24 = vld [vmem:[%s7103_s2 + $0x98] sm:$0xff]  }
 0x117   :  { %v895_v33 = vadd.f32 %v5422_v35, %v829_v26  ;;  %v703_v34 = vmax.f32 %v519_v31, 0.0  ;;  %v4742_v36 = vpop.f32.mrb[26].mxu0  ;;  %1277 = vmatpush1.bf16.msra.mxu1 %v947_v15  ;;  %v4990_v15 = vld [vmem:[%s7106_s5 + $0x14] ss:$8 sps:$4 sm:$0xff]   ;;  %4751 = vmatprep.mubr.msk.bf16.mxu0 %vm292_vm0, %v5043_v21  ;;  %v5045_v26 = vld [vmem:[%s7103_s2 + $0xa0] sm:$0xff]  }
 0x118   :  { %v769_v37 = vmul.f32 %v705_v30, %v705_v30  ;;  %v706_v38 = vmax.f32 %v4742_v36, 0.0  ;;  %v522_v39 = vpop.f32.mrb[27].mxu0  ;;  %1278 = vmatprep.subr.bf16.mxu1 %v7111_v20  ;;  %v949_v40 = vpack.c.bf16 %v897_v29, %v896_v28  ;;  %v4998_v27 = vld [vmem:[%s7106_s5 + $0x30] ss:$8 sps:$4 sm:$0xff]   ;;  %v4999_v28 = vld [vmem:[%s7106_s5 + $0x44] ss:$8 sps:$4 sm:$0xff]  }
 0x119   :  { %v767_v41 = vmul.f32 %v703_v34, %v703_v34  ;;  %v704_v42 = vmax.f32 %v522_v39, 0.0  ;;  %v948_v43 = vpack.c.bf16 %v895_v33, %v894_v32  ;;  %v5046_v29 = vld [vmem:[%s7103_s2 + $0xa8] sm:$0xff]   ;;  %v5047_v30 = vld [vmem:[%s7103_s2 + $0xb0] sm:$0xff]  }
 0x11a   :  { %v834_v44 = vmul.f32 %v5416_v25, %v769_v37  ;;  %v770_v45 = vmul.f32 %v706_v38, %v706_v38  ;;  %v5001_v31 = vld [vmem:[%s7106_s5 + $0x40] ss:$8 sps:$4 sm:$0xff]   ;;  %v5002_v32 = vld [vmem:[%s7106_s5 + $0x54] ss:$8 sps:$4 sm:$0xff]   ;;  %v5004_v33 = vld [vmem:[%s7106_s5 + $0x50] ss:$8 sps:$4 sm:$0xff]  }
 0x11b   :  { %v832_v46 = vmul.f32 %v5416_v25, %v767_v41  ;;  %v768_v47 = vmul.f32 %v704_v42, %v704_v42  ;;  %1279 = vmatpush1.bf16.msra.mxu1 %v948_v43  ;;  %v5005_v34 = vld [vmem:[%s7106_s5 + $0x64] ss:$8 sps:$4 sm:$0xff]   ;;  %v5007_v36 = vld [vmem:[%s7106_s5 + $0x60] ss:$8 sps:$4 sm:$0xff]   ;;  %v5008_v37 = vld [vmem:[%s7106_s5 + $0x74] ss:$8 sps:$4 sm:$0xff]  }
 0x11c   :  { %v835_v48 = vmul.f32 %v5416_v25, %v770_v45  ;;  %1280 = vmatprep.subr.bf16.mxu1 %v7111_v20  ;;  %v900_v51 = vadd.f32 %v5422_v35, %v834_v44  ;;  %v5010_v38 = vld [vmem:[%s7106_s5 + $0x70] ss:$8 sps:$4 sm:$0xff]   ;;  %v5011_v39 = vld [vmem:[%s7106_s5 + $0x84] ss:$8 sps:$4 sm:$0xff]   ;;  %v5014_v41 = vld [vmem:[%s7106_s5 + $0x94] ss:$8 sps:$4 sm:$0xff]  }
 0x11d   :  { %v833_v49 = vmul.f32 %v5416_v25, %v768_v47  ;;  %v4745_v50 = vpop.f32.mrb[28].mxu0  ;;  %v898_v55 = vadd.f32 %v5422_v35, %v832_v46  ;;  %v5016_v42 = vld [vmem:[%s7106_s5 + $0x90] ss:$8 sps:$4 sm:$0xff]   ;;  %v5017_v43 = vld [vmem:[%s7106_s5 + $0xa4] ss:$8 sps:$4 sm:$0xff]  }
 0x11e   :  { %v901_v52 = vadd.f32 %v5422_v35, %v835_v48  ;;  %v709_v53 = vmax.f32 %v4745_v50, 0.0  ;;  %v535_v54 = vpop.f32.mrb[29].mxu0  ;;  %4752 = vmatmul.mubr.msk.bf16.gmra.mrb[36].mxu0 %vm292_vm0, %v5044_v24  ;;  %v5019_v44 = vld [vmem:[%s7106_s5 + $0xa0] ss:$8 sps:$4 sm:$0xff]   ;;  %v5020_v45 = vld [vmem:[%s7106_s5 + $0xb4] ss:$8 sps:$4 sm:$0xff]  }
 0x11f   :  { %v899_v56 = vadd.f32 %v5422_v35, %v833_v49  ;;  %v707_v57 = vmax.f32 %v535_v54, 0.0  ;;  %v4746_v58 = vpop.f32.mrb[30].mxu0  ;;  %1281 = vmatpush1.bf16.msra.mxu1 %v949_v40  ;;  %4755 = vmatprep.mubr.msk.bf16.mxu0 %vm292_vm0, %v5045_v26  ;;  %v5013_v40 = vld [vmem:[%s7106_s5 + $0x80] ss:$8 sps:$4 sm:$0xff]   ;;  %v5048_v46 = vld [vmem:[%s7103_s2 + $0xb8] sm:$0xff]  }
 0x120   :  { %v773_v59 = vmul.f32 %v709_v53, %v709_v53  ;;  %v710_v60 = vmax.f32 %v4746_v58, 0.0  ;;  %v538_v61 = vpop.f32.mrb[31].mxu0  ;;  %1282 = vmatprep.subr.bf16.mxu1 %v7111_v20  ;;  %v951_v62 = vpack.c.bf16 %v901_v52, %v900_v51  ;;  %v5022_v47 = vld [vmem:[%s7106_s5 + $0xb0] ss:$8 sps:$4 sm:$0xff]   ;;  %v5023_v48 = vld [vmem:[%s7106_s5 + $0xc4] ss:$8 sps:$4 sm:$0xff]  }
 0x121   :  { %v771_v63 = vmul.f32 %v707_v57, %v707_v57  ;;  %v708_v0 = vmax.f32 %v538_v61, 0.0  ;;  %v950_v1 = vpack.c.bf16 %v899_v56, %v898_v55  ;;  %v5049_v49 = vld [vmem:[%s7103_s2 + $0xc0] sm:$0xff]   ;;  %v5050_v50 = vld [vmem:[%s7103_s2 + $0xc8] sm:$0xff]   ;;  %v5026_v52 = vld [vmem:[%s7106_s5 + $0xd4] ss:$8 sps:$4 sm:$0xff]  }
 0x122   :  { %v838_v2 = vmul.f32 %v5416_v25, %v773_v59  ;;  %v774_v3 = vmul.f32 %v710_v60, %v710_v60  ;;  %v5025_v51 = vld [vmem:[%s7106_s5 + $0xc0] ss:$8 sps:$4 sm:$0xff]   ;;  %v5051_v53 = vld [vmem:[%s7103_s2 + $0xd0] sm:$0xff]   ;;  %v5052_v54 = vld [vmem:[%s7103_s2 + $0xd8] sm:$0xff]  }
 0x123   :  { %v836_v4 = vmul.f32 %v5416_v25, %v771_v63  ;;  %v772_v5 = vmul.f32 %v708_v0, %v708_v0  ;;  %1283 = vmatpush1.bf16.msra.mxu1 %v950_v1  ;;  %v5028_v55 = vld [vmem:[%s7106_s5 + $0xd0] ss:$8 sps:$4 sm:$0xff]   ;;  %v5029_v56 = vld [vmem:[%s7106_s5 + $0xe4] ss:$8 sps:$4 sm:$0xff]   ;;  %v5031_v59 = vld [vmem:[%s7106_s5 + $0xe0] ss:$8 sps:$4 sm:$0xff]  }
 0x124   :  { %v839_v6 = vmul.f32 %v5416_v25, %v774_v3  ;;  %1284 = vmatprep.subr.bf16.mxu1 %v7111_v20  ;;  %v904_v8 = vadd.f32 %v5422_v35, %v838_v2  ;;  %v5053_v57 = vld [vmem:[%s7103_s2 + $0xe0] sm:$0xff]   ;;  %v5054_v58 = vld [vmem:[%s7103_s2 + $0xe8] sm:$0xff]   ;;  %v5032_v60 = vld [vmem:[%s7106_s5 + $0xf4] ss:$8 sps:$4 sm:$0xff]  }
 0x125   :  { %v837_v7 = vmul.f32 %v5416_v25, %v772_v5  ;;  %v902_v10 = vadd.f32 %v5422_v35, %v836_v4  ;;  %v5055_v61 = vld [vmem:[%s7103_s2 + $0xf0] sm:$0xff]   ;;  %v5035_v0 = vld [vmem:[%s7106_s5 + $0x104] ss:$8 sps:$4 sm:$0xff]   ;;  %v5037_v1 = vld [vmem:[%s7106_s5 + $0x100] ss:$8 sps:$4 sm:$0xff]  }
 0x126   :  { %v905_v9 = vadd.f32 %v5422_v35, %v839_v6  ;;  %4756 = vmatmul.mubr.msk.bf16.gmra.mrb[40].mxu0 %vm292_vm0, %v5046_v29  ;;  %v5034_v63 = vld [vmem:[%s7106_s5 + $0xf0] ss:$8 sps:$4 sm:$0xff]   ;;  %v5038_v2 = vld [vmem:[%s7106_s5 + $0x114] ss:$8 sps:$4 sm:$0xff]  }
 0x127   :  { %v903_v11 = vadd.f32 %v5422_v35, %v837_v7  ;;  %1285 = vmatpush1.bf16.msra.mxu1 %v951_v62  ;;  %4759 = vmatprep.mubr.msk.bf16.mxu0 %vm292_vm0, %v5047_v30  ;;  %v5056_v62 = vld [vmem:[%s7103_s2 + $0xf8] sm:$0xff]   ;;  %v5059_v30 = vld [vmem:[%s7107_s6 + $0x4] ss:$12 sps:$4 sm:$0xff]  }
 0x128   :  { %1286 = vmatprep.subr.bf16.mxu1 %v7111_v20  ;;  %v953_v12 = vpack.c.bf16 %v905_v9, %v904_v8  ;;  %v5040_v3 = vld [vmem:[%s7106_s5 + $0x110] ss:$8 sps:$4 sm:$0xff]  }
 0x129   :  { %v952_v13 = vpack.c.bf16 %v903_v11, %v902_v10 }
 0x12b   :  { %1287 = vmatpush1.bf16.msra.mxu1 %v952_v13 }
 0x12c   :  { %1288 = vmatprep.subr.bf16.mxu1 %v7111_v20 }
 0x12e   :  { %4760 = vmatmul.mubr.msk.bf16.gmra.mrb[44].mxu0 %vm292_vm0, %v5048_v46 }
 0x12f   :  { %1289 = vmatpush1.bf16.msra.mxu1 %v953_v12  ;;  %4763 = vmatprep.mubr.msk.bf16.mxu0 %vm292_vm0, %v5049_v49 }
 0x132   :  { %1291 = vmatmul.mubr.bf16.vlgmr.msra.gmra.mrb[0].mxu1 %v4987_v14 }
 0x133   :  { %1298 = vmatprep.mubr.bf16.mxu1 %v4990_v15 }
 0x136   :  { %4764 = vmatmul.mubr.msk.bf16.gmra.mrb[48].mxu0 %vm292_vm0, %v5050_v50  ;;  %v4348_v50 = vld [vmem:[%s7108_s7 + $0x10] sm:$0xff]  }
 0x137   :  { %4767 = vmatprep.mubr.msk.bf16.mxu0 %vm292_vm0, %v5051_v53 }
 0x13a   :  { %1299 = vmatmul.mubr.bf16.gmra.mrb[4].mxu1 %v4992_v16 }
 0x13b   :  { %1306 = vmatprep.mubr.bf16.mxu1 %v4993_v17 }
 0x13e   :  { %4768 = vmatmul.mubr.msk.bf16.gmra.mrb[52].mxu0 %vm292_vm0, %v5052_v54 }
 0x13f   :  { %4771 = vmatprep.mubr.msk.bf16.mxu0 %vm292_vm0, %v5053_v57 }
 0x142   :  { %1307 = vmatmul.mubr.bf16.gmra.mrb[8].mxu1 %v4995_v22 }
 0x143   :  { %1314 = vmatprep.mubr.bf16.mxu1 %v4996_v23 }
 0x146   :  { %4772 = vmatmul.mubr.msk.bf16.gmra.mrb[56].mxu0 %vm292_vm0, %v5054_v58 }
 0x147   :  { %4775 = vmatprep.mubr.msk.bf16.mxu0 %vm292_vm0, %v5055_v61 }
 0x14a   :  { %1315 = vmatmul.mubr.bf16.gmra.mrb[12].mxu1 %v4998_v27 }
 0x14b   :  { %1322 = vmatprep.mubr.bf16.mxu1 %v4999_v28 }
 0x14e   :  { %4776 = vmatmul.mubr.msk.bf16.gmra.mrb[60].mxu0 %vm292_vm0, %v5056_v62  ;;  %v4349_v62 = vld [vmem:[%s7108_s7 + $0x18] sm:$0xff]  }
 0x14f   :  { %1946 = vmatprep.mubr.bf16.mxu0 %v5059_v30 }
 0x152   :  { %1323 = vmatmul.mubr.bf16.gmra.mrb[16].mxu1 %v5001_v31  ;;  %v5062_v31 = vld [vmem:[%s7107_s6 + $0x13c] ss:$12 sps:$4 sm:$0xff]  }
 0x153   :  { %1330 = vmatprep.mubr.bf16.mxu1 %v5002_v32 }
 0x15a   :  { %1331 = vmatmul.mubr.bf16.gmra.mrb[20].mxu1 %v5004_v33 }
 0x15b   :  { %1338 = vmatprep.mubr.bf16.mxu1 %v5005_v34 }
 0x162   :  { %1339 = vmatmul.mubr.bf16.gmra.mrb[24].mxu1 %v5007_v36 }
 0x163   :  { %1346 = vmatprep.mubr.bf16.mxu1 %v5008_v37  ;;  %v4276_v37 = vld [vmem:[%s7108_s7] sm:$0xff]  }
 0x164   :  { %v5725_v49 = vunpack.c.h.bf16 %v4276_v37 }
 0x166   :  { %7194 = vst [vmem:[#allocation12_spill] sm:$0xff] %v5725_v49 }
 0x16a   :  { %1347 = vmatmul.mubr.bf16.gmra.mrb[28].mxu1 %v5010_v38  ;;  %v4312_v38 = vld [vmem:[%s7109_s8] sm:$0xff]  }
 0x16b   :  { %1354 = vmatprep.mubr.bf16.mxu1 %v5011_v39  ;;  %v5730_v54 = vunpack.c.h.bf16 %v4312_v38 }
 0x16d   :  { %7195 = vst [vmem:[#allocation13_spill] sm:$0xff] %v5730_v54 }
 0x172   :  { %1355 = vmatmul.mubr.bf16.gmra.mrb[32].mxu1 %v5013_v40  ;;  %v4347_v40 = vld [vmem:[%s7108_s7 + $0x8] sm:$0xff]  }
 0x173   :  { %1362 = vmatprep.mubr.bf16.mxu1 %v5014_v41  ;;  %v5739_v61 = vunpack.c.h.bf16 %v4347_v40 }
 0x175   :  { %7198 = vst [vmem:[#allocation16_spill] sm:$0xff] %v5739_v61 }
 0x17a   :  { %1363 = vmatmul.mubr.bf16.gmra.mrb[36].mxu1 %v5016_v42 }
 0x17b   :  { %1370 = vmatprep.mubr.bf16.mxu1 %v5017_v43  ;;  %v4355_v43 = vld [vmem:[%s7109_s8 + $0x8] sm:$0xff]  }
 0x182   :  { %1371 = vmatmul.mubr.bf16.gmra.mrb[40].mxu1 %v5019_v44 }
 0x183   :  { %1378 = vmatprep.mubr.bf16.mxu1 %v5020_v45 }
 0x18a   :  { %1379 = vmatmul.mubr.bf16.gmra.mrb[44].mxu1 %v5022_v47  ;;  %v5721_v47 = vunpack.c.l.bf16 %v4276_v37 }
 0x18b   :  { %1386 = vmatprep.mubr.bf16.mxu1 %v5023_v48  ;;  %v5723_v48 = vunpack.c.l.bf16 %v4312_v38 }
 0x18c   :  { %7192 = vst [vmem:[#allocation10_spill] sm:$0xff] %v5721_v47 }
 0x18d   :  { %7193 = vst [vmem:[#allocation11_spill] sm:$0xff] %v5723_v48 }
 0x192   :  { %1387 = vmatmul.mubr.bf16.gmra.mrb[48].mxu1 %v5025_v51 }
 0x193   :  { %1394 = vmatprep.mubr.bf16.mxu1 %v5026_v52 }
 0x19a   :  { %1395 = vmatmul.mubr.bf16.gmra.mrb[52].mxu1 %v5028_v55  ;;  %v5732_v55 = vunpack.c.l.bf16 %v4347_v40 }
 0x19b   :  { %1402 = vmatprep.mubr.bf16.mxu1 %v5029_v56  ;;  %v4356_v56 = vld [vmem:[%s7109_s8 + $0x10] sm:$0xff]  }
 0x19c   :  { %7196 = vst [vmem:[#allocation14_spill] sm:$0xff] %v5732_v55 }
 0x1a2   :  { %1403 = vmatmul.mubr.bf16.gmra.mrb[56].mxu1 %v5031_v59 }
 0x1a3   :  { %1410 = vmatprep.mubr.bf16.mxu1 %v5032_v60  ;;  %v5737_v60 = vunpack.c.l.bf16 %v4355_v43 }
 0x1a5   :  { %7197 = vst [vmem:[#allocation15_spill] sm:$0xff] %v5737_v60 }
 0x1aa   :  { %1411 = vmatmul.mubr.bf16.gmra.mrb[60].mxu1 %v5034_v63 }
 0x1ab   :  { %1418 = vmatprep.mubr.bf16.mxu1 %v5035_v0 }
 0x1b2   :  { %1419 = vmatmul.mubr.bf16.gmra.mrb[64].mxu1 %v5037_v1  ;;  %v5744_v1 = vunpack.c.h.bf16 %v4355_v43  ;;  %v4351_v43 = vld [vmem:[%s7108_s7 + $0x28] sm:$0xff]  }
 0x1b3   :  { %1426 = vmatprep.mubr.bf16.mxu1 %v5038_v2  ;;  %v5746_v2 = vunpack.c.l.bf16 %v4348_v50 }
 0x1b4   :  { %7199 = vst [vmem:[#allocation17_spill] sm:$0xff] %v5744_v1 }
 0x1b5   :  { %7200 = vst [vmem:[#allocation18_spill] sm:$0xff] %v5746_v2 }
 0x1ba   :  { %1427 = vmatmul.mubr.bf16.gmra.mrb[68].mxu1 %v5040_v3  ;;  %v4357_v3 = vld [vmem:[%s7109_s8 + $0x18] sm:$0xff]  }
 0x1bb   :  { %2050 = vmatprep.mubr.bf16.mxu1 %v5062_v31  ;;  %v5773_v31 = vunpack.c.l.bf16 %v4357_v3 }
 0x1bd   :  { %7207 = vst [vmem:[#allocation25_spill] sm:$0xff] %v5773_v31 }
 0x1e9   :  { %v4749_v42 = vpop.f32.mrb[32].mxu0 }
 0x1ea   :  { %v713_v45 = vmax.f32 %v4749_v42, 0.0  ;;  %v551_v46 = vpop.f32.mrb[33].mxu0 }
 0x1eb   :  { %v711_v52 = vmax.f32 %v551_v46, 0.0  ;;  %v4750_v53 = vpop.f32.mrb[34].mxu0 }
 0x1ec   :  { %v777_v57 = vmul.f32 %v713_v45, %v713_v45  ;;  %v714_v58 = vmax.f32 %v4750_v53, 0.0  ;;  %v554_v59 = vpop.f32.mrb[35].mxu0 }
 0x1ed   :  { %v775_v63 = vmul.f32 %v711_v52, %v711_v52  ;;  %v712_v0 = vmax.f32 %v554_v59, 0.0 }
 0x1f1   :  { %v4753_v40 = vpop.f32.mrb[36].mxu0 }
 0x205   :  { %v5671_v4 = vpop.f32.mrb[0].mxu1 }
 0x206   :  { %v1294_v5 = vpop.f32.mrb[1].mxu1 }
 0x207   :  { %v5673_v6 = vpop.f32.mrb[2].mxu1  ;;  %v842_v5 = vmul.f32 %v5416_v25, %v777_v57 }
 0x208   :  { %v1297_v7 = vpop.f32.mrb[3].mxu1 }
 0x209   :  { %v778_v7 = vmul.f32 %v714_v58, %v714_v58 }
 0x20b   :  { %v843_v30 = vmul.f32 %v5416_v25, %v778_v7 }
 0x20d   :  { %v5675_v8 = vpop.f32.mrb[4].mxu1  ;;  %v5791_v46 = vadd.f32 %v5422_v35, %v843_v30 }
 0x20e   :  { %v1302_v9 = vpop.f32.mrb[5].mxu1 }
 0x20f   :  { %v5677_v10 = vpop.f32.mrb[6].mxu1  ;;  %v5752_v9 = vunpack.c.l.bf16 %v4356_v56  ;;  %7213 = vst [vmem:[#allocation31_spill] sm:$0xff] %v5791_v46  ;;  %v1436_v46 = vmul.f32 %v5725_v49, %v5673_v6 }
 0x210   :  { %v1305_v11 = vpop.f32.mrb[7].mxu1 }
 0x211   :  { %7201 = vst [vmem:[#allocation19_spill] sm:$0xff] %v5752_v9  ;;  %v5754_v11 = vunpack.c.h.bf16 %v4348_v50  ;;  %v717_v50 = vmax.f32 %v4753_v40, 0.0  ;;  %v5821_v40 = vunpack.c.h.bf16 %v4351_v43 }
 0x213   :  { %7202 = vst [vmem:[#allocation20_spill] sm:$0xff] %v5754_v11  ;;  %7220 = vst [vmem:[#allocation38_spill] sm:$0xff] %v5821_v40 }
 0x215   :  { %v5679_v12 = vpop.f32.mrb[8].mxu1 }
 0x216   :  { %v1310_v13 = vpop.f32.mrb[9].mxu1 }
 0x217   :  { %v5681_v14 = vpop.f32.mrb[10].mxu1  ;;  %v4350_v13 = vld [vmem:[%s7108_s7 + $0x20] sm:$0xff]  }
 0x218   :  { %v1313_v15 = vpop.f32.mrb[11].mxu1  ;;  %v5783_v42 = vunpack.c.l.bf16 %v4350_v13  ;;  %v5795_v53 = vunpack.c.h.bf16 %v4350_v13 }
 0x219   :  { %v840_v15 = vmul.f32 %v5416_v25, %v775_v63 }
 0x21a   :  { %7211 = vst [vmem:[#allocation29_spill] sm:$0xff] %v5783_v42  ;;  %7215 = vst [vmem:[#allocation33_spill] sm:$0xff] %v5795_v53 }
 0x21b   :  { %v5778_v37 = vadd.f32 %v5422_v35, %v840_v15  ;;  %v5810_v15 = vunpack.c.l.bf16 %v4351_v43 }
 0x21d   :  { %v5683_v16 = vpop.f32.mrb[12].mxu1  ;;  %7209 = vst [vmem:[#allocation27_spill] sm:$0xff] %v5778_v37  ;;  %7218 = vst [vmem:[#allocation36_spill] sm:$0xff] %v5810_v15  ;;  %v1490_v37 = vmul.f32 %v5730_v54, %v5673_v6 }
 0x21e   :  { %v1318_v17 = vpop.f32.mrb[13].mxu1 }
 0x21f   :  { %v5685_v18 = vpop.f32.mrb[14].mxu1  ;;  %v776_v17 = vmul.f32 %v712_v0, %v712_v0  ;;  %v4352_v0 = vld [vmem:[%s7108_s7 + $0x30] sm:$0xff]  }
 0x220   :  { %v1321_v19 = vpop.f32.mrb[15].mxu1 }
 0x221   :  { %v5760_v19 = vunpack.c.h.bf16 %v4356_v56  ;;  %v841_v38 = vmul.f32 %v5416_v25, %v776_v17  ;;  %v4359_v56 = vld [vmem:[%s7109_s8 + $0x28] sm:$0xff]   ;;  %v5815_v17 = vld [vmem:[%s7109_s8 + $0x30] sm:$0xff]  }
 0x223   :  { %7203 = vst [vmem:[#allocation21_spill] sm:$0xff] %v5760_v19  ;;  %v5801_v58 = vadd.f32 %v5422_v35, %v841_v38  ;;  %v5819_v38 = vunpack.c.l.bf16 %v4359_v56 }
 0x225   :  { %v5687_v21 = vpop.f32.mrb[16].mxu1  ;;  %7216 = vst [vmem:[#allocation34_spill] sm:$0xff] %v5801_v58  ;;  %7219 = vst [vmem:[#allocation37_spill] sm:$0xff] %v5819_v38 }
 0x226   :  { %v1326_v22 = vpop.f32.mrb[17].mxu1 }
 0x227   :  { %v5689_v23 = vpop.f32.mrb[18].mxu1  ;;  %v5762_v22 = vunpack.c.l.bf16 %v4349_v62 }
 0x228   :  { %v1329_v24 = vpop.f32.mrb[19].mxu1 }
 0x229   :  { %7204 = vst [vmem:[#allocation22_spill] sm:$0xff] %v5762_v22  ;;  %v4358_v24 = vld [vmem:[%s7109_s8 + $0x20] sm:$0xff]  }
 0x22a   :  { %v5793_v52 = vunpack.c.l.bf16 %v4358_v24  ;;  %v5803_v63 = vunpack.c.h.bf16 %v4358_v24 }
 0x22c   :  { %7214 = vst [vmem:[#allocation32_spill] sm:$0xff] %v5793_v52  ;;  %7217 = vst [vmem:[#allocation35_spill] sm:$0xff] %v5803_v63 }
 0x22d   :  { %v5691_v26 = vpop.f32.mrb[20].mxu1 }
 0x22e   :  { %v1334_v27 = vpop.f32.mrb[21].mxu1 }
 0x22f   :  { %v5693_v28 = vpop.f32.mrb[22].mxu1 }
 0x230   :  { %v1337_v29 = vpop.f32.mrb[23].mxu1 }
 0x231   :  { %v5770_v29 = vadd.f32 %v5422_v35, %v842_v5  ;;  %v781_v5 = vmul.f32 %v717_v50, %v717_v50 }
 0x233   :  { %7206 = vst [vmem:[#allocation24_spill] sm:$0xff] %v5770_v29  ;;  %v846_v50 = vmul.f32 %v5416_v25, %v781_v5  ;;  %v1435_v29 = vmul.f32 %v5721_v47, %v5671_v4 }
 0x235   :  { %v5701_v32 = vpop.f32.mrb[24].mxu1  ;;  %v5835_v43 = vadd.f32 %v5422_v35, %v846_v50 }
 0x236   :  { %v1342_v33 = vpop.f32.mrb[25].mxu1 }
 0x237   :  { %v5703_v34 = vpop.f32.mrb[26].mxu1  ;;  %v5775_v33 = vunpack.c.h.bf16 %v4349_v62 }
 0x238   :  { %7189 = vst [vmem:[#allocation7_spill] sm:$0xff] %v5703_v34  ;;  %v1345_v36 = vpop.f32.mrb[27].mxu1 }
 0x239   :  { %7208 = vst [vmem:[#allocation26_spill] sm:$0xff] %v5775_v33 }
 0x23d   :  { %v5711_v39 = vpop.f32.mrb[28].mxu1 }
 0x23e   :  { %7190 = vst [vmem:[#allocation8_spill] sm:$0xff] %v5711_v39  ;;  %v1350_v41 = vpop.f32.mrb[29].mxu1 }
 0x23f   :  { %v5719_v44 = vpop.f32.mrb[30].mxu1  ;;  %v5781_v41 = vunpack.c.h.bf16 %v4357_v3 }
 0x240   :  { %7191 = vst [vmem:[#allocation9_spill] sm:$0xff] %v5719_v44  ;;  %v1353_v51 = vpop.f32.mrb[31].mxu1 }
 0x241   :  { %7210 = vst [vmem:[#allocation28_spill] sm:$0xff] %v5781_v41  ;;  %v567_v51 = vpop.f32.mrb[37].mxu0 }
 0x242   :  { %v715_v59 = vmax.f32 %v567_v51, 0.0  ;;  %v4754_v62 = vpop.f32.mrb[38].mxu0 }
 0x243   :  { %v718_v7 = vmax.f32 %v4754_v62, 0.0  ;;  %v570_v13 = vpop.f32.mrb[39].mxu0  ;;  %v5826_v62 = vunpack.c.l.bf16 %v4352_v0 }
 0x244   :  { %v779_v30 = vmul.f32 %v715_v59, %v715_v59  ;;  %v5832_v59 = vunpack.c.l.bf16 %v5815_v17 }
 0x245   :  { %v5767_v27 = vpop.f32.mrb[32].mxu1  ;;  %v782_v51 = vmul.f32 %v718_v7, %v718_v7  ;;  %7222 = vst [vmem:[#allocation40_spill] sm:$0xff] %v5826_v62 }
 0x246   :  { %7205 = vst [vmem:[#allocation23_spill] sm:$0xff] %v5767_v27  ;;  %v1358_v36 = vpop.f32.mrb[33].mxu1  ;;  %v844_v3 = vmul.f32 %v5416_v25, %v779_v30  ;;  %7223 = vst [vmem:[#allocation41_spill] sm:$0xff] %v5832_v59  ;;  %v1437_v27 = vmul.f32 %v5732_v55, %v5675_v8 }
 0x247   :  { %v5788_v45 = vpop.f32.mrb[34].mxu1  ;;  %v716_v36 = vmax.f32 %v570_v13, 0.0  ;;  %v847_v5 = vmul.f32 %v5416_v25, %v782_v51 }
 0x248   :  { %7212 = vst [vmem:[#allocation30_spill] sm:$0xff] %v5788_v45  ;;  %v1361_v57 = vpop.f32.mrb[35].mxu1  ;;  %v5848_v58 = vadd.f32 %v5422_v35, %v844_v3 }
 0x249   :  { %v5824_v57 = vunpack.c.h.bf16 %v4359_v56  ;;  %v780_v20 = vmul.f32 %v716_v36, %v716_v36  ;;  %v1489_v56 = vmul.f32 %v5723_v48, %v5671_v4  ;;  %v5851_v51 = vadd.f32 %v5422_v35, %v847_v5  ;;  %v4757_v4 = vpop.f32.mrb[40].mxu0 }
 0x24a   :  { %v721_v3 = vmax.f32 %v4757_v4, 0.0  ;;  %v5860_v5 = vunpack.c.h.bf16 %v4352_v0 }
 0x24b   :  { %7221 = vst [vmem:[#allocation39_spill] sm:$0xff] %v5824_v57  ;;  %v845_v24 = vmul.f32 %v5416_v25, %v780_v20 }
 0x24c   :  { %7224 = vst [vmem:[#allocation42_spill] sm:$0xff] %v5860_v5 }
 0x24d   :  { %v1364_v13 = vpop.f32.mrb[36].mxu1  ;;  %v5858_v6 = vadd.f32 %v5422_v35, %v845_v24 }
 0x24e   :  { %v1453_v7 = vmul.f32 %v5723_v48, %v1364_v13  ;;  %v1507_v30 = vmul.f32 %v5721_v47, %v1364_v13  ;;  %v1366_v36 = vpop.f32.mrb[37].mxu1  ;;  %v583_v47 = vpop.f32.mrb[41].mxu0 }
 0x24f   :  { %v1367_v50 = vpop.f32.mrb[38].mxu1  ;;  %v719_v44 = vmax.f32 %v583_v47, 0.0  ;;  %v4758_v39 = vpop.f32.mrb[42].mxu0 }
 0x250   :  { %v1471_v48 = vsub.f32 %v1435_v29, %v1453_v7  ;;  %v1525_v45 = vadd.f32 %v1507_v30, %v1489_v56  ;;  %v1454_v13 = vmul.f32 %v5730_v54, %v1367_v50  ;;  %v1508_v20 = vmul.f32 %v5725_v49, %v1367_v50  ;;  %v1369_v36 = vpop.f32.mrb[39].mxu1  ;;  %v586_v7 = vpop.f32.mrb[43].mxu0 }
 0x251   :  { %v722_v56 = vmax.f32 %v4758_v39, 0.0  ;;  %v785_v50 = vmul.f32 %v721_v3, %v721_v3  ;;  %v783_v36 = vmul.f32 %v719_v44, %v719_v44  ;;  %v720_v54 = vmax.f32 %v586_v7, 0.0  ;;  %v4761_v7 = vpop.f32.mrb[44].mxu0 }
 0x252   :  { %v1472_v34 = vsub.f32 %v1436_v46, %v1454_v13  ;;  %v1526_v29 = vadd.f32 %v1508_v20, %v1490_v37  ;;  %v1491_v46 = vmul.f32 %v5737_v60, %v5675_v8  ;;  %v1438_v44 = vmul.f32 %v5739_v61, %v5677_v10  ;;  %v599_v30 = vpop.f32.mrb[45].mxu0 }
 0x253   :  { %v786_v47 = vmul.f32 %v722_v56, %v722_v56  ;;  %v850_v39 = vmul.f32 %v5416_v25, %v785_v50  ;;  %v848_v0 = vmul.f32 %v5416_v25, %v783_v36  ;;  %v784_v13 = vmul.f32 %v720_v54, %v720_v54 }
 0x254   :  { %v5866_v24 = vpack.c.bf16 %v1472_v34, %v1471_v48  ;;  %v5868_v4 = vpack.c.bf16 %v1526_v29, %v1525_v45  ;;  %v1492_v3 = vmul.f32 %v5744_v1, %v5677_v10 }
 0x255   :  { %v1372_v37 = vpop.f32.mrb[40].mxu1  ;;  %v851_v45 = vmul.f32 %v5416_v25, %v786_v47  ;;  %v5882_v29 = vadd.f32 %v5422_v35, %v850_v39  ;;  %v5885_v56 = vadd.f32 %v5422_v35, %v848_v0  ;;  %v849_v54 = vmul.f32 %v5416_v25, %v784_v13 }
 0x256   :  { %v1455_v20 = vmul.f32 %v5737_v60, %v1372_v37  ;;  %v1509_v34 = vmul.f32 %v5732_v55, %v1372_v37  ;;  %v1374_v48 = vpop.f32.mrb[41].mxu1  ;;  %v725_v60 = vmax.f32 %v4761_v7, 0.0  ;;  %v723_v0 = vmax.f32 %v599_v30, 0.0  ;;  %v4762_v55 = vpop.f32.mrb[46].mxu0 }
 0x257   :  { %v1375_v8 = vpop.f32.mrb[42].mxu1  ;;  %v5891_v10 = vadd.f32 %v5422_v35, %v851_v45  ;;  %v5894_v39 = vadd.f32 %v5422_v35, %v849_v54  ;;  %v5897_v13 = vunpack.c.h.bf16 %v5815_v17  ;;  %v1439_v17 = vmul.f32 %v5746_v2, %v5679_v12 }
 0x258   :  { %v1473_v50 = vsub.f32 %v1437_v27, %v1455_v20  ;;  %v1527_v36 = vadd.f32 %v1509_v34, %v1491_v46  ;;  %v1456_v37 = vmul.f32 %v5744_v1, %v1375_v8  ;;  %v1510_v48 = vmul.f32 %v5739_v61, %v1375_v8  ;;  %v1377_v47 = vpop.f32.mrb[43].mxu1  ;;  %v602_v34 = vpop.f32.mrb[47].mxu0 }
 0x259   :  { %7225 = vst [vmem:[#allocation43_spill] sm:$0xff] %v5897_v13  ;;  %v726_v20 = vmax.f32 %v4762_v55, 0.0  ;;  %v789_v47 = vmul.f32 %v725_v60, %v725_v60  ;;  %v787_v1 = vmul.f32 %v723_v0, %v723_v0  ;;  %v724_v61 = vmax.f32 %v602_v34, 0.0  ;;  %v4765_v34 = vpop.f32.mrb[48].mxu0 }
 0x25a   :  { %v1474_v27 = vsub.f32 %v1438_v44, %v1456_v37  ;;  %v1528_v46 = vadd.f32 %v1510_v48, %v1492_v3  ;;  %v1493_v55 = vmul.f32 %v5752_v9, %v5679_v12  ;;  %v615_v8 = vpop.f32.mrb[49].mxu0 }
 0x25b   :  { %v790_v30 = vmul.f32 %v726_v20, %v726_v20  ;;  %v854_v3 = vmul.f32 %v5416_v25, %v789_v47  ;;  %v852_v37 = vmul.f32 %v5416_v25, %v787_v1  ;;  %v788_v0 = vmul.f32 %v724_v61, %v724_v61 }
 0x25c   :  { %v5903_v54 = vpack.c.bf16 %v1474_v27, %v1473_v50  ;;  %v5905_v7 = vpack.c.bf16 %v1528_v46, %v1527_v36  ;;  %v1440_v27 = vmul.f32 %v5754_v11, %v5681_v14  ;;  %v1494_v46 = vmul.f32 %v5760_v19, %v5681_v14 }
 0x25d   :  { %v1380_v44 = vpop.f32.mrb[44].mxu1  ;;  %v855_v36 = vmul.f32 %v5416_v25, %v790_v30  ;;  %v5921_v20 = vadd.f32 %v5422_v35, %v854_v3  ;;  %v5924_v1 = vadd.f32 %v5422_v35, %v852_v37  ;;  %v853_v14 = vmul.f32 %v5416_v25, %v788_v0 }
 0x25e   :  { %v1457_v60 = vmul.f32 %v5752_v9, %v1380_v44  ;;  %v1511_v50 = vmul.f32 %v5746_v2, %v1380_v44  ;;  %v1382_v48 = vpop.f32.mrb[45].mxu1  ;;  %v729_v9 = vmax.f32 %v4765_v34, 0.0  ;;  %v727_v3 = vmax.f32 %v615_v8, 0.0  ;;  %v4766_v2 = vpop.f32.mrb[50].mxu0 }
 0x25f   :  { %v1383_v12 = vpop.f32.mrb[46].mxu1  ;;  %v5929_v45 = vadd.f32 %v5422_v35, %v855_v36  ;;  %v1441_v37 = vmul.f32 %v5762_v22, %v5683_v16 }
 0x260   :  { %v1475_v47 = vsub.f32 %v1439_v17, %v1457_v60  ;;  %v1529_v44 = vadd.f32 %v1511_v50, %v1493_v55  ;;  %v1458_v48 = vmul.f32 %v5760_v19, %v1383_v12  ;;  %v1512_v61 = vmul.f32 %v5754_v11, %v1383_v12  ;;  %v1385_v30 = vpop.f32.mrb[47].mxu1  ;;  %v618_v60 = vpop.f32.mrb[51].mxu0 }
 0x261   :  { %v730_v55 = vmax.f32 %v4766_v2, 0.0  ;;  %v5937_v12 = vadd.f32 %v5422_v35, %v853_v14  ;;  %v793_v36 = vmul.f32 %v729_v9, %v729_v9  ;;  %v791_v30 = vmul.f32 %v727_v3, %v727_v3 }
 0x262   :  { %v1476_v49 = vsub.f32 %v1440_v27, %v1458_v48  ;;  %v1530_v17 = vadd.f32 %v1512_v61, %v1494_v46  ;;  %v728_v34 = vmax.f32 %v618_v60, 0.0  ;;  %v1495_v27 = vmul.f32 %v5773_v31, %v5683_v16 }
 0x263   :  { %v794_v8 = vmul.f32 %v730_v55, %v730_v55  ;;  %v858_v48 = vmul.f32 %v5416_v25, %v793_v36  ;;  %v856_v61 = vmul.f32 %v5416_v25, %v791_v30  ;;  %v1442_v3 = vmul.f32 %v5775_v33, %v5685_v18  ;;  %v4769_v36 = vpop.f32.mrb[52].mxu0 }
 0x264   :  { %v5939_v19 = vpack.c.bf16 %v1476_v49, %v1475_v47  ;;  %v5941_v0 = vpack.c.bf16 %v1530_v17, %v1529_v44  ;;  %v792_v14 = vmul.f32 %v728_v34, %v728_v34  ;;  %v1496_v16 = vmul.f32 %v5781_v41, %v5685_v18  ;;  %v631_v50 = vpop.f32.mrb[53].mxu0 }
 0x265   :  { %v1388_v46 = vpop.f32.mrb[48].mxu1  ;;  %v859_v44 = vmul.f32 %v5416_v25, %v794_v8  ;;  %v5957_v55 = vadd.f32 %v5422_v35, %v858_v48  ;;  %v5960_v60 = vadd.f32 %v5422_v35, %v856_v61  ;;  %v731_v48 = vmax.f32 %v631_v50, 0.0 }
 0x266   :  { %v1459_v9 = vmul.f32 %v5773_v31, %v1388_v46  ;;  %v1513_v49 = vmul.f32 %v5762_v22, %v1388_v46  ;;  %v1390_v47 = vpop.f32.mrb[49].mxu1  ;;  %v857_v18 = vmul.f32 %v5416_v25, %v792_v14  ;;  %v733_v31 = vmax.f32 %v4769_v36, 0.0  ;;  %v4770_v22 = vpop.f32.mrb[54].mxu0 }
 0x267   :  { %v1391_v17 = vpop.f32.mrb[50].mxu1  ;;  %v5965_v2 = vadd.f32 %v5422_v35, %v859_v44  ;;  %v1443_v61 = vmul.f32 %v5783_v42, %v5687_v21 }
 0x268   :  { %v1477_v30 = vsub.f32 %v1441_v37, %v1459_v9  ;;  %v1531_v46 = vadd.f32 %v1513_v49, %v1495_v27  ;;  %v1460_v47 = vmul.f32 %v5781_v41, %v1391_v17  ;;  %v1514_v8 = vmul.f32 %v5775_v33, %v1391_v17  ;;  %v1393_v34 = vpop.f32.mrb[51].mxu1  ;;  %v634_v9 = vpop.f32.mrb[55].mxu0 }
 0x269   :  { %v734_v27 = vmax.f32 %v4770_v22, 0.0  ;;  %v5973_v17 = vadd.f32 %v5422_v35, %v857_v18  ;;  %v797_v44 = vmul.f32 %v733_v31, %v733_v31  ;;  %v795_v34 = vmul.f32 %v731_v48, %v731_v48 }
 0x26a   :  { %v1478_v11 = vsub.f32 %v1442_v3, %v1460_v47  ;;  %v1532_v37 = vadd.f32 %v1514_v8, %v1496_v16  ;;  %v732_v36 = vmax.f32 %v634_v9, 0.0  ;;  %v1497_v3 = vmul.f32 %v5793_v52, %v5687_v21 }
 0x26b   :  { %v798_v50 = vmul.f32 %v734_v27, %v734_v27  ;;  %v862_v47 = vmul.f32 %v5416_v25, %v797_v44  ;;  %v860_v8 = vmul.f32 %v5416_v25, %v795_v34  ;;  %v1444_v48 = vmul.f32 %v5795_v53, %v5689_v23  ;;  %v4773_v44 = vpop.f32.mrb[56].mxu0 }
 0x26c   :  { %v5975_v41 = vpack.c.bf16 %v1478_v11, %v1477_v30  ;;  %v5977_v14 = vpack.c.bf16 %v1532_v37, %v1531_v46  ;;  %v796_v18 = vmul.f32 %v732_v36, %v732_v36  ;;  %v1498_v21 = vmul.f32 %v5803_v63, %v5689_v23  ;;  %v647_v49 = vpop.f32.mrb[57].mxu0 }
 0x26d   :  { %v1396_v16 = vpop.f32.mrb[52].mxu1  ;;  %v863_v46 = vmul.f32 %v5416_v25, %v798_v50  ;;  %v5993_v27 = vadd.f32 %v5422_v35, %v862_v47  ;;  %v5996_v9 = vadd.f32 %v5422_v35, %v860_v8  ;;  %v735_v47 = vmax.f32 %v647_v49, 0.0 }
 0x26e   :  { %v1461_v31 = vmul.f32 %v5793_v52, %v1396_v16  ;;  %v1515_v11 = vmul.f32 %v5783_v42, %v1396_v16  ;;  %v1398_v30 = vpop.f32.mrb[53].mxu1  ;;  %v861_v23 = vmul.f32 %v5416_v25, %v796_v18  ;;  %v737_v52 = vmax.f32 %v4773_v44, 0.0  ;;  %v4774_v42 = vpop.f32.mrb[58].mxu0 }
 0x26f   :  { %v1399_v37 = vpop.f32.mrb[54].mxu1  ;;  %v6001_v22 = vadd.f32 %v5422_v35, %v863_v46  ;;  %v1445_v8 = vmul.f32 %v5810_v15, %v5691_v26 }
 0x270   :  { %v1479_v34 = vsub.f32 %v1443_v61, %v1461_v31  ;;  %v1533_v16 = vadd.f32 %v1515_v11, %v1497_v3  ;;  %v1462_v30 = vmul.f32 %v5803_v63, %v1399_v37  ;;  %v1516_v50 = vmul.f32 %v5795_v53, %v1399_v37  ;;  %v1401_v36 = vpop.f32.mrb[55].mxu1  ;;  %v650_v31 = vpop.f32.mrb[59].mxu0 }
 0x271   :  { %v738_v3 = vmax.f32 %v4774_v42, 0.0  ;;  %v6009_v37 = vadd.f32 %v5422_v35, %v861_v23  ;;  %v801_v46 = vmul.f32 %v737_v52, %v737_v52  ;;  %v799_v36 = vmul.f32 %v735_v47, %v735_v47 }
 0x272   :  { %v1480_v33 = vsub.f32 %v1444_v48, %v1462_v30  ;;  %v1534_v61 = vadd.f32 %v1516_v50, %v1498_v21  ;;  %v736_v44 = vmax.f32 %v650_v31, 0.0  ;;  %v1499_v48 = vmul.f32 %v5819_v38, %v5691_v26 }
 0x273   :  { %v802_v49 = vmul.f32 %v738_v3, %v738_v3  ;;  %v866_v30 = vmul.f32 %v5416_v25, %v801_v46  ;;  %v864_v50 = vmul.f32 %v5416_v25, %v799_v36  ;;  %v1446_v47 = vmul.f32 %v5821_v40, %v5693_v28  ;;  %v4777_v46 = vpop.f32.mrb[60].mxu0 }
 0x274   :  { %v6011_v63 = vpack.c.bf16 %v1480_v33, %v1479_v34  ;;  %v6013_v18 = vpack.c.bf16 %v1534_v61, %v1533_v16  ;;  %v800_v23 = vmul.f32 %v736_v44, %v736_v44  ;;  %v1500_v26 = vmul.f32 %v5824_v57, %v5693_v28  ;;  %v663_v11 = vpop.f32.mrb[61].mxu0 }
 0x275   :  { %v1404_v21 = vpop.f32.mrb[56].mxu1  ;;  %v867_v16 = vmul.f32 %v5416_v25, %v802_v49  ;;  %v6029_v3 = vadd.f32 %v5422_v35, %v866_v30  ;;  %v6032_v31 = vadd.f32 %v5422_v35, %v864_v50  ;;  %v739_v30 = vmax.f32 %v663_v11, 0.0 }
 0x276   :  { %v1463_v52 = vmul.f32 %v5819_v38, %v1404_v21  ;;  %v1517_v33 = vmul.f32 %v5810_v15, %v1404_v21  ;;  %v1406_v34 = vpop.f32.mrb[57].mxu1  ;;  %v865_v28 = vmul.f32 %v5416_v25, %v800_v23  ;;  %v741_v38 = vmax.f32 %v4777_v46, 0.0  ;;  %v4778_v15 = vpop.f32.mrb[62].mxu0 }
 0x277   :  { %v1407_v61 = vpop.f32.mrb[58].mxu1  ;;  %v6037_v42 = vadd.f32 %v5422_v35, %v867_v16  ;;  %v1447_v50 = vmul.f32 %v5826_v62, %v5701_v32 }
 0x278   :  { %v1481_v36 = vsub.f32 %v1445_v8, %v1463_v52  ;;  %v1535_v21 = vadd.f32 %v1517_v33, %v1499_v48  ;;  %v1464_v34 = vmul.f32 %v5824_v57, %v1407_v61  ;;  %v1518_v49 = vmul.f32 %v5821_v40, %v1407_v61  ;;  %v1409_v44 = vpop.f32.mrb[59].mxu1  ;;  %v666_v52 = vpop.f32.mrb[63].mxu0 }
 0x279   :  { %v742_v48 = vmax.f32 %v4778_v15, 0.0  ;;  %v6045_v61 = vadd.f32 %v5422_v35, %v865_v28  ;;  %v805_v16 = vmul.f32 %v741_v38, %v741_v38  ;;  %v803_v44 = vmul.f32 %v739_v30, %v739_v30  ;;  %v7226_v30 = vld [vmem:[#allocation7_spill] sm:$0xff] }
 0x27a   :  { %v1482_v53 = vsub.f32 %v1446_v47, %v1464_v34  ;;  %v1536_v8 = vadd.f32 %v1518_v49, %v1500_v26  ;;  %v740_v46 = vmax.f32 %v666_v52, 0.0  ;;  %v1501_v47 = vmul.f32 %v5832_v59, %v5701_v32  ;;  %v4361_v52 = vld [vmem:[%s7109_s8 + $0x38] sm:$0xff]  }
 0x27b   :  { %v806_v11 = vmul.f32 %v742_v48, %v742_v48  ;;  %v870_v34 = vmul.f32 %v5416_v25, %v805_v16  ;;  %v868_v49 = vmul.f32 %v5416_v25, %v803_v44  ;;  %v1502_v32 = vmul.f32 %v5897_v13, %v7226_v30  ;;  %v4353_v48 = vld [vmem:[%s7108_s7 + $0x38] sm:$0xff]  }
 0x27c   :  { %v6047_v57 = vpack.c.bf16 %v1482_v53, %v1481_v36  ;;  %v6049_v23 = vpack.c.bf16 %v1536_v8, %v1535_v21  ;;  %v804_v28 = vmul.f32 %v740_v46, %v740_v46  ;;  %v1448_v8 = vmul.f32 %v5860_v5, %v7226_v30 }
 0x27d   :  { %v1412_v26 = vpop.f32.mrb[60].mxu1  ;;  %v871_v21 = vmul.f32 %v5416_v25, %v806_v11  ;;  %v6071_v44 = vadd.f32 %v5422_v35, %v870_v34  ;;  %v6076_v30 = vadd.f32 %v5422_v35, %v868_v49  ;;  %v6084_v40 = vunpack.c.l.bf16 %v4361_v52 }
 0x27e   :  { %v1465_v38 = vmul.f32 %v5832_v59, %v1412_v26  ;;  %v1519_v53 = vmul.f32 %v5826_v62, %v1412_v26  ;;  %v1414_v36 = vpop.f32.mrb[61].mxu1  ;;  %v869_v59 = vmul.f32 %v5416_v25, %v804_v28  ;;  %v6082_v62 = vunpack.c.l.bf16 %v4353_v48 }
 0x27f   :  { %v1415_v16 = vpop.f32.mrb[62].mxu1  ;;  %7227 = vst [vmem:[#allocation7_spill] sm:$0xff] %v6071_v44  ;;  %7228 = vst [vmem:[#allocation44_spill] sm:$0xff] %v6076_v30  ;;  %v6079_v15 = vadd.f32 %v5422_v35, %v871_v21 }
 0x280   :  { %v1483_v11 = vsub.f32 %v1447_v50, %v1465_v38  ;;  %v1537_v46 = vadd.f32 %v1519_v53, %v1501_v47  ;;  %v1466_v26 = vmul.f32 %v5897_v13, %v1415_v16  ;;  %v1520_v36 = vmul.f32 %v5860_v5, %v1415_v16  ;;  %v1417_v33 = vpop.f32.mrb[63].mxu1  ;;  %7230 = vst [vmem:[#allocation46_spill] sm:$0xff] %v6082_v62 }
 0x281   :  { %7229 = vst [vmem:[#allocation45_spill] sm:$0xff] %v6079_v15  ;;  %7231 = vst [vmem:[#allocation47_spill] sm:$0xff] %v6084_v40  ;;  %v6086_v47 = vunpack.c.h.bf16 %v4353_v48  ;;  %v6088_v38 = vunpack.c.h.bf16 %v4361_v52  ;;  %v6093_v49 = vadd.f32 %v5422_v35, %v869_v59  ;;  %v7234_v59 = vld [vmem:[#allocation9_spill] sm:$0xff] }
 0x282   :  { %v1484_v34 = vsub.f32 %v1448_v8, %v1466_v26  ;;  %v1538_v50 = vadd.f32 %v1520_v36, %v1502_v32  ;;  %v7233_v8 = vld [vmem:[#allocation8_spill] sm:$0xff]  ;;  %v4354_v26 = vld [vmem:[%s7108_s7 + $0x40] sm:$0xff]  }
 0x283   :  { %7232 = vst [vmem:[#allocation48_spill] sm:$0xff] %v6088_v38  ;;  %v1449_v32 = vmul.f32 %v6082_v62, %v7233_v8  ;;  %v1503_v48 = vmul.f32 %v6084_v40, %v7233_v8  ;;  %v4362_v36 = vld [vmem:[%s7109_s8 + $0x40] sm:$0xff]   ;;  %v6119_v28 = vunpack.c.l.bf16 %v4354_v26  ;;  %v6123_v13 = vunpack.c.h.bf16 %v4354_v26 }
 0x284   :  { %v6095_v53 = vpack.c.bf16 %v1484_v34, %v1483_v11  ;;  %v6097_v21 = vpack.c.bf16 %v1538_v50, %v1537_v46  ;;  %v1450_v11 = vmul.f32 %v6086_v47, %v7234_v59  ;;  %v1504_v46 = vmul.f32 %v6088_v38, %v7234_v59 }
 0x285   :  { %v1420_v25 = vpop.f32.mrb[64].mxu1  ;;  %v6125_v5 = vunpack.c.h.bf16 %v4362_v36 }
 0x286   :  { %v1467_v52 = vmul.f32 %v6084_v40, %v1420_v25  ;;  %v1521_v16 = vmul.f32 %v6082_v62, %v1420_v25  ;;  %v1422_v35 = vpop.f32.mrb[65].mxu1  ;;  %v6121_v40 = vunpack.c.l.bf16 %v4362_v36 }
 0x287   :  { %v1423_v34 = vpop.f32.mrb[66].mxu1 }
 0x288   :  { %v1485_v50 = vsub.f32 %v1449_v32, %v1467_v52  ;;  %v1539_v8 = vadd.f32 %v1521_v16, %v1503_v48  ;;  %v1468_v25 = vmul.f32 %v6088_v38, %v1423_v34  ;;  %v1522_v35 = vmul.f32 %v6086_v47, %v1423_v34  ;;  %v1425_v33 = vpop.f32.mrb[67].mxu1  ;;  %7235 = vst [vmem:[#allocation8_spill] sm:$0xff] %v6121_v40  ;;  %v7236_v32 = vld [vmem:[#allocation23_spill] sm:$0xff] }
 0x289   :  { %v1451_v48 = vmul.f32 %v6119_v28, %v7236_v32  ;;  %v1505_v52 = vmul.f32 %v6121_v40, %v7236_v32 }
 0x28a   :  { %v1486_v59 = vsub.f32 %v1450_v11, %v1468_v25  ;;  %v1540_v62 = vadd.f32 %v1522_v35, %v1504_v46  ;;  %v7237_v11 = vld [vmem:[#allocation30_spill] sm:$0xff] }
 0x28b   :  { %v1452_v46 = vmul.f32 %v6123_v13, %v7237_v11  ;;  %v1506_v26 = vmul.f32 %v6125_v5, %v7237_v11 }
 0x28c   :  { %v1550_v44 = vpack.c.bf16 %v1486_v59, %v1485_v50  ;;  %v1559_v15 = vpack.c.bf16 %v1540_v62, %v1539_v8 }
 0x28d   :  { %v1428_v30 = vpop.f32.mrb[68].mxu1 }
 0x28e   :  { %v1469_v33 = vmul.f32 %v6121_v40, %v1428_v30  ;;  %v1523_v16 = vmul.f32 %v6119_v28, %v1428_v30  ;;  %v1430_v34 = vpop.f32.mrb[69].mxu1  ;;  %v5080_v30 = vld [vmem:[%s7107_s6 + $0x64] ss:$12 sps:$4 sm:$0xff]  }
 0x28f   :  { %v1431_v36 = vpop.f32.mrb[70].mxu1  ;;  %v7243_v34 = vld [vmem:[#allocation24_spill] sm:$0xff] }
 0x290   :  { %v1487_v62 = vsub.f32 %v1451_v48, %v1469_v33  ;;  %v1541_v50 = vadd.f32 %v1523_v16, %v1505_v52  ;;  %v1470_v8 = vmul.f32 %v6125_v5, %v1431_v36  ;;  %v1524_v25 = vmul.f32 %v6123_v13, %v1431_v36  ;;  %v1433_v35 = vpop.f32.mrb[71].mxu1  ;;  %v5083_v52 = vld [vmem:[%s7107_s6 + $0x60] ss:$12 sps:$4 sm:$0xff]   ;;  %v5084_v33 = vld [vmem:[%s7107_s6 + $0x50] ss:$12 sps:$4 sm:$0xff]  }
 0x291   :  { %v7242_v16 = vld [vmem:[#allocation31_spill] sm:$0xff]  ;;  %v7245_v36 = vpack.c.bf16 %v5858_v6, %v5848_v58  ;;  %v7248_v35 = vpack.c.bf16 %v5891_v10, %v5882_v29  ;;  %v5098_v29 = vld [vmem:[%s7107_s6 + $0xa8] ss:$12 sps:$4 sm:$0xff]  }
 0x292   :  { %v1488_v59 = vsub.f32 %v1452_v46, %v1470_v8  ;;  %v1542_v32 = vadd.f32 %v1524_v25, %v1506_v26  ;;  %v7244_v11 = vpack.c.bf16 %v7242_v16, %v7243_v34  ;;  %v5085_v46 = vld [vmem:[%s7107_s6 + $0x7c] ss:$12 sps:$4 sm:$0xff]   ;;  %v7246_v8 = vpack.c.bf16 %v5851_v51, %v5835_v43  ;;  %v5090_v58 = vld [vmem:[%s7107_s6 + $0x94] ss:$12 sps:$4 sm:$0xff]   ;;  %v5092_v6 = vld [vmem:[%s7107_s6 + $0x98] ss:$12 sps:$4 sm:$0xff]  }
 0x293   :  { %v5087_v26 = vld [vmem:[%s7107_s6 + $0x68] ss:$12 sps:$4 sm:$0xff]   ;;  %v7247_v25 = vpack.c.bf16 %v5894_v39, %v5885_v56  ;;  %v5093_v43 = vld [vmem:[%s7107_s6 + $0x90] ss:$12 sps:$4 sm:$0xff]   ;;  %v5095_v56 = vld [vmem:[%s7107_s6 + $0xac] ss:$12 sps:$4 sm:$0xff]  }
 0x294   :  { %v1551_v40 = vpack.c.bf16 %v1488_v59, %v1487_v62  ;;  %v1560_v38 = vpack.c.bf16 %v1542_v32, %v1541_v50  ;;  %v5088_v62 = vld [vmem:[%s7107_s6 + $0x78] ss:$12 sps:$4 sm:$0xff]   ;;  %v5089_v50 = vld [vmem:[%s7107_s6 + $0x80] ss:$12 sps:$4 sm:$0xff]   ;;  %v5094_v51 = vld [vmem:[%s7107_s6 + $0xb0] ss:$12 sps:$4 sm:$0xff]   ;;  %v7249_v59 = vpack.c.bf16 %v5937_v12, %v5924_v1  ;;  %v7250_v32 = vpack.c.bf16 %v5929_v45, %v5921_v20 }
 0x295   :  { %v5097_v39 = vld [vmem:[%s7107_s6 + $0xc8] ss:$12 sps:$4 sm:$0xff]   ;;  %v5099_v10 = vld [vmem:[%s7107_s6 + $0xe0] ss:$12 sps:$4 sm:$0xff]   ;;  %v5100_v1 = vld [vmem:[%s7107_s6 + $0xc4] ss:$12 sps:$4 sm:$0xff]  }
 0x296   :  { %4399 = vmatprep.subr.bf16.mxu0 %v1551_v40  ;;  %4947 = vmatprep.subr.bf16.mxu1 %v1551_v40  ;;  %v5065_v40 = vld [vmem:[%s7107_s6 + $0x154] ss:$12 sps:$4 sm:$0xff]   ;;  %v5102_v12 = vld [vmem:[%s7107_s6 + $0xf8] ss:$12 sps:$4 sm:$0xff]   ;;  %v5104_v20 = vld [vmem:[%s7107_s6 + $0x110] ss:$12 sps:$4 sm:$0xff]  }
 0x297   :  { %4400 = vmatpush3.bf16.msra.mxu0 %v5866_v24  ;;  %4955 = vmatpush3.bf16.msra.mxu1 %v5866_v24  ;;  %v5068_v24 = vld [vmem:[%s7107_s6 + $0x150] ss:$12 sps:$4 sm:$0xff]   ;;  %v5103_v45 = vld [vmem:[%s7107_s6 + $0xc0] ss:$12 sps:$4 sm:$0xff]  }
 0x298   :  { %4401 = vmatprep.subr.bf16.mxu0 %v5868_v4  ;;  %4948 = vmatprep.subr.bf16.mxu1 %v5868_v4  ;;  %v5069_v4 = vld [vmem:[%s7107_s6 + $0x34] ss:$12 sps:$4 sm:$0xff]   ;;  %v5180_v16 = vld [vmem:[%s7105_s4 + $0x28] sm:$0xff]  }
 0x299   :  { %v5181_v34 = vld [vmem:[%s7105_s4 + $0x30] sm:$0xff]  }
 0x29b   :  { %4402 = vmatpush3.bf16.msra.mxu0 %v5903_v54  ;;  %4956 = vmatpush3.bf16.msra.mxu1 %v5903_v54  ;;  %v5071_v54 = vld [vmem:[%s7107_s6 + $0x16c] ss:$12 sps:$4 sm:$0xff]  }
 0x29c   :  { %4403 = vmatprep.subr.bf16.mxu0 %v5905_v7  ;;  %4949 = vmatprep.subr.bf16.mxu1 %v5905_v7  ;;  %v7238_v7 = vmov 0  }
 0x29f   :  { %4404 = vmatpush3.bf16.msra.mxu0 %v5939_v19  ;;  %4957 = vmatpush3.bf16.msra.mxu1 %v5939_v19  ;;  %v5057_v19 = vld [vmem:[%s7107_s6] ss:$12 sps:$4 sm:$0xff]  }
 0x2a0   :  { %4405 = vmatprep.subr.bf16.mxu0 %v5941_v0  ;;  %4950 = vmatprep.subr.bf16.mxu1 %v5941_v0  ;;  %v5073_v0 = vld [vmem:[%s7107_s6 + $0x30] ss:$12 sps:$4 sm:$0xff]  }
 0x2a3   :  { %4406 = vmatpush3.bf16.msra.mxu0 %v5975_v41  ;;  %4958 = vmatpush3.bf16.msra.mxu1 %v5975_v41  ;;  %v5060_v41 = vld [vmem:[%s7107_s6 + $0x138] ss:$12 sps:$4 sm:$0xff]  }
 0x2a4   :  { %4407 = vmatprep.subr.bf16.mxu0 %v5977_v14  ;;  %4951 = vmatprep.subr.bf16.mxu1 %v5977_v14  ;;  %v5074_v14 = vld [vmem:[%s7107_s6 + $0x168] ss:$12 sps:$4 sm:$0xff]  }
 0x2a7   :  { %4408 = vmatpush3.bf16.msra.mxu0 %v6011_v63  ;;  %4959 = vmatpush3.bf16.msra.mxu1 %v6011_v63  ;;  %v5063_v63 = vld [vmem:[%s7107_s6 + $0x1c] ss:$12 sps:$4 sm:$0xff]  }
 0x2a8   :  { %4409 = vmatprep.subr.bf16.mxu0 %v6013_v18  ;;  %4952 = vmatprep.subr.bf16.mxu1 %v6013_v18  ;;  %v5075_v18 = vld [vmem:[%s7107_s6 + $0x4c] ss:$12 sps:$4 sm:$0xff]  }
 0x2ab   :  { %4410 = vmatpush3.bf16.msra.mxu0 %v6047_v57  ;;  %4960 = vmatpush3.bf16.msra.mxu1 %v6047_v57  ;;  %v5067_v57 = vld [vmem:[%s7107_s6 + $0x18] ss:$12 sps:$4 sm:$0xff]  }
 0x2ac   :  { %4411 = vmatprep.subr.bf16.mxu0 %v6049_v23  ;;  %4953 = vmatprep.subr.bf16.mxu1 %v6049_v23  ;;  %v5077_v23 = vld [vmem:[%s7107_s6 + $0x8] ss:$12 sps:$4 sm:$0xff]  }
 0x2af   :  { %4412 = vmatpush3.bf16.msra.mxu0 %v6095_v53  ;;  %4961 = vmatpush3.bf16.msra.mxu1 %v6095_v53  ;;  %v7239_v53 = vld [vmem:[#allocation34_spill] sm:$0xff] }
 0x2b0   :  { %4413 = vmatprep.subr.bf16.mxu0 %v6097_v21  ;;  %4954 = vmatprep.subr.bf16.mxu1 %v6097_v21  ;;  %v7240_v21 = vld [vmem:[#allocation27_spill] sm:$0xff] }
 0x2b1   :  { %v7241_v48 = vpack.c.bf16 %v7239_v53, %v7240_v21  ;;  %v5127_v53 = vld [vmem:[%s7106_s5 + $0x24] ss:$8 sps:$4 sm:$0xff]   ;;  %v5178_v21 = vld [vmem:[%s7105_s4 + $0x18] sm:$0xff]  }
 0x2b3   :  { %4414 = vmatpush3.bf16.msra.mxu0 %v1550_v44  ;;  %4962 = vmatpush3.bf16.msra.mxu1 %v1550_v44  ;;  %v5079_v44 = vld [vmem:[%s7107_s6 + $0x20] ss:$12 sps:$4 sm:$0xff]  }
 0x2b4   :  { %4779 = vmatprep.subr.bf16.mxu1 %v1559_v15 }
 0x2b6   :  { %1947 = vmatmul.mubr.bf16.vlgmr.msra.gmra.mrb[64].mxu0 %v5057_v19  ;;  %2051 = vmatmul.mubr.bf16.vlgmr.msra.gmra.mrb[72].mxu1 %v5060_v41  ;;  %v7251_v19 = vpack.c.bf16 %v5973_v17, %v5960_v60  ;;  %v7252_v41 = vpack.c.bf16 %v5965_v2, %v5957_v55  ;;  %v5105_v60 = vld [vmem:[%s7107_s6 + $0xdc] ss:$12 sps:$4 sm:$0xff]   ;;  %v5108_v2 = vld [vmem:[%s7107_s6 + $0xd8] ss:$12 sps:$4 sm:$0xff]   ;;  %v5109_v55 = vld [vmem:[%s7107_s6 + $0x140] ss:$12 sps:$4 sm:$0xff]  }
 0x2b7   :  { %4780 = vmatpush3.bf16.msra.mxu1 %v1559_v15  ;;  %1954 = vmatprep.mubr.bf16.mxu0 %v5063_v63  ;;  %v5078_v15 = vld [vmem:[%s7107_s6 + $0x48] ss:$12 sps:$4 sm:$0xff]   ;;  %v7253_v63 = vpack.c.bf16 %v6009_v37, %v5996_v9  ;;  %v5112_v37 = vld [vmem:[%s7107_s6 + $0x158] ss:$12 sps:$4 sm:$0xff]  }
 0x2b8   :  { %4781 = vmatprep.subr.bf16.mxu1 %v1560_v38  ;;  %2058 = vmatprep.mubr.bf16.mxu1 %v5065_v40  ;;  %v5107_v17 = vld [vmem:[%s7107_s6 + $0x128] ss:$12 sps:$4 sm:$0xff]   ;;  %v7254_v40 = vpack.c.bf16 %v6001_v22, %v5993_v27  ;;  %v5113_v22 = vld [vmem:[%s7107_s6 + $0xf0] ss:$12 sps:$4 sm:$0xff]  }
 0x2b9   :  { %v5110_v9 = vld [vmem:[%s7107_s6 + $0xf4] ss:$12 sps:$4 sm:$0xff]   ;;  %v5114_v27 = vld [vmem:[%s7107_s6 + $0x170] ss:$12 sps:$4 sm:$0xff]  }
 0x2bb   :  { %4782 = vmatpush3.bf16.msra.mxu1 %v1560_v38  ;;  %v5082_v38 = vld [vmem:[%s7107_s6 + $0x38] ss:$12 sps:$4 sm:$0xff]  }
 0x2bc   :  { %2725 = vmatprep.subr.bf16.mxu1 %v7238_v7 }
 0x2be   :  { %1955 = vmatmul.mubr.bf16.gmra.mrb[68].mxu0 %v5067_v57  ;;  %2059 = vmatmul.mubr.bf16.gmra.mrb[76].mxu1 %v5068_v24  ;;  %v7255_v57 = vpack.c.bf16 %v6045_v61, %v6032_v31  ;;  %v7256_v24 = vpack.c.bf16 %v6037_v42, %v6029_v3  ;;  %v5115_v31 = vld [vmem:[%s7107_s6 + $0x10c] ss:$12 sps:$4 sm:$0xff]   ;;  %v5175_v42 = vld [vmem:[%s7105_s4] sm:$0xff]  }
 0x2bf   :  { %1962 = vmatprep.mubr.bf16.mxu0 %v5069_v4  ;;  %2066 = vmatprep.mubr.bf16.mxu1 %v5071_v54  ;;  %v5119_v61 = vld [vmem:[%s7106_s5 + $0x4] ss:$8 sps:$4 sm:$0xff]   ;;  %v5117_v3 = vld [vmem:[%s7106_s5] ss:$8 sps:$4 sm:$0xff]  }
 0x2c0   :  { %v7257_v4 = vld [vmem:[#allocation44_spill] sm:$0xff]  ;;  %4815 = vmatprep.subr.bf16.mxu0 %v5175_v42 }
 0x2c1   :  { %v7258_v54 = vpack.c.bf16 %v6093_v49, %v7257_v4  ;;  %4816 = vmatpush3.bf16.msra.mxu0 %v5175_v42 }
 0x2c6   :  { %1963 = vmatmul.mubr.bf16.gmra.mrb[72].mxu0 %v5073_v0  ;;  %2067 = vmatmul.mubr.bf16.gmra.mrb[80].mxu1 %v5074_v14  ;;  %v5120_v0 = vld [vmem:[%s7107_s6 + $0x108] ss:$12 sps:$4 sm:$0xff]  }
 0x2c7   :  { %1970 = vmatprep.mubr.bf16.mxu0 %v5075_v18  ;;  %4783 = vmatprep.mubr.msk.bf16.mxu1 %vm1865_vm1, %v5077_v23  ;;  %v7259_v14 = vld [vmem:[#allocation45_spill] sm:$0xff]  ;;  %v7260_v18 = vld [vmem:[#allocation7_spill] sm:$0xff] }
 0x2c8   :  { %v7261_v49 = vpack.c.bf16 %v7259_v14, %v7260_v18  ;;  %v5123_v23 = vld [vmem:[%s7106_s5 + $0x14] ss:$8 sps:$4 sm:$0xff]  }
 0x2ce   :  { %1971 = vmatmul.mubr.bf16.gmra.mrb[76].mxu0 %v5078_v15  ;;  %4784 = vmatmul.mubr.msk.bf16.vlgmr.msra.gmra.mrb[84].mxu1 %vm1865_vm1, %v5079_v44  ;;  %v5176_v15 = vld [vmem:[%s7105_s4 + $0x8] sm:$0xff]   ;;  %v5177_v44 = vld [vmem:[%s7105_s4 + $0x10] sm:$0xff]  }
 0x2cf   :  { %2726 = vmatpush1.bf16.msra.mxu1 %v7241_v48  ;;  %1978 = vmatprep.mubr.bf16.mxu0 %v5080_v30  ;;  %v5125_v30 = vld [vmem:[%s7107_s6 + $0x120] ss:$12 sps:$4 sm:$0xff]  }
 0x2d0   :  { %2727 = vmatprep.subr.bf16.mxu1 %v7238_v7  ;;  %4787 = vmatprep.mubr.msk.bf16.mxu1 %vm1865_vm1, %v5082_v38  ;;  %v5126_v38 = vld [vmem:[%s7106_s5 + $0x10] ss:$8 sps:$4 sm:$0xff]   ;;  %v5179_v48 = vld [vmem:[%s7105_s4 + $0x20] sm:$0xff]  }
 0x2d1   :  { %4817 = vmatprep.subr.bf16.mxu0 %v5176_v15 }
 0x2d2   :  { %4818 = vmatpush3.bf16.msra.mxu0 %v5176_v15 }
 0x2d3   :  { %2728 = vmatpush1.bf16.msra.mxu1 %v7244_v11  ;;  %4819 = vmatprep.subr.bf16.mxu0 %v5177_v44  ;;  %v5132_v11 = vld [vmem:[%s7106_s5 + $0x30] ss:$8 sps:$4 sm:$0xff]  }
 0x2d4   :  { %2729 = vmatprep.subr.bf16.mxu1 %v7238_v7 }
 0x2d6   :  { %1979 = vmatmul.mubr.bf16.gmra.mrb[80].mxu0 %v5083_v52  ;;  %4788 = vmatmul.mubr.msk.bf16.gmra.mrb[88].mxu1 %vm1865_vm1, %v5084_v33  ;;  %v5129_v52 = vld [vmem:[%s7106_s5 + $0x20] ss:$8 sps:$4 sm:$0xff]   ;;  %v5130_v33 = vld [vmem:[%s7106_s5 + $0x34] ss:$8 sps:$4 sm:$0xff]  }
 0x2d7   :  { %2730 = vmatpush1.bf16.msra.mxu1 %v7245_v36  ;;  %1986 = vmatprep.mubr.bf16.mxu0 %v5085_v46  ;;  %v5133_v46 = vld [vmem:[%s7106_s5 + $0x44] ss:$8 sps:$4 sm:$0xff]   ;;  %v5135_v36 = vld [vmem:[%s7106_s5 + $0x40] ss:$8 sps:$4 sm:$0xff]  }
 0x2d8   :  { %2731 = vmatprep.subr.bf16.mxu1 %v7238_v7  ;;  %4791 = vmatprep.mubr.msk.bf16.mxu1 %vm1865_vm1, %v5087_v26  ;;  %v5182_v26 = vld [vmem:[%s7105_s4 + $0x38] sm:$0xff]  }
 0x2d9   :  { %4820 = vmatpush3.bf16.msra.mxu0 %v5177_v44 }
 0x2da   :  { %4821 = vmatprep.subr.bf16.mxu0 %v5178_v21 }
 0x2db   :  { %2732 = vmatpush1.bf16.msra.mxu1 %v7246_v8  ;;  %v5139_v8 = vld [vmem:[%s7106_s5 + $0x64] ss:$8 sps:$4 sm:$0xff]  }
 0x2dc   :  { %2733 = vmatprep.subr.bf16.mxu1 %v7238_v7 }
 0x2dd   :  { %4822 = vmatpush3.bf16.msra.mxu0 %v5178_v21 }
 0x2de   :  { %1987 = vmatmul.mubr.bf16.gmra.mrb[84].mxu0 %v5088_v62  ;;  %4792 = vmatmul.mubr.msk.bf16.gmra.mrb[92].mxu1 %vm1865_vm1, %v5089_v50  ;;  %v5136_v62 = vld [vmem:[%s7106_s5 + $0x54] ss:$8 sps:$4 sm:$0xff]   ;;  %v5138_v50 = vld [vmem:[%s7106_s5 + $0x50] ss:$8 sps:$4 sm:$0xff]  }
 0x2df   :  { %2734 = vmatpush1.bf16.msra.mxu1 %v7247_v25  ;;  %1994 = vmatprep.mubr.bf16.mxu0 %v5090_v58  ;;  %v5141_v58 = vld [vmem:[%s7106_s5 + $0x60] ss:$8 sps:$4 sm:$0xff]   ;;  %v5144_v25 = vld [vmem:[%s7106_s5 + $0x70] ss:$8 sps:$4 sm:$0xff]  }
 0x2e0   :  { %2735 = vmatprep.subr.bf16.mxu1 %v7238_v7  ;;  %4795 = vmatprep.mubr.msk.bf16.mxu1 %vm1865_vm1, %v5092_v6  ;;  %v5142_v6 = vld [vmem:[%s7106_s5 + $0x74] ss:$8 sps:$4 sm:$0xff]  }
 0x2e1   :  { %4823 = vmatprep.subr.bf16.mxu0 %v5179_v48 }
 0x2e2   :  { %4824 = vmatpush3.bf16.msra.mxu0 %v5179_v48 }
 0x2e3   :  { %2736 = vmatpush1.bf16.msra.mxu1 %v7248_v35  ;;  %4825 = vmatprep.subr.bf16.mxu0 %v5180_v16  ;;  %v5148_v35 = vld [vmem:[%s7106_s5 + $0x94] ss:$8 sps:$4 sm:$0xff]  }
 0x2e4   :  { %2737 = vmatprep.subr.bf16.mxu1 %v7238_v7 }
 0x2e6   :  { %1995 = vmatmul.mubr.bf16.gmra.mrb[88].mxu0 %v5093_v43  ;;  %4796 = vmatmul.mubr.msk.bf16.gmra.mrb[96].mxu1 %vm1865_vm1, %v5094_v51  ;;  %v5145_v43 = vld [vmem:[%s7106_s5 + $0x84] ss:$8 sps:$4 sm:$0xff]   ;;  %v5147_v51 = vld [vmem:[%s7106_s5 + $0x80] ss:$8 sps:$4 sm:$0xff]  }
 0x2e7   :  { %2738 = vmatpush1.bf16.msra.mxu1 %v7249_v59  ;;  %2002 = vmatprep.mubr.bf16.mxu0 %v5095_v56  ;;  %v5150_v56 = vld [vmem:[%s7106_s5 + $0x90] ss:$8 sps:$4 sm:$0xff]   ;;  %v5153_v59 = vld [vmem:[%s7106_s5 + $0xa0] ss:$8 sps:$4 sm:$0xff]  }
 0x2e8   :  { %2739 = vmatprep.subr.bf16.mxu1 %v7238_v7  ;;  %4799 = vmatprep.mubr.msk.bf16.mxu1 %vm1865_vm1, %v5097_v39  ;;  %v5151_v39 = vld [vmem:[%s7106_s5 + $0xa4] ss:$8 sps:$4 sm:$0xff]  }
 0x2e9   :  { %4826 = vmatpush3.bf16.msra.mxu0 %v5180_v16 }
 0x2ea   :  { %4827 = vmatprep.subr.bf16.mxu0 %v5181_v34 }
 0x2eb   :  { %2740 = vmatpush1.bf16.msra.mxu1 %v7250_v32  ;;  %v5157_v32 = vld [vmem:[%s7106_s5 + $0xc4] ss:$8 sps:$4 sm:$0xff]  }
 0x2ec   :  { %2741 = vmatprep.subr.bf16.mxu1 %v7238_v7 }
 0x2ed   :  { %4828 = vmatpush3.bf16.msra.mxu0 %v5181_v34 }
 0x2ee   :  { %2003 = vmatmul.mubr.bf16.gmra.mrb[92].mxu0 %v5098_v29  ;;  %4800 = vmatmul.mubr.msk.bf16.gmra.mrb[100].mxu1 %vm1865_vm1, %v5099_v10  ;;  %v5154_v29 = vld [vmem:[%s7106_s5 + $0xb4] ss:$8 sps:$4 sm:$0xff]   ;;  %v5156_v10 = vld [vmem:[%s7106_s5 + $0xb0] ss:$8 sps:$4 sm:$0xff]  }
 0x2ef   :  { %2742 = vmatpush1.bf16.msra.mxu1 %v7251_v19  ;;  %2010 = vmatprep.mubr.bf16.mxu0 %v5100_v1  ;;  %v5159_v1 = vld [vmem:[%s7106_s5 + $0xc0] ss:$8 sps:$4 sm:$0xff]   ;;  %v5162_v19 = vld [vmem:[%s7106_s5 + $0xd0] ss:$8 sps:$4 sm:$0xff]  }
 0x2f0   :  { %2743 = vmatprep.subr.bf16.mxu1 %v7238_v7  ;;  %4803 = vmatprep.mubr.msk.bf16.mxu1 %vm1865_vm1, %v5102_v12  ;;  %v5160_v12 = vld [vmem:[%s7106_s5 + $0xd4] ss:$8 sps:$4 sm:$0xff]  }
 0x2f1   :  { %4829 = vmatprep.subr.bf16.mxu0 %v5182_v26 }
 0x2f2   :  { %4830 = vmatpush3.bf16.msra.mxu0 %v5182_v26 }
 0x2f3   :  { %2744 = vmatpush1.bf16.msra.mxu1 %v7252_v41  ;;  %v5166_v41 = vld [vmem:[%s7106_s5 + $0xf4] ss:$8 sps:$4 sm:$0xff]  }
 0x2f4   :  { %2745 = vmatprep.subr.bf16.mxu1 %v7238_v7 }
 0x2f6   :  { %2011 = vmatmul.mubr.bf16.gmra.mrb[96].mxu0 %v5103_v45  ;;  %4804 = vmatmul.mubr.msk.bf16.gmra.mrb[104].mxu1 %vm1865_vm1, %v5104_v20  ;;  %v5163_v45 = vld [vmem:[%s7106_s5 + $0xe4] ss:$8 sps:$4 sm:$0xff]   ;;  %v5165_v20 = vld [vmem:[%s7106_s5 + $0xe0] ss:$8 sps:$4 sm:$0xff]  }
 0x2f7   :  { %2746 = vmatpush1.bf16.msra.mxu1 %v7253_v63  ;;  %2018 = vmatprep.mubr.bf16.mxu0 %v5105_v60  ;;  %v5168_v60 = vld [vmem:[%s7106_s5 + $0xf0] ss:$8 sps:$4 sm:$0xff]  }
 0x2f8   :  { %2747 = vmatprep.subr.bf16.mxu1 %v7238_v7  ;;  %4807 = vmatprep.mubr.msk.bf16.mxu1 %vm1865_vm1, %v5107_v17  ;;  %v5169_v17 = vld [vmem:[%s7106_s5 + $0x104] ss:$8 sps:$4 sm:$0xff]  }
 0x2fb   :  { %2748 = vmatpush1.bf16.msra.mxu1 %v7254_v40 }
 0x2fc   :  { %2749 = vmatprep.subr.bf16.mxu1 %v7238_v7 }
 0x2fe   :  { %2019 = vmatmul.mubr.bf16.gmra.mrb[100].mxu0 %v5108_v2  ;;  %4808 = vmatmul.mubr.msk.bf16.gmra.mrb[108].mxu1 %vm1865_vm1, %v5109_v55  ;;  %v5171_v55 = vld [vmem:[%s7106_s5 + $0x100] ss:$8 sps:$4 sm:$0xff]  }
 0x2ff   :  { %2750 = vmatpush1.bf16.msra.mxu1 %v7255_v57  ;;  %2026 = vmatprep.mubr.bf16.mxu0 %v5110_v9 }
 0x300   :  { %2751 = vmatprep.subr.bf16.mxu1 %v7238_v7  ;;  %4811 = vmatprep.mubr.msk.bf16.mxu1 %vm1865_vm1, %v5112_v37  ;;  %v5172_v37 = vld [vmem:[%s7106_s5 + $0x114] ss:$8 sps:$4 sm:$0xff]  }
 0x303   :  { %2752 = vmatpush1.bf16.msra.mxu1 %v7256_v24 }
 0x304   :  { %2753 = vmatprep.subr.bf16.mxu1 %v7238_v7 }
 0x306   :  { %2027 = vmatmul.mubr.bf16.gmra.mrb[104].mxu0 %v5113_v22  ;;  %4812 = vmatmul.mubr.msk.bf16.gmra.mrb[112].mxu1 %vm1865_vm1, %v5114_v27 }
 0x307   :  { %2754 = vmatpush1.bf16.msra.mxu1 %v7258_v54  ;;  %2034 = vmatprep.mubr.bf16.mxu0 %v5115_v31 }
 0x308   :  { %2755 = vmatprep.subr.bf16.mxu1 %v7238_v7  ;;  %2757 = vmatprep.mubr.bf16.mxu1 %v5119_v61  ;;  %v5121_v7 = vld [vmem:[%s7107_s6 + $0x124] ss:$12 sps:$4 sm:$0xff]  }
 0x30b   :  { %2756 = vmatpush1.bf16.msra.mxu1 %v7261_v49 }
 0x30e   :  { %2035 = vmatmul.mubr.bf16.gmra.mrb[108].mxu0 %v5120_v0  ;;  %2758 = vmatmul.mubr.bf16.vlgmr.msra.gmra.mrb[116].mxu1 %v5117_v3  ;;  %v5174_v0 = vld [vmem:[%s7106_s5 + $0x110] ss:$8 sps:$4 sm:$0xff]  }
 0x30f   :  { %2042 = vmatprep.mubr.bf16.mxu0 %v5121_v7  ;;  %2765 = vmatprep.mubr.bf16.mxu1 %v5123_v23 }
 0x316   :  { %2043 = vmatmul.mubr.bf16.gmra.mrb[112].mxu0 %v5125_v30  ;;  %2766 = vmatmul.mubr.bf16.gmra.mrb[120].mxu1 %v5126_v38 }
 0x317   :  { %2773 = vmatprep.mubr.bf16.mxu1 %v5127_v53 }
 0x31e   :  { %2774 = vmatmul.mubr.bf16.gmra.mrb[124].mxu1 %v5129_v52 }
 0x31f   :  { %2781 = vmatprep.mubr.bf16.mxu1 %v5130_v33 }
 0x326   :  { %2782 = vmatmul.mubr.bf16.gmra.mrb[128].mxu1 %v5132_v11 }
 0x327   :  { %2789 = vmatprep.mubr.bf16.mxu1 %v5133_v46 }
 0x32e   :  { %2790 = vmatmul.mubr.bf16.gmra.mrb[132].mxu1 %v5135_v36 }
 0x32f   :  { %2797 = vmatprep.mubr.bf16.mxu1 %v5136_v62 }
 0x336   :  { %2798 = vmatmul.mubr.bf16.gmra.mrb[136].mxu1 %v5138_v50 }
 0x337   :  { %2805 = vmatprep.mubr.bf16.mxu1 %v5139_v8 }
 0x33e   :  { %2806 = vmatmul.mubr.bf16.gmra.mrb[140].mxu1 %v5141_v58 }
 0x33f   :  { %2813 = vmatprep.mubr.bf16.mxu1 %v5142_v6 }
 0x346   :  { %2814 = vmatmul.mubr.bf16.gmra.mrb[144].mxu1 %v5144_v25 }
 0x347   :  { %2821 = vmatprep.mubr.bf16.mxu1 %v5145_v43 }
 0x34e   :  { %2822 = vmatmul.mubr.bf16.gmra.mrb[148].mxu1 %v5147_v51 }
 0x34f   :  { %2829 = vmatprep.mubr.bf16.mxu1 %v5148_v35 }
 0x356   :  { %2830 = vmatmul.mubr.bf16.gmra.mrb[152].mxu1 %v5150_v56 }
 0x357   :  { %2837 = vmatprep.mubr.bf16.mxu1 %v5151_v39 }
 0x35e   :  { %2838 = vmatmul.mubr.bf16.gmra.mrb[156].mxu1 %v5153_v59 }
 0x35f   :  { %2845 = vmatprep.mubr.bf16.mxu1 %v5154_v29 }
 0x366   :  { %2846 = vmatmul.mubr.bf16.gmra.mrb[160].mxu1 %v5156_v10 }
 0x367   :  { %2853 = vmatprep.mubr.bf16.mxu1 %v5157_v32 }
 0x36e   :  { %2854 = vmatmul.mubr.bf16.gmra.mrb[164].mxu1 %v5159_v1 }
 0x36f   :  { %2861 = vmatprep.mubr.bf16.mxu1 %v5160_v12 }
 0x376   :  { %2862 = vmatmul.mubr.bf16.gmra.mrb[168].mxu1 %v5162_v19 }
 0x377   :  { %2869 = vmatprep.mubr.bf16.mxu1 %v5163_v45 }
 0x37e   :  { %2870 = vmatmul.mubr.bf16.gmra.mrb[172].mxu1 %v5165_v20 }
 0x37f   :  { %2877 = vmatprep.mubr.bf16.mxu1 %v5166_v41 }
 0x386   :  { %2878 = vmatmul.mubr.bf16.gmra.mrb[176].mxu1 %v5168_v60 }
 0x387   :  { %2885 = vmatprep.mubr.bf16.mxu1 %v5169_v17 }
 0x389   :  { %v4493_v63 = vpop.f32.mrb[72].mxu1  ;;  %v4415_v2 = vpop.f32.mrb[64].mxu0 }
 0x38a   :  { %v4494_v40 = vpop.f32.mrb[73].mxu1  ;;  %v4416_v9 = vpop.f32.mrb[65].mxu0 }
 0x38b   :  { %v6514_v57 = vadd.f32 %v4494_v40, %v4493_v63  ;;  %v4496_v22 = vpop.f32.mrb[74].mxu1  ;;  %v4417_v27 = vadd.f32 %v4416_v9, %v4415_v2  ;;  %v4418_v24 = vpop.f32.mrb[66].mxu0 }
 0x38c   :  { %v4497_v31 = vpop.f32.mrb[75].mxu1  ;;  %v4419_v61 = vpop.f32.mrb[67].mxu0 }
 0x38d   :  { %v6516_v4 = vadd.f32 %v4497_v31, %v4496_v22  ;;  %v4420_v54 = vadd.f32 %v4419_v61, %v4418_v24 }
 0x38e   :  { %2886 = vmatmul.mubr.bf16.gmra.mrb[180].mxu1 %v5171_v55 }
 0x38f   :  { %2893 = vmatprep.mubr.bf16.mxu1 %v5172_v37 }
 0x391   :  { %v4499_v42 = vpop.f32.mrb[76].mxu1  ;;  %v4421_v3 = vpop.f32.mrb[68].mxu0 }
 0x392   :  { %v4500_v14 = vpop.f32.mrb[77].mxu1  ;;  %v4422_v18 = vpop.f32.mrb[69].mxu0 }
 0x393   :  { %v6521_v49 = vadd.f32 %v4500_v14, %v4499_v42  ;;  %v4502_v7 = vpop.f32.mrb[78].mxu1  ;;  %v4423_v23 = vadd.f32 %v4422_v18, %v4421_v3  ;;  %v4424_v15 = vpop.f32.mrb[70].mxu0 }
 0x394   :  { %v4503_v44 = vpop.f32.mrb[79].mxu1  ;;  %v4425_v30 = vpop.f32.mrb[71].mxu0 }
 0x395   :  { %v6523_v38 = vadd.f32 %v4503_v44, %v4502_v7  ;;  %v4426_v53 = vadd.f32 %v4425_v30, %v4424_v15 }
 0x396   :  { %2894 = vmatmul.mubr.bf16.gmra.mrb[184].mxu1 %v5174_v0 }
 0x399   :  { %v4505_v21 = vpop.f32.mrb[80].mxu1  ;;  %v4427_v48 = vpop.f32.mrb[72].mxu0 }
 0x39a   :  { %v4506_v52 = vpop.f32.mrb[81].mxu1  ;;  %v4428_v33 = vpop.f32.mrb[73].mxu0 }
 0x39b   :  { %v6525_v16 = vadd.f32 %v4506_v52, %v4505_v21  ;;  %v4508_v34 = vpop.f32.mrb[82].mxu1  ;;  %v4429_v11 = vadd.f32 %v4428_v33, %v4427_v48  ;;  %v4430_v46 = vpop.f32.mrb[74].mxu0 }
 0x39c   :  { %v4509_v26 = vpop.f32.mrb[83].mxu1  ;;  %v4431_v36 = vpop.f32.mrb[75].mxu0 }
 0x39d   :  { %v6527_v62 = vadd.f32 %v4509_v26, %v4508_v34  ;;  %v4432_v50 = vadd.f32 %v4431_v36, %v4430_v46 }
 0x3a1   :  { %v4785_v8 = vpop.f32.mrb[84].mxu1  ;;  %v4433_v58 = vpop.f32.mrb[76].mxu0 }
 0x3a2   :  { %v2118_v6 = vadd.f32 %v4785_v8, %v4423_v23  ;;  %v2109_v25 = vpop.f32.mrb[85].mxu1  ;;  %v4434_v43 = vpop.f32.mrb[77].mxu0 }
 0x3a3   :  { %v2110_v51 = vadd.f32 %v4417_v27, %v2109_v25  ;;  %v4786_v35 = vpop.f32.mrb[86].mxu1  ;;  %v4435_v56 = vadd.f32 %v4434_v43, %v4433_v58  ;;  %v4436_v39 = vpop.f32.mrb[78].mxu0 }
 0x3a4   :  { %v2121_v59 = vadd.f32 %v4786_v35, %v4426_v53  ;;  %v2112_v29 = vpop.f32.mrb[87].mxu1  ;;  %v4437_v10 = vpop.f32.mrb[79].mxu0 }
 0x3a5   :  { %v2113_v32 = vadd.f32 %v4420_v54, %v2112_v29  ;;  %v4438_v1 = vadd.f32 %v4437_v10, %v4436_v39 }
 0x3a6   :  { %v2237_v12 = vpack.c.bf16 %v2121_v59, %v2118_v6 }
 0x3a7   :  { %v2236_v19 = vpack.c.bf16 %v2113_v32, %v2110_v51 }
 0x3a9   :  { %v4789_v45 = vpop.f32.mrb[88].mxu1  ;;  %4831 = vmatprep.mubr.bf16.mxu0 %v2236_v19  ;;  %v4439_v20 = vpop.f32.mrb[80].mxu0 }
 0x3aa   :  { %v2125_v41 = vpop.f32.mrb[89].mxu1  ;;  %v2134_v60 = vadd.f32 %v4789_v45, %v4435_v56  ;;  %4832 = vmatmul.mubr.bf16.vlgmr.msra.gmra.mrb[116].mxu0 %v2237_v12  ;;  %v4440_v17 = vpop.f32.mrb[81].mxu0 }
 0x3ab   :  { %v2126_v63 = vadd.f32 %v4429_v11, %v2125_v41  ;;  %v4790_v2 = vpop.f32.mrb[90].mxu1  ;;  %v4441_v55 = vadd.f32 %v4440_v17, %v4439_v20  ;;  %v4442_v40 = vpop.f32.mrb[82].mxu0 }
 0x3ac   :  { %v2128_v9 = vpop.f32.mrb[91].mxu1  ;;  %v2137_v37 = vadd.f32 %v4790_v2, %v4438_v1  ;;  %v4443_v22 = vpop.f32.mrb[83].mxu0 }
 0x3ad   :  { %v2129_v27 = vadd.f32 %v4432_v50, %v2128_v9  ;;  %v4444_v24 = vadd.f32 %v4443_v22, %v4442_v40 }
 0x3ae   :  { %v2239_v31 = vpack.c.bf16 %v2137_v37, %v2134_v60 }
 0x3af   :  { %v2238_v61 = vpack.c.bf16 %v2129_v27, %v2126_v63 }
 0x3b1   :  { %v4793_v54 = vpop.f32.mrb[92].mxu1  ;;  %v4445_v42 = vpop.f32.mrb[84].mxu0  ;;  %4835 = vmatprep.mubr.bf16.mxu0 %v2238_v61 }
 0x3b2   :  { %v2141_v3 = vpop.f32.mrb[93].mxu1  ;;  %v4446_v0 = vpop.f32.mrb[85].mxu0  ;;  %4836 = vmatmul.mubr.bf16.gmra.mrb[120].mxu0 %v2239_v31 }
 0x3b3   :  { %v4794_v14 = vpop.f32.mrb[94].mxu1  ;;  %v2142_v18 = vadd.f32 %v4441_v55, %v2141_v3  ;;  %v4447_v7 = vadd.f32 %v4446_v0, %v4445_v42  ;;  %v4448_v23 = vpop.f32.mrb[86].mxu0 }
 0x3b4   :  { %v2144_v15 = vpop.f32.mrb[95].mxu1  ;;  %v4449_v44 = vpop.f32.mrb[87].mxu0 }
 0x3b5   :  { %v2145_v30 = vadd.f32 %v4444_v24, %v2144_v15  ;;  %v2150_v53 = vadd.f32 %v4793_v54, %v4447_v7  ;;  %v4450_v21 = vadd.f32 %v4449_v44, %v4448_v23 }
 0x3b7   :  { %v2153_v48 = vadd.f32 %v4794_v14, %v4450_v21  ;;  %v2240_v52 = vpack.c.bf16 %v2145_v30, %v2142_v18 }
 0x3b9   :  { %v4797_v33 = vpop.f32.mrb[96].mxu1  ;;  %v4451_v34 = vpop.f32.mrb[88].mxu0  ;;  %4839 = vmatprep.mubr.bf16.mxu0 %v2240_v52  ;;  %v2241_v11 = vpack.c.bf16 %v2153_v48, %v2150_v53 }
 0x3ba   :  { %v2157_v46 = vpop.f32.mrb[97].mxu1  ;;  %v4452_v26 = vpop.f32.mrb[89].mxu0 }
 0x3bb   :  { %v4798_v36 = vpop.f32.mrb[98].mxu1  ;;  %v4453_v50 = vadd.f32 %v4452_v26, %v4451_v34  ;;  %v4454_v8 = vpop.f32.mrb[90].mxu0  ;;  %4840 = vmatmul.mubr.bf16.gmra.mrb[124].mxu0 %v2241_v11 }
 0x3bc   :  { %v2160_v58 = vpop.f32.mrb[99].mxu1  ;;  %v4455_v6 = vpop.f32.mrb[91].mxu0 }
 0x3bd   :  { %v2158_v25 = vadd.f32 %v4453_v50, %v2157_v46  ;;  %v4456_v43 = vadd.f32 %v4455_v6, %v4454_v8 }
 0x3bf   :  { %v2161_v51 = vadd.f32 %v4456_v43, %v2160_v58 }
 0x3c1   :  { %v4801_v35 = vpop.f32.mrb[100].mxu1  ;;  %v4457_v56 = vpop.f32.mrb[92].mxu0  ;;  %v2242_v39 = vpack.c.bf16 %v2161_v51, %v2158_v25 }
 0x3c2   :  { %v2173_v59 = vpop.f32.mrb[101].mxu1  ;;  %v4458_v29 = vpop.f32.mrb[93].mxu0 }
 0x3c3   :  { %v4802_v10 = vpop.f32.mrb[102].mxu1  ;;  %v4459_v32 = vadd.f32 %v4458_v29, %v4457_v56  ;;  %v4460_v1 = vpop.f32.mrb[94].mxu0  ;;  %4843 = vmatprep.mubr.bf16.mxu0 %v2242_v39 }
 0x3c4   :  { %v2176_v12 = vpop.f32.mrb[103].mxu1  ;;  %v4461_v19 = vpop.f32.mrb[95].mxu0 }
 0x3c5   :  { %v2166_v45 = vadd.f32 %v4797_v33, %v4459_v32  ;;  %v4462_v20 = vadd.f32 %v4461_v19, %v4460_v1 }
 0x3c7   :  { %v2169_v41 = vadd.f32 %v4798_v36, %v4462_v20 }
 0x3c9   :  { %v4805_v60 = vpop.f32.mrb[104].mxu1  ;;  %v4463_v17 = vpop.f32.mrb[96].mxu0  ;;  %v2243_v63 = vpack.c.bf16 %v2169_v41, %v2166_v45 }
 0x3ca   :  { %v2189_v2 = vpop.f32.mrb[105].mxu1  ;;  %v4464_v55 = vpop.f32.mrb[97].mxu0 }
 0x3cb   :  { %v4806_v40 = vpop.f32.mrb[106].mxu1  ;;  %v4465_v9 = vadd.f32 %v4464_v55, %v4463_v17  ;;  %v4466_v37 = vpop.f32.mrb[98].mxu0  ;;  %4844 = vmatmul.mubr.bf16.gmra.mrb[128].mxu0 %v2243_v63 }
 0x3cc   :  { %v2192_v22 = vpop.f32.mrb[107].mxu1  ;;  %v4467_v27 = vpop.f32.mrb[99].mxu0 }
 0x3cd   :  { %v2174_v24 = vadd.f32 %v4465_v9, %v2173_v59  ;;  %v4468_v31 = vadd.f32 %v4467_v27, %v4466_v37 }
 0x3cf   :  { %v2177_v61 = vadd.f32 %v4468_v31, %v2176_v12 }
 0x3d1   :  { %v4809_v54 = vpop.f32.mrb[108].mxu1  ;;  %v4469_v42 = vpop.f32.mrb[100].mxu0  ;;  %v2244_v3 = vpack.c.bf16 %v2177_v61, %v2174_v24 }
 0x3d2   :  { %v6530_v0 = vadd.f32 %v4809_v54, %v6514_v57  ;;  %v2205_v14 = vpop.f32.mrb[109].mxu1  ;;  %v4470_v18 = vpop.f32.mrb[101].mxu0 }
 0x3d3   :  { %v4810_v7 = vpop.f32.mrb[110].mxu1  ;;  %v4471_v23 = vadd.f32 %v4470_v18, %v4469_v42  ;;  %v4472_v15 = vpop.f32.mrb[102].mxu0  ;;  %4847 = vmatprep.mubr.bf16.mxu0 %v2244_v3 }
 0x3d4   :  { %v2217_v44 = vadd.f32 %v4810_v7, %v6516_v4  ;;  %v2208_v30 = vpop.f32.mrb[111].mxu1  ;;  %v4473_v53 = vpop.f32.mrb[103].mxu0 }
 0x3d5   :  { %v2182_v21 = vadd.f32 %v4801_v35, %v4471_v23  ;;  %v4474_v48 = vadd.f32 %v4473_v53, %v4472_v15 }
 0x3d6   :  { %v2249_v52 = vpack.c.bf16 %v2217_v44, %v6530_v0 }
 0x3d7   :  { %v2185_v33 = vadd.f32 %v4802_v10, %v4474_v48 }
 0x3d9   :  { %v4813_v34 = vpop.f32.mrb[112].mxu1  ;;  %v4475_v11 = vpop.f32.mrb[104].mxu0  ;;  %v2245_v46 = vpack.c.bf16 %v2185_v33, %v2182_v21 }
 0x3da   :  { %v2230_v57 = vadd.f32 %v4813_v34, %v6525_v16  ;;  %v2221_v26 = vpop.f32.mrb[113].mxu1  ;;  %v4476_v36 = vpop.f32.mrb[105].mxu0 }
 0x3db   :  { %v2222_v50 = vadd.f32 %v6521_v49, %v2221_v26  ;;  %v4814_v8 = vpop.f32.mrb[114].mxu1  ;;  %v4477_v58 = vadd.f32 %v4476_v36, %v4475_v11  ;;  %v4478_v6 = vpop.f32.mrb[106].mxu0  ;;  %4848 = vmatmul.mubr.bf16.gmra.mrb[132].mxu0 %v2245_v46  ;;  %v5185_v46 = vld [vmem:[%s7107_s6 + $0x4] ss:$12 sps:$4 sm:$0xff]   ;;  %v5186_v36 = vld [vmem:[%s7107_s6 + $0x8] ss:$12 sps:$4 sm:$0xff]  }
 0x3dc   :  { %v2233_v4 = vadd.f32 %v4814_v8, %v6527_v62  ;;  %v2224_v25 = vpop.f32.mrb[115].mxu1  ;;  %v4479_v43 = vpop.f32.mrb[107].mxu0  ;;  %4867 = vmatprep.mubr.msk.bf16.mxu1 %vm1865_vm1, %v5186_v36 }
 0x3dd   :  { %v2225_v51 = vadd.f32 %v6523_v38, %v2224_v25  ;;  %v2190_v35 = vadd.f32 %v4477_v58, %v2189_v2  ;;  %v4480_v56 = vadd.f32 %v4479_v43, %v4478_v6 }
 0x3de   :  { %v2251_v39 = vpack.c.bf16 %v2233_v4, %v2230_v57 }
 0x3df   :  { %v2250_v59 = vpack.c.bf16 %v2225_v51, %v2222_v50  ;;  %v2193_v29 = vadd.f32 %v4480_v56, %v2192_v22 }
 0x3e1   :  { %v4481_v16 = vpop.f32.mrb[108].mxu0  ;;  %v2246_v10 = vpack.c.bf16 %v2193_v29, %v2190_v35  ;;  %v6538_v32 = vpop.f32.mrb[116].mxu1 }
 0x3e2   :  { %v4482_v49 = vpop.f32.mrb[109].mxu0  ;;  %v2761_v1 = vpop.f32.mrb[117].mxu1 }
 0x3e3   :  { %v4483_v12 = vadd.f32 %v4482_v49, %v4481_v16  ;;  %v4484_v19 = vpop.f32.mrb[110].mxu0  ;;  %4851 = vmatprep.mubr.bf16.mxu0 %v2246_v10  ;;  %v6540_v45 = vpop.f32.mrb[118].mxu1  ;;  %v7263_v16 = vld [vmem:[#allocation11_spill] sm:$0xff] }
 0x3e4   :  { %v4485_v62 = vpop.f32.mrb[111].mxu0  ;;  %v2764_v20 = vpop.f32.mrb[119].mxu1  ;;  %v2956_v10 = vmul.f32 %v7263_v16, %v6538_v32 }
 0x3e5   :  { %v2198_v41 = vadd.f32 %v4805_v60, %v4483_v12  ;;  %v4486_v38 = vadd.f32 %v4485_v62, %v4484_v19  ;;  %v7264_v19 = vld [vmem:[#allocation12_spill] sm:$0xff]  ;;  %v7265_v20 = vld [vmem:[#allocation13_spill] sm:$0xff] }
 0x3e6   :  { %v2903_v62 = vmul.f32 %v7264_v19, %v6540_v45 }
 0x3e7   :  { %v2201_v17 = vadd.f32 %v4806_v40, %v4486_v38 }
 0x3e9   :  { %v4487_v63 = vpop.f32.mrb[112].mxu0  ;;  %v2247_v2 = vpack.c.bf16 %v2201_v17, %v2198_v41  ;;  %v6542_v55 = vpop.f32.mrb[120].mxu1  ;;  %v2957_v41 = vmul.f32 %v7265_v20, %v6540_v45  ;;  %v7266_v45 = vld [vmem:[#allocation14_spill] sm:$0xff] }
 0x3ea   :  { %v4488_v9 = vpop.f32.mrb[113].mxu0  ;;  %v2769_v37 = vpop.f32.mrb[121].mxu1 }
 0x3eb   :  { %v4489_v22 = vadd.f32 %v4488_v9, %v4487_v63  ;;  %v4490_v27 = vpop.f32.mrb[114].mxu0  ;;  %4852 = vmatmul.mubr.bf16.gmra.mrb[136].mxu0 %v2247_v2  ;;  %v6544_v24 = vpop.f32.mrb[122].mxu1 }
 0x3ec   :  { %v4491_v31 = vpop.f32.mrb[115].mxu0  ;;  %v2772_v61 = vpop.f32.mrb[123].mxu1 }
 0x3ed   :  { %v2206_v54 = vadd.f32 %v4489_v22, %v2205_v14  ;;  %v4492_v42 = vadd.f32 %v4491_v31, %v4490_v27 }
 0x3ef   :  { %v2209_v3 = vadd.f32 %v4492_v42, %v2208_v30  ;;  %v7267_v42 = vld [vmem:[#allocation15_spill] sm:$0xff] }
 0x3f1   :  { %v2248_v0 = vpack.c.bf16 %v2209_v3, %v2206_v54  ;;  %v6546_v60 = vpop.f32.mrb[124].mxu1  ;;  %v2904_v54 = vmul.f32 %v7266_v45, %v6542_v55  ;;  %v2958_v3 = vmul.f32 %v7267_v42, %v6542_v55 }
 0x3f2   :  { %v2777_v40 = vpop.f32.mrb[125].mxu1 }
 0x3f3   :  { %4855 = vmatprep.mubr.bf16.mxu0 %v2248_v0  ;;  %v6548_v18 = vpop.f32.mrb[126].mxu1 }
 0x3f4   :  { %4856 = vmatmul.mubr.bf16.gmra.mrb[140].mxu0 %v2249_v52  ;;  %v2780_v7 = vpop.f32.mrb[127].mxu1 }
 0x3f5   :  { %4859 = vmatprep.mubr.bf16.mxu0 %v2250_v59  ;;  %v7262_v59 = vld [vmem:[#allocation10_spill] sm:$0xff] }
 0x3f6   :  { %v2902_v29 = vmul.f32 %v7262_v59, %v6538_v32 }
 0x3f9   :  { %v6550_v23 = vpop.f32.mrb[128].mxu1 }
 0x3fa   :  { %v2785_v15 = vpop.f32.mrb[129].mxu1 }
 0x3fb   :  { %v6552_v44 = vpop.f32.mrb[130].mxu1  ;;  %v7268_v15 = vld [vmem:[#allocation16_spill] sm:$0xff] }
 0x3fc   :  { %4860 = vmatmul.mubr.bf16.gmra.mrb[144].mxu0 %v2251_v39  ;;  %v2788_v53 = vpop.f32.mrb[131].mxu1 }
 0x3fd   :  { %3412 = vmatprep.mubr.bf16.mxu0 %v5185_v46  ;;  %v2905_v53 = vmul.f32 %v7268_v15, %v6544_v24 }
 0x401   :  { %v6554_v14 = vpop.f32.mrb[132].mxu1 }
 0x402   :  { %v2793_v30 = vpop.f32.mrb[133].mxu1 }
 0x403   :  { %v6556_v21 = vpop.f32.mrb[134].mxu1  ;;  %v7269_v30 = vld [vmem:[#allocation17_spill] sm:$0xff] }
 0x404   :  { %v2796_v48 = vpop.f32.mrb[135].mxu1 }
 0x405   :  { %v2959_v48 = vmul.f32 %v7269_v30, %v6544_v24  ;;  %v7270_v24 = vld [vmem:[#allocation18_spill] sm:$0xff] }
 0x409   :  { %v6558_v33 = vpop.f32.mrb[136].mxu1 }
 0x40a   :  { %v2801_v34 = vpop.f32.mrb[137].mxu1 }
 0x40b   :  { %v6560_v11 = vpop.f32.mrb[138].mxu1 }
 0x40c   :  { %v2804_v52 = vpop.f32.mrb[139].mxu1 }
 0x411   :  { %v6565_v57 = vpop.f32.mrb[140].mxu1 }
 0x412   :  { %v2809_v26 = vpop.f32.mrb[141].mxu1 }
 0x413   :  { %v6570_v50 = vpop.f32.mrb[142].mxu1 }
 0x414   :  { %v2812_v8 = vpop.f32.mrb[143].mxu1 }
 0x419   :  { %v6573_v58 = vpop.f32.mrb[144].mxu1 }
 0x41a   :  { %v2817_v6 = vpop.f32.mrb[145].mxu1 }
 0x41b   :  { %v6575_v4 = vpop.f32.mrb[146].mxu1 }
 0x41c   :  { %v2820_v25 = vpop.f32.mrb[147].mxu1 }
 0x421   :  { %v6577_v43 = vpop.f32.mrb[148].mxu1 }
 0x422   :  { %v2825_v51 = vpop.f32.mrb[149].mxu1 }
 0x423   :  { %v6579_v35 = vpop.f32.mrb[150].mxu1 }
 0x424   :  { %v2828_v56 = vpop.f32.mrb[151].mxu1 }
 0x429   :  { %v2831_v39 = vpop.f32.mrb[152].mxu1 }
 0x42a   :  { %v2920_v49 = vmul.f32 %v7263_v16, %v2831_v39  ;;  %v2974_v1 = vmul.f32 %v7262_v59, %v2831_v39  ;;  %v2833_v12 = vpop.f32.mrb[153].mxu1  ;;  %v2906_v39 = vmul.f32 %v7270_v24, %v6546_v60  ;;  %v7271_v59 = vld [vmem:[#allocation19_spill] sm:$0xff] }
 0x42b   :  { %v2834_v38 = vpop.f32.mrb[154].mxu1 }
 0x42c   :  { %v2938_v17 = vsub.f32 %v2902_v29, %v2920_v49  ;;  %v6591_v63 = vadd.f32 %v2974_v1, %v2956_v10  ;;  %v2921_v2 = vmul.f32 %v7265_v20, %v2834_v38  ;;  %v2975_v9 = vmul.f32 %v7264_v19, %v2834_v38  ;;  %v2836_v32 = vpop.f32.mrb[155].mxu1  ;;  %v7272_v1 = vld [vmem:[#allocation20_spill] sm:$0xff]  ;;  %v7273_v19 = vld [vmem:[#allocation21_spill] sm:$0xff] }
 0x42d   :  { %v2960_v29 = vmul.f32 %v7271_v59, %v6546_v60  ;;  %v2907_v12 = vmul.f32 %v7272_v1, %v6548_v18 }
 0x42e   :  { %v2939_v37 = vsub.f32 %v2903_v62, %v2921_v2  ;;  %v6595_v22 = vadd.f32 %v2975_v9, %v2957_v41  ;;  %v2961_v62 = vmul.f32 %v7273_v19, %v6548_v18  ;;  %v7274_v18 = vld [vmem:[#allocation22_spill] sm:$0xff] }
 0x430   :  { %v6597_v27 = vpack.c.bf16 %v2939_v37, %v2938_v17  ;;  %v3019_v31 = vpack.c.bf16 %v6595_v22, %v6591_v63 }
 0x431   :  { %v2839_v61 = vpop.f32.mrb[156].mxu1 }
 0x432   :  { %v2922_v0 = vmul.f32 %v7267_v42, %v2839_v61  ;;  %v2976_v40 = vmul.f32 %v7266_v45, %v2839_v61  ;;  %v2841_v7 = vpop.f32.mrb[157].mxu1  ;;  %v7275_v42 = vld [vmem:[#allocation25_spill] sm:$0xff] }
 0x433   :  { %v2842_v34 = vpop.f32.mrb[158].mxu1 }
 0x434   :  { %v2940_v52 = vsub.f32 %v2904_v54, %v2922_v0  ;;  %v6611_v46 = vadd.f32 %v2976_v40, %v2958_v3  ;;  %v2923_v26 = vmul.f32 %v7269_v30, %v2842_v34  ;;  %v2977_v36 = vmul.f32 %v7268_v15, %v2842_v34  ;;  %v2844_v55 = vpop.f32.mrb[159].mxu1  ;;  %v7276_v15 = vld [vmem:[#allocation26_spill] sm:$0xff]  ;;  %v7277_v30 = vld [vmem:[#allocation28_spill] sm:$0xff] }
 0x435   :  { %v2908_v54 = vmul.f32 %v7274_v18, %v6550_v23  ;;  %v2962_v3 = vmul.f32 %v7275_v42, %v6550_v23 }
 0x436   :  { %v2941_v8 = vsub.f32 %v2905_v53, %v2923_v26  ;;  %v6615_v6 = vadd.f32 %v2977_v36, %v2959_v48  ;;  %v2909_v53 = vmul.f32 %v7276_v15, %v6552_v44  ;;  %v2963_v48 = vmul.f32 %v7277_v30, %v6552_v44  ;;  %v7278_v44 = vld [vmem:[#allocation29_spill] sm:$0xff] }
 0x438   :  { %v6617_v25 = vpack.c.bf16 %v2941_v8, %v2940_v52  ;;  %v3020_v51 = vpack.c.bf16 %v6615_v6, %v6611_v46  ;;  %v5203_v46 = vld [vmem:[%s7107_s6 + $0x80] ss:$12 sps:$4 sm:$0xff]   ;;  %v5210_v6 = vld [vmem:[%s7107_s6 + $0x98] ss:$12 sps:$4 sm:$0xff]  }
 0x439   :  { %v2847_v56 = vpop.f32.mrb[160].mxu1 }
 0x43a   :  { %v2924_v16 = vmul.f32 %v7271_v59, %v2847_v56  ;;  %v2978_v10 = vmul.f32 %v7270_v24, %v2847_v56  ;;  %v2849_v49 = vpop.f32.mrb[161].mxu1 }
 0x43b   :  { %v2850_v20 = vpop.f32.mrb[162].mxu1 }
 0x43c   :  { %v2942_v41 = vsub.f32 %v2906_v39, %v2924_v16  ;;  %v6631_v38 = vadd.f32 %v2978_v10, %v2960_v29  ;;  %v2925_v17 = vmul.f32 %v7273_v19, %v2850_v20  ;;  %v2979_v2 = vmul.f32 %v7272_v1, %v2850_v20  ;;  %v2852_v60 = vpop.f32.mrb[163].mxu1  ;;  %v7279_v16 = vld [vmem:[#allocation32_spill] sm:$0xff]  ;;  %v7280_v19 = vld [vmem:[#allocation33_spill] sm:$0xff]  ;;  %v7281_v20 = vld [vmem:[#allocation35_spill] sm:$0xff] }
 0x43d   :  { %v2910_v29 = vmul.f32 %v7278_v44, %v6554_v14  ;;  %v2964_v10 = vmul.f32 %v7279_v16, %v6554_v14 }
 0x43e   :  { %v2943_v9 = vsub.f32 %v2907_v12, %v2925_v17  ;;  %v6635_v32 = vadd.f32 %v2979_v2, %v2961_v62  ;;  %v2911_v62 = vmul.f32 %v7280_v19, %v6556_v21 }
 0x440   :  { %v6637_v37 = vpack.c.bf16 %v2943_v9, %v2942_v41  ;;  %v3021_v61 = vpack.c.bf16 %v6635_v32, %v6631_v38  ;;  %v2965_v41 = vmul.f32 %v7281_v20, %v6556_v21  ;;  %v7282_v21 = vld [vmem:[#allocation36_spill] sm:$0xff] }
 0x441   :  { %v2855_v45 = vpop.f32.mrb[164].mxu1 }
 0x442   :  { %v2926_v0 = vmul.f32 %v7275_v42, %v2855_v45  ;;  %v2980_v40 = vmul.f32 %v7274_v18, %v2855_v45  ;;  %v2857_v7 = vpop.f32.mrb[165].mxu1 }
 0x443   :  { %v2858_v34 = vpop.f32.mrb[166].mxu1  ;;  %v7283_v7 = vld [vmem:[#allocation37_spill] sm:$0xff] }
 0x444   :  { %v2944_v52 = vsub.f32 %v2908_v54, %v2926_v0  ;;  %v6651_v26 = vadd.f32 %v2980_v40, %v2962_v3  ;;  %v2927_v36 = vmul.f32 %v7277_v30, %v2858_v34  ;;  %v2981_v55 = vmul.f32 %v7276_v15, %v2858_v34  ;;  %v2860_v23 = vpop.f32.mrb[167].mxu1  ;;  %v7284_v34 = vld [vmem:[#allocation38_spill] sm:$0xff] }
 0x445   :  { %v2912_v40 = vmul.f32 %v7282_v21, %v6558_v33  ;;  %v2966_v15 = vmul.f32 %v7283_v7, %v6558_v33 }
 0x446   :  { %v2945_v8 = vsub.f32 %v2909_v53, %v2927_v36  ;;  %v6655_v56 = vadd.f32 %v2981_v55, %v2963_v48  ;;  %v7285_v36 = vld [vmem:[#allocation39_spill] sm:$0xff] }
 0x447   :  { %v2967_v55 = vmul.f32 %v7285_v36, %v6560_v11 }
 0x448   :  { %v6657_v24 = vpack.c.bf16 %v2945_v8, %v2944_v52  ;;  %v3022_v39 = vpack.c.bf16 %v6655_v56, %v6651_v26  ;;  %v2913_v52 = vmul.f32 %v7284_v34, %v6560_v11  ;;  %v7286_v11 = vld [vmem:[#allocation40_spill] sm:$0xff]  ;;  %v5247_v26 = vld [vmem:[%s7105_s4] sm:$0xff]  }
 0x449   :  { %v2863_v59 = vpop.f32.mrb[168].mxu1 }
 0x44a   :  { %v2928_v49 = vmul.f32 %v7279_v16, %v2863_v59  ;;  %v2982_v1 = vmul.f32 %v7278_v44, %v2863_v59  ;;  %v2865_v12 = vpop.f32.mrb[169].mxu1 }
 0x44b   :  { %v2866_v17 = vpop.f32.mrb[170].mxu1 }
 0x44c   :  { %v2946_v2 = vsub.f32 %v2910_v29, %v2928_v49  ;;  %v6671_v60 = vadd.f32 %v2982_v1, %v2964_v10  ;;  %v2929_v9 = vmul.f32 %v7281_v20, %v2866_v17  ;;  %v2983_v45 = vmul.f32 %v7280_v19, %v2866_v17  ;;  %v2868_v14 = vpop.f32.mrb[171].mxu1 }
 0x44d   :  { %v2914_v19 = vmul.f32 %v7286_v11, %v6565_v57  ;;  %v7289_v14 = vld [vmem:[#allocation43_spill] sm:$0xff] }
 0x44e   :  { %v2947_v18 = vsub.f32 %v2911_v62, %v2929_v9  ;;  %v6675_v54 = vadd.f32 %v2983_v45, %v2965_v41  ;;  %v7287_v62 = vld [vmem:[#allocation41_spill] sm:$0xff]  ;;  %v7288_v9 = vld [vmem:[#allocation42_spill] sm:$0xff] }
 0x44f   :  { %v2968_v20 = vmul.f32 %v7287_v62, %v6565_v57  ;;  %v2915_v45 = vmul.f32 %v7288_v9, %v6570_v50 }
 0x450   :  { %v6677_v42 = vpack.c.bf16 %v2947_v18, %v2946_v2  ;;  %v3023_v3 = vpack.c.bf16 %v6675_v54, %v6671_v60  ;;  %v2969_v18 = vmul.f32 %v7289_v14, %v6570_v50  ;;  %v7290_v50 = vld [vmem:[#allocation46_spill] sm:$0xff] }
 0x451   :  { %v2871_v0 = vpop.f32.mrb[172].mxu1  ;;  %v5188_v60 = vld [vmem:[%s7107_s6 + $0x1c] ss:$12 sps:$4 sm:$0xff]  }
 0x452   :  { %v2930_v53 = vmul.f32 %v7283_v7, %v2871_v0  ;;  %v2984_v30 = vmul.f32 %v7282_v21, %v2871_v0  ;;  %v2873_v48 = vpop.f32.mrb[173].mxu1 }
 0x453   :  { %v2874_v23 = vpop.f32.mrb[174].mxu1 }
 0x454   :  { %v2948_v8 = vsub.f32 %v2912_v40, %v2930_v53  ;;  %v6691_v59 = vadd.f32 %v2984_v30, %v2966_v15  ;;  %v2931_v44 = vmul.f32 %v7285_v36, %v2874_v23  ;;  %v2985_v29 = vmul.f32 %v7284_v34, %v2874_v23  ;;  %v2876_v33 = vpop.f32.mrb[175].mxu1 }
 0x455   :  { %v2916_v36 = vmul.f32 %v7290_v50, %v6573_v58  ;;  %v2917_v33 = vmul.f32 %v6086_v47, %v6575_v4 }
 0x456   :  { %v2949_v16 = vsub.f32 %v2913_v52, %v2931_v44  ;;  %v6695_v10 = vadd.f32 %v2985_v29, %v2967_v55  ;;  %v7291_v55 = vld [vmem:[#allocation47_spill] sm:$0xff] }
 0x457   :  { %v2970_v23 = vmul.f32 %v7291_v55, %v6573_v58 }
 0x458   :  { %v6697_v49 = vpack.c.bf16 %v2949_v16, %v2948_v8  ;;  %v3024_v1 = vpack.c.bf16 %v6695_v10, %v6691_v59  ;;  %v7292_v16 = vld [vmem:[#allocation48_spill] sm:$0xff]  ;;  %v5226_v10 = vld [vmem:[%s7107_s6 + $0xf8] ss:$12 sps:$4 sm:$0xff]  }
 0x459   :  { %v2879_v12 = vpop.f32.mrb[176].mxu1  ;;  %v5219_v59 = vld [vmem:[%s7107_s6 + $0xe0] ss:$12 sps:$4 sm:$0xff]  }
 0x45a   :  { %v2932_v41 = vmul.f32 %v7287_v62, %v2879_v12  ;;  %v2986_v17 = vmul.f32 %v7286_v11, %v2879_v12  ;;  %v2881_v2 = vpop.f32.mrb[177].mxu1  ;;  %v2971_v12 = vmul.f32 %v7292_v16, %v6575_v4 }
 0x45b   :  { %v2882_v0 = vpop.f32.mrb[178].mxu1 }
 0x45c   :  { %v2950_v21 = vsub.f32 %v2914_v19, %v2932_v41  ;;  %v6711_v40 = vadd.f32 %v2986_v17, %v2968_v20  ;;  %v2933_v7 = vmul.f32 %v7289_v14, %v2882_v0  ;;  %v2987_v15 = vmul.f32 %v7288_v9, %v2882_v0  ;;  %v2884_v57 = vpop.f32.mrb[179].mxu1  ;;  %v7293_v0 = vld [vmem:[#allocation8_spill] sm:$0xff] }
 0x45d   :  { %v2972_v4 = vmul.f32 %v7293_v0, %v6577_v43  ;;  %v2973_v57 = vmul.f32 %v6125_v5, %v6579_v35 }
 0x45e   :  { %v2951_v53 = vsub.f32 %v2915_v45, %v2933_v7  ;;  %v6715_v30 = vadd.f32 %v2987_v15, %v2969_v18  ;;  %v2918_v18 = vmul.f32 %v6119_v28, %v6577_v43 }
 0x460   :  { %v6717_v48 = vpack.c.bf16 %v2951_v53, %v2950_v21  ;;  %v3025_v34 = vpack.c.bf16 %v6715_v30, %v6711_v40  ;;  %v5191_v40 = vld [vmem:[%s7107_s6 + $0x34] ss:$12 sps:$4 sm:$0xff]   ;;  %v5250_v30 = vld [vmem:[%s7105_s4 + $0x18] sm:$0xff]  }
 0x461   :  { %v2887_v52 = vpop.f32.mrb[180].mxu1 }
 0x462   :  { %v2934_v8 = vmul.f32 %v7291_v55, %v2887_v52  ;;  %v2988_v44 = vmul.f32 %v7290_v50, %v2887_v52  ;;  %v2889_v29 = vpop.f32.mrb[181].mxu1 }
 0x463   :  { %v2890_v11 = vpop.f32.mrb[182].mxu1  ;;  %v5187_v29 = vld [vmem:[%s7107_s6 + $0x20] ss:$12 sps:$4 sm:$0xff]  }
 0x464   :  { %v2952_v19 = vsub.f32 %v2916_v36, %v2934_v8  ;;  %v3006_v62 = vadd.f32 %v2988_v44, %v2970_v23  ;;  %v2935_v20 = vmul.f32 %v7292_v16, %v2890_v11  ;;  %v2989_v41 = vmul.f32 %v6086_v47, %v2890_v11  ;;  %v2892_v17 = vpop.f32.mrb[183].mxu1 }
 0x465   :  { %v2919_v47 = vmul.f32 %v6123_v13, %v6579_v35  ;;  %v5202_v35 = vld [vmem:[%s7107_s6 + $0x68] ss:$12 sps:$4 sm:$0xff]   ;;  %v5242_v17 = vld [vmem:[%s7107_s6 + $0x158] ss:$12 sps:$4 sm:$0xff]  }
 0x466   :  { %v2953_v58 = vsub.f32 %v2917_v33, %v2935_v20  ;;  %v3007_v2 = vadd.f32 %v2989_v41, %v2971_v12  ;;  %v5251_v33 = vld [vmem:[%s7105_s4 + $0x20] sm:$0xff]   ;;  %v5193_v12 = vld [vmem:[%s7107_s6 + $0x30] ss:$12 sps:$4 sm:$0xff]  }
 0x467   :  { %v5235_v41 = vld [vmem:[%s7107_s6 + $0x140] ss:$12 sps:$4 sm:$0xff]  }
 0x468   :  { %v6733_v9 = vpack.c.bf16 %v2953_v58, %v2952_v19  ;;  %v3026_v45 = vpack.c.bf16 %v3007_v2, %v3006_v62  ;;  %v5196_v19 = vld [vmem:[%s7107_s6 + $0x4c] ss:$12 sps:$4 sm:$0xff]   ;;  %v5198_v58 = vld [vmem:[%s7107_s6 + $0x48] ss:$12 sps:$4 sm:$0xff]   ;;  %v5199_v2 = vld [vmem:[%s7107_s6 + $0x64] ss:$12 sps:$4 sm:$0xff]  }
 0x469   :  { %v2895_v14 = vpop.f32.mrb[184].mxu1 }
 0x46a   :  { %v2936_v21 = vmul.f32 %v7293_v0, %v2895_v14  ;;  %v2990_v7 = vmul.f32 %v6119_v28, %v2895_v14  ;;  %v2897_v15 = vpop.f32.mrb[185].mxu1  ;;  %4863 = vmatprep.subr.bf16.mxu1 %v3026_v45  ;;  %v5201_v14 = vld [vmem:[%s7107_s6 + $0x60] ss:$12 sps:$4 sm:$0xff]   ;;  %v5204_v0 = vld [vmem:[%s7107_s6 + $0x7c] ss:$12 sps:$4 sm:$0xff]  }
 0x46b   :  { %v2898_v53 = vpop.f32.mrb[186].mxu1  ;;  %4864 = vmatpush3.bf16.msra.mxu1 %v3026_v45  ;;  %v5207_v15 = vld [vmem:[%s7107_s6 + $0x94] ss:$12 sps:$4 sm:$0xff]  }
 0x46c   :  { %v2954_v52 = vsub.f32 %v2918_v18, %v2936_v21  ;;  %v3008_v50 = vadd.f32 %v2990_v7, %v2972_v4  ;;  %v2937_v36 = vmul.f32 %v6125_v5, %v2898_v53  ;;  %v2991_v43 = vmul.f32 %v6123_v13, %v2898_v53  ;;  %v2900_v55 = vpop.f32.mrb[187].mxu1  ;;  %v5194_v5 = vld [vmem:[%s7107_s6 + $0x38] ss:$12 sps:$4 sm:$0xff]   ;;  %v5195_v13 = vld [vmem:[%s7107_s6 + $0x50] ss:$12 sps:$4 sm:$0xff]  }
 0x46d   :  { %v5206_v7 = vld [vmem:[%s7107_s6 + $0x78] ss:$12 sps:$4 sm:$0xff]  }
 0x46e   :  { %v2955_v23 = vsub.f32 %v2919_v47, %v2937_v36  ;;  %v3009_v8 = vadd.f32 %v2991_v43, %v2973_v57  ;;  %v5209_v57 = vld [vmem:[%s7107_s6 + $0x90] ss:$12 sps:$4 sm:$0xff]   ;;  %v5214_v43 = vld [vmem:[%s7107_s6 + $0xa8] ss:$12 sps:$4 sm:$0xff]  }
 0x470   :  { %v3018_v28 = vpack.c.bf16 %v2955_v23, %v2954_v52  ;;  %v3027_v44 = vpack.c.bf16 %v3009_v8, %v3008_v50  ;;  %v5212_v52 = vld [vmem:[%s7107_s6 + $0xac] ss:$12 sps:$4 sm:$0xff]   ;;  %v5215_v23 = vld [vmem:[%s7107_s6 + $0xc4] ss:$12 sps:$4 sm:$0xff]  }
 0x472   :  { %4553 = vmatprep.subr.bf16.mxu0 %v3018_v28  ;;  %4865 = vmatprep.subr.bf16.mxu1 %v3027_v44 }
 0x473   :  { %4554 = vmatpush3.bf16.msra.mxu0 %v6597_v27  ;;  %4866 = vmatpush3.bf16.msra.mxu1 %v3027_v44 }
 0x474   :  { %4555 = vmatprep.subr.bf16.mxu0 %v3019_v31 }
 0x476   :  { %4868 = vmatmul.mubr.msk.bf16.vlgmr.msra.gmra.mrb[188].mxu1 %vm1865_vm1, %v5187_v29  ;;  %v5217_v29 = vld [vmem:[%s7107_s6 + $0xc0] ss:$12 sps:$4 sm:$0xff]  }
 0x477   :  { %4556 = vmatpush3.bf16.msra.mxu0 %v6617_v25  ;;  %4871 = vmatprep.mubr.msk.bf16.mxu1 %vm1865_vm1, %v5194_v5 }
 0x478   :  { %4557 = vmatprep.subr.bf16.mxu0 %v3020_v51 }
 0x47b   :  { %4558 = vmatpush3.bf16.msra.mxu0 %v6637_v37  ;;  %v5211_v37 = vld [vmem:[%s7107_s6 + $0xb0] ss:$12 sps:$4 sm:$0xff]  }
 0x47c   :  { %4559 = vmatprep.subr.bf16.mxu0 %v3021_v61  ;;  %v5218_v61 = vld [vmem:[%s7107_s6 + $0xc8] ss:$12 sps:$4 sm:$0xff]  }
 0x47d   :  { %v4833_v63 = vpop.f32.mrb[116].mxu0 }
 0x47e   :  { %2479 = vst.msk [vmem:[#allocation4 + $0x10] sm:$0xff] %vm292_vm0, %v4833_v63  ;;  %v2350_v22 = vpop.f32.mrb[117].mxu0  ;;  %4872 = vmatmul.mubr.msk.bf16.gmra.mrb[192].mxu1 %vm1865_vm1, %v5195_v13  ;;  %v5220_v13 = vld [vmem:[%s7107_s6 + $0xdc] ss:$12 sps:$4 sm:$0xff]  }
 0x47f   :  { %4560 = vmatpush3.bf16.msra.mxu0 %v6657_v24  ;;  %2477 = vst.msk [vmem:[#allocation4] sm:$0xff] %vm292_vm0, %v2350_v22  ;;  %v4834_v27 = vpop.f32.mrb[118].mxu0  ;;  %4875 = vmatprep.mubr.msk.bf16.mxu1 %vm1865_vm1, %v5202_v35  ;;  %v5183_v24 = vld [vmem:[%s7107_s6] ss:$12 sps:$4 sm:$0xff]  }
 0x480   :  { %4561 = vmatprep.subr.bf16.mxu0 %v3022_v39  ;;  %2480 = vst.msk [vmem:[#allocation4 + $0x18] sm:$0xff] %vm292_vm0, %v4834_v27  ;;  %v2353_v31 = vpop.f32.mrb[119].mxu0  ;;  %v5222_v27 = vld [vmem:[%s7107_s6 + $0xd8] ss:$12 sps:$4 sm:$0xff]  }
 0x481   :  { %2478 = vst.msk [vmem:[#allocation4 + $0x8] sm:$0xff] %vm292_vm0, %v2353_v31  ;;  %v5223_v31 = vld [vmem:[%s7107_s6 + $0xf4] ss:$12 sps:$4 sm:$0xff]  }
 0x483   :  { %4562 = vmatpush3.bf16.msra.mxu0 %v6677_v42  ;;  %v5248_v42 = vld [vmem:[%s7105_s4 + $0x8] sm:$0xff]  }
 0x484   :  { %4563 = vmatprep.subr.bf16.mxu0 %v3023_v3 }
 0x485   :  { %v4837_v25 = vpop.f32.mrb[120].mxu0 }
 0x486   :  { %2483 = vst.msk [vmem:[#allocation4 + $0x30] sm:$0xff] %vm292_vm0, %v4837_v25  ;;  %v2366_v51 = vpop.f32.mrb[121].mxu0  ;;  %4876 = vmatmul.mubr.msk.bf16.gmra.mrb[196].mxu1 %vm1865_vm1, %v5203_v46  ;;  %v5225_v46 = vld [vmem:[%s7107_s6 + $0xf0] ss:$12 sps:$4 sm:$0xff]   ;;  %v5230_v25 = vld [vmem:[%s7107_s6 + $0x108] ss:$12 sps:$4 sm:$0xff]  }
 0x487   :  { %4564 = vmatpush3.bf16.msra.mxu0 %v6697_v49  ;;  %2481 = vst.msk [vmem:[#allocation4 + $0x20] sm:$0xff] %vm292_vm0, %v2366_v51  ;;  %v4838_v38 = vpop.f32.mrb[122].mxu0  ;;  %4879 = vmatprep.mubr.msk.bf16.mxu1 %vm1865_vm1, %v5210_v6  ;;  %v5249_v49 = vld [vmem:[%s7105_s4 + $0x10] sm:$0xff]   ;;  %v5228_v6 = vld [vmem:[%s7107_s6 + $0x10c] ss:$12 sps:$4 sm:$0xff]  }
 0x488   :  { %4565 = vmatprep.subr.bf16.mxu0 %v3024_v1  ;;  %2484 = vst.msk [vmem:[#allocation4 + $0x38] sm:$0xff] %vm292_vm0, %v4838_v38  ;;  %v2369_v32 = vpop.f32.mrb[123].mxu0  ;;  %v5190_v1 = vld [vmem:[%s7107_s6 + $0x18] ss:$12 sps:$4 sm:$0xff]   ;;  %v5252_v38 = vld [vmem:[%s7105_s4 + $0x28] sm:$0xff]  }
 0x489   :  { %2482 = vst.msk [vmem:[#allocation4 + $0x28] sm:$0xff] %vm292_vm0, %v2369_v32  ;;  %v5231_v51 = vld [vmem:[%s7107_s6 + $0x124] ss:$12 sps:$4 sm:$0xff]   ;;  %v5233_v32 = vld [vmem:[%s7107_s6 + $0x120] ss:$12 sps:$4 sm:$0xff]  }
 0x48b   :  { %4566 = vmatpush3.bf16.msra.mxu0 %v6717_v48  ;;  %v5227_v48 = vld [vmem:[%s7107_s6 + $0x110] ss:$12 sps:$4 sm:$0xff]  }
 0x48c   :  { %4567 = vmatprep.subr.bf16.mxu0 %v3025_v34  ;;  %v5234_v34 = vld [vmem:[%s7107_s6 + $0x128] ss:$12 sps:$4 sm:$0xff]  }
 0x48e   :  { %v4841_v56 = vpop.f32.mrb[124].mxu0  ;;  %4880 = vmatmul.mubr.msk.bf16.gmra.mrb[200].mxu1 %vm1865_vm1, %v5211_v37  ;;  %v5253_v37 = vld [vmem:[%s7105_s4 + $0x30] sm:$0xff]  }
 0x48f   :  { %4568 = vmatpush3.bf16.msra.mxu0 %v6733_v9  ;;  %2487 = vst.msk [vmem:[#allocation4 + $0x50] sm:$0xff] %vm292_vm0, %v4841_v56  ;;  %v2382_v39 = vpop.f32.mrb[125].mxu0  ;;  %4883 = vmatprep.mubr.msk.bf16.mxu1 %vm1865_vm1, %v5218_v61  ;;  %v5243_v9 = vld [vmem:[%s7107_s6 + $0x170] ss:$12 sps:$4 sm:$0xff]   ;;  %v5238_v56 = vld [vmem:[%s7107_s6 + $0x138] ss:$12 sps:$4 sm:$0xff]  }
 0x490   :  { %2485 = vst.msk [vmem:[#allocation4 + $0x40] sm:$0xff] %vm292_vm0, %v2382_v39  ;;  %v4842_v54 = vpop.f32.mrb[126].mxu0  ;;  %4899 = vmatprep.subr.bf16.mxu0 %v5247_v26  ;;  %v5236_v61 = vld [vmem:[%s7107_s6 + $0x13c] ss:$12 sps:$4 sm:$0xff]  }
 0x491   :  { %2488 = vst.msk [vmem:[#allocation4 + $0x58] sm:$0xff] %vm292_vm0, %v4842_v54  ;;  %v2385_v3 = vpop.f32.mrb[127].mxu0  ;;  %v5241_v39 = vld [vmem:[%s7107_s6 + $0x150] ss:$12 sps:$4 sm:$0xff]   ;;  %v5246_v54 = vld [vmem:[%s7107_s6 + $0x168] ss:$12 sps:$4 sm:$0xff]  }
 0x492   :  { %2486 = vst.msk [vmem:[#allocation4 + $0x48] sm:$0xff] %vm292_vm0, %v2385_v3  ;;  %3413 = vmatmul.mubr.bf16.vlgmr.msra.gmra.mrb[148].mxu0 %v5183_v24  ;;  %v5239_v24 = vld [vmem:[%s7107_s6 + $0x154] ss:$12 sps:$4 sm:$0xff]  }
 0x493   :  { %3420 = vmatprep.mubr.bf16.mxu0 %v5188_v60  ;;  %4900 = vmatpush3.bf16.msra.mxu0 %v5247_v26  ;;  %v5254_v26 = vld [vmem:[%s7105_s4 + $0x38] sm:$0xff]  }
 0x494   :  { %4901 = vmatprep.subr.bf16.mxu0 %v5248_v42  ;;  %v5244_v60 = vld [vmem:[%s7107_s6 + $0x16c] ss:$12 sps:$4 sm:$0xff]   ;;  %s5280_s6 = smov [#allocation4]  }
 0x495   :  { %s3980_s19 = sshll.u32 %s5280_s6, 4  ;;  %s3981_s19 = int_to_ptr.vmem [resolvable:$true] %s3980_s19 }
 0x496   :  { %4884 = vmatmul.mubr.msk.bf16.gmra.mrb[204].mxu1 %vm1865_vm1, %v5219_v59  ;;  %s5255_s5 = scalar_lea.vmem %s3981_s19, 8192  ;;  %p5260_p1 = scmp.lt.s32.totalorder %s3981_s19, %s3981_s19 }
 0x497   :  { %4887 = vmatprep.mubr.msk.bf16.mxu1 %vm1865_vm1, %v5226_v10  ;;  %4902 = vmatpush3.bf16.msra.mxu0 %v5248_v42  ;;  %p5256_p0 = scmp.ne.s32.totalorder %s3981_s19, %s5255_s5  ;;  %p5261_p2 = scmp.lt.s32.totalorder %s5255_s5, %s5255_s5 }
 0x498   :  { %4903 = vmatprep.subr.bf16.mxu0 %v5249_v49 }
 0x499   :  { %p5262_p3 = por %p5261_p2, %p5260_p1 }
 0x49a   :  { %3421 = vmatmul.mubr.bf16.gmra.mrb[152].mxu0 %v5190_v1 }
 0x49b   :  { %3428 = vmatprep.mubr.bf16.mxu0 %v5191_v40  ;;  %4904 = vmatpush3.bf16.msra.mxu0 %v5249_v49  ;;  %p5263_p4 = pnand %p5262_p3, %p5256_p0 }
 0x49c   :  { %4905 = vmatprep.subr.bf16.mxu0 %v5250_v30 }
 0x49e   :  { %v4845_v16 = vpop.f32.mrb[128].mxu0  ;;  %4888 = vmatmul.mubr.msk.bf16.gmra.mrb[208].mxu1 %vm1865_vm1, %v5227_v48 }
 0x49f   :  { %2491 = vst.msk [vmem:[#allocation4 + $0x70] sm:$0xff] %vm292_vm0, %v4845_v16  ;;  %v2398_v11 = vpop.f32.mrb[129].mxu0  ;;  %4891 = vmatprep.mubr.msk.bf16.mxu1 %vm1865_vm1, %v5234_v34  ;;  %4906 = vmatpush3.bf16.msra.mxu0 %v5250_v30 }
 0x4a0   :  { %2489 = vst.msk [vmem:[#allocation4 + $0x60] sm:$0xff] %vm292_vm0, %v2398_v11  ;;  %v4846_v62 = vpop.f32.mrb[130].mxu0  ;;  %4907 = vmatprep.subr.bf16.mxu0 %v5251_v33 }
 0x4a1   :  { %2492 = vst.msk [vmem:[#allocation4 + $0x78] sm:$0xff] %vm292_vm0, %v4846_v62  ;;  %v2401_v20 = vpop.f32.mrb[131].mxu0 }
 0x4a2   :  { %2490 = vst.msk [vmem:[#allocation4 + $0x68] sm:$0xff] %vm292_vm0, %v2401_v20  ;;  %3429 = vmatmul.mubr.bf16.gmra.mrb[156].mxu0 %v5193_v12 }
 0x4a3   :  { %3436 = vmatprep.mubr.bf16.mxu0 %v5196_v19  ;;  %4908 = vmatpush3.bf16.msra.mxu0 %v5251_v33 }
 0x4a4   :  { %4909 = vmatprep.subr.bf16.mxu0 %v5252_v38 }
 0x4a6   :  { %4892 = vmatmul.mubr.msk.bf16.gmra.mrb[212].mxu1 %vm1865_vm1, %v5235_v41 }
 0x4a7   :  { %4895 = vmatprep.mubr.msk.bf16.mxu1 %vm1865_vm1, %v5242_v17  ;;  %4910 = vmatpush3.bf16.msra.mxu0 %v5252_v38 }
 0x4a8   :  { %4911 = vmatprep.subr.bf16.mxu0 %v5253_v37 }
 0x4aa   :  { %3437 = vmatmul.mubr.bf16.gmra.mrb[160].mxu0 %v5198_v58 }
 0x4ab   :  { %3444 = vmatprep.mubr.bf16.mxu0 %v5199_v2  ;;  %4912 = vmatpush3.bf16.msra.mxu0 %v5253_v37 }
 0x4ac   :  { %4913 = vmatprep.subr.bf16.mxu0 %v5254_v26 }
 0x4ae   :  { %v4849_v45 = vpop.f32.mrb[132].mxu0  ;;  %4896 = vmatmul.mubr.msk.bf16.gmra.mrb[216].mxu1 %vm1865_vm1, %v5243_v9 }
 0x4af   :  { %2495 = vst.msk [vmem:[#allocation4 + $0x90] sm:$0xff] %vm292_vm0, %v4849_v45  ;;  %v2414_v18 = vpop.f32.mrb[133].mxu0  ;;  %4914 = vmatpush3.bf16.msra.mxu0 %v5254_v26 }
 0x4b0   :  { %2493 = vst.msk [vmem:[#allocation4 + $0x80] sm:$0xff] %vm292_vm0, %v2414_v18  ;;  %v4850_v4 = vpop.f32.mrb[134].mxu0 }
 0x4b1   :  { %2496 = vst.msk [vmem:[#allocation4 + $0x98] sm:$0xff] %vm292_vm0, %v4850_v4  ;;  %v2417_v21 = vpop.f32.mrb[135].mxu0 }
 0x4b2   :  { %2494 = vst.msk [vmem:[#allocation4 + $0x88] sm:$0xff] %vm292_vm0, %v2417_v21  ;;  %3445 = vmatmul.mubr.bf16.gmra.mrb[164].mxu0 %v5201_v14 }
 0x4b3   :  { %3452 = vmatprep.mubr.bf16.mxu0 %v5204_v0 }
 0x4ba   :  { %3453 = vmatmul.mubr.bf16.gmra.mrb[168].mxu0 %v5206_v7 }
 0x4bb   :  { %3460 = vmatprep.mubr.bf16.mxu0 %v5207_v15 }
 0x4be   :  { %v4853_v47 = vpop.f32.mrb[136].mxu0 }
 0x4bf   :  { %2499 = vst.msk [vmem:[#allocation4 + $0xb0] sm:$0xff] %vm292_vm0, %v4853_v47  ;;  %v2430_v53 = vpop.f32.mrb[137].mxu0 }
 0x4c0   :  { %2497 = vst.msk [vmem:[#allocation4 + $0xa0] sm:$0xff] %vm292_vm0, %v2430_v53  ;;  %v4854_v50 = vpop.f32.mrb[138].mxu0 }
 0x4c1   :  { %2500 = vst.msk [vmem:[#allocation4 + $0xb8] sm:$0xff] %vm292_vm0, %v4854_v50  ;;  %v2433_v36 = vpop.f32.mrb[139].mxu0 }
 0x4c2   :  { %2498 = vst.msk [vmem:[#allocation4 + $0xa8] sm:$0xff] %vm292_vm0, %v2433_v36  ;;  %3461 = vmatmul.mubr.bf16.gmra.mrb[172].mxu0 %v5209_v57 }
 0x4c3   :  { %3468 = vmatprep.mubr.bf16.mxu0 %v5212_v52 }
 0x4c7   :  { %v4857_v55 = vpop.f32.mrb[140].mxu0 }
 0x4c8   :  { %2503 = vst.msk [vmem:[#allocation4 + $0xd0] sm:$0xff] %vm292_vm0, %v4857_v55  ;;  %v2446_v8 = vpop.f32.mrb[141].mxu0 }
 0x4c9   :  { %2501 = vst.msk [vmem:[#allocation4 + $0xc0] sm:$0xff] %vm292_vm0, %v2446_v8  ;;  %v4858_v28 = vpop.f32.mrb[142].mxu0 }
 0x4ca   :  { %2504 = vst.msk [vmem:[#allocation4 + $0xd8] sm:$0xff] %vm292_vm0, %v4858_v28  ;;  %v2449_v44 = vpop.f32.mrb[143].mxu0  ;;  %3469 = vmatmul.mubr.bf16.gmra.mrb[176].mxu0 %v5214_v43 }
 0x4cb   :  { %2502 = vst.msk [vmem:[#allocation4 + $0xc8] sm:$0xff] %vm292_vm0, %v2449_v44  ;;  %3476 = vmatprep.mubr.bf16.mxu0 %v5215_v23 }
 0x4cf   :  { %v4861_v5 = vpop.f32.mrb[144].mxu0 }
 0x4d0   :  { %2507 = vst.msk [vmem:[#allocation4 + $0xf0] sm:$0xff] %vm292_vm0, %v4861_v5  ;;  %v2462_v35 = vpop.f32.mrb[145].mxu0 }
 0x4d1   :  { %2505 = vst.msk [vmem:[#allocation4 + $0xe0] sm:$0xff] %vm292_vm0, %v2462_v35  ;;  %v4862_v63 = vpop.f32.mrb[146].mxu0 }
 0x4d2   :  { %2508 = vst.msk [vmem:[#allocation4 + $0xf8] sm:$0xff] %vm292_vm0, %v4862_v63  ;;  %v2465_v22 = vpop.f32.mrb[147].mxu0  ;;  %3477 = vmatmul.mubr.bf16.gmra.mrb[180].mxu0 %v5217_v29 }
 0x4d3   :  { %2506 = vst.msk [vmem:[#allocation4 + $0xe8] sm:$0xff] %vm292_vm0, %v2465_v22  ;;  %3484 = vmatprep.mubr.bf16.mxu0 %v5220_v13 }
 0x4da   :  { %3485 = vmatmul.mubr.bf16.gmra.mrb[184].mxu0 %v5222_v27 }
 0x4db   :  { %3492 = vmatprep.mubr.bf16.mxu0 %v5223_v31 }
 0x4e2   :  { %3493 = vmatmul.mubr.bf16.gmra.mrb[188].mxu0 %v5225_v46 }
 0x4e3   :  { %3500 = vmatprep.mubr.bf16.mxu0 %v5228_v6 }
 0x4ea   :  { %3501 = vmatmul.mubr.bf16.gmra.mrb[192].mxu0 %v5230_v25 }
 0x4eb   :  { %3508 = vmatprep.mubr.bf16.mxu0 %v5231_v51 }
 0x4f2   :  { %3509 = vmatmul.mubr.bf16.gmra.mrb[196].mxu0 %v5233_v32 }
 0x4f3   :  { %3516 = vmatprep.mubr.bf16.mxu0 %v5236_v61 }
 0x4fa   :  { %3517 = vmatmul.mubr.bf16.gmra.mrb[200].mxu0 %v5238_v56 }
 0x4fb   :  { %3524 = vmatprep.mubr.bf16.mxu0 %v5239_v24 }
 0x502   :  { %3525 = vmatmul.mubr.bf16.gmra.mrb[204].mxu0 %v5241_v39 }
 0x503   :  { %3532 = vmatprep.mubr.bf16.mxu0 %v5244_v60 }
 0x50a   :  { %3533 = vmatmul.mubr.bf16.gmra.mrb[208].mxu0 %v5246_v54 }
 0x549   :  { %v4869_v42 = vpop.f32.mrb[188].mxu1 }
 0x54a   :  { %v3575_v3 = vpop.f32.mrb[189].mxu1 }
 0x54b   :  { %v4870_v59 = vpop.f32.mrb[190].mxu1 }
 0x54c   :  { %v3578_v10 = vpop.f32.mrb[191].mxu1 }
 0x551   :  { %v4873_v49 = vpop.f32.mrb[192].mxu1 }
 0x552   :  { %v3591_v1 = vpop.f32.mrb[193].mxu1 }
 0x553   :  { %v4874_v40 = vpop.f32.mrb[194].mxu1 }
 0x554   :  { %v3594_v30 = vpop.f32.mrb[195].mxu1 }
 0x559   :  { %v6985_v48 = vpop.f32.mrb[196].mxu1 }
 0x55a   :  { %v6987_v34 = vpop.f32.mrb[197].mxu1 }
 0x55b   :  { %v6989_v33 = vpop.f32.mrb[198].mxu1 }
 0x55c   :  { %v6991_v16 = vpop.f32.mrb[199].mxu1 }
 0x561   :  { %v6993_v12 = vpop.f32.mrb[200].mxu1 }
 0x562   :  { %v6995_v11 = vpop.f32.mrb[201].mxu1 }
 0x563   :  { %v6997_v19 = vpop.f32.mrb[202].mxu1 }
 0x564   :  { %v6999_v62 = vpop.f32.mrb[203].mxu1 }
 0x565   :  { %v4569_v20 = vpop.f32.mrb[148].mxu0 }
 0x566   :  { %v4570_v41 = vpop.f32.mrb[149].mxu0 }
 0x567   :  { %v4571_v17 = vadd.f32 %v4570_v41, %v4569_v20  ;;  %v4572_v58 = vpop.f32.mrb[150].mxu0 }
 0x568   :  { %v4573_v2 = vpop.f32.mrb[151].mxu0 }
 0x569   :  { %v4574_v9 = vadd.f32 %v4573_v2, %v4572_v58  ;;  %v3576_v45 = vadd.f32 %v4571_v17, %v3575_v3  ;;  %v7001_v14 = vpop.f32.mrb[204].mxu1 }
 0x56a   :  { %v7003_v18 = vpop.f32.mrb[205].mxu1 }
 0x56b   :  { %v3579_v0 = vadd.f32 %v4574_v9, %v3578_v10  ;;  %v7005_v4 = vpop.f32.mrb[206].mxu1 }
 0x56c   :  { %v7007_v21 = vpop.f32.mrb[207].mxu1 }
 0x56d   :  { %v4575_v7 = vpop.f32.mrb[152].mxu0  ;;  %v3702_v15 = vpack.c.bf16 %v3579_v0, %v3576_v45 }
 0x56e   :  { %v4576_v47 = vpop.f32.mrb[153].mxu0 }
 0x56f   :  { %v4577_v57 = vadd.f32 %v4576_v47, %v4575_v7  ;;  %v4578_v53 = vpop.f32.mrb[154].mxu0  ;;  %4915 = vmatprep.mubr.bf16.mxu0 %v3702_v15 }
 0x570   :  { %v4579_v52 = vpop.f32.mrb[155].mxu0 }
 0x571   :  { %v3584_v50 = vadd.f32 %v4869_v42, %v4577_v57  ;;  %v4580_v36 = vadd.f32 %v4579_v52, %v4578_v53  ;;  %v7009_v43 = vpop.f32.mrb[208].mxu1 }
 0x572   :  { %v7011_v55 = vpop.f32.mrb[209].mxu1 }
 0x573   :  { %v3587_v23 = vadd.f32 %v4870_v59, %v4580_v36  ;;  %v7013_v8 = vpop.f32.mrb[210].mxu1 }
 0x574   :  { %v7015_v28 = vpop.f32.mrb[211].mxu1 }
 0x575   :  { %v3703_v44 = vpack.c.bf16 %v3587_v23, %v3584_v50  ;;  %v4581_v29 = vpop.f32.mrb[156].mxu0 }
 0x576   :  { %v4582_v5 = vpop.f32.mrb[157].mxu0 }
 0x577   :  { %4916 = vmatmul.mubr.bf16.vlgmr.msra.gmra.mrb[212].mxu0 %v3703_v44  ;;  %v4583_v13 = vadd.f32 %v4582_v5, %v4581_v29  ;;  %v4584_v35 = vpop.f32.mrb[158].mxu0 }
 0x578   :  { %v4585_v63 = vpop.f32.mrb[159].mxu0 }
 0x579   :  { %v4586_v22 = vadd.f32 %v4585_v63, %v4584_v35  ;;  %v3592_v27 = vadd.f32 %v4583_v13, %v3591_v1  ;;  %v7017_v31 = vpop.f32.mrb[212].mxu1 }
 0x57a   :  { %v7019_v46 = vpop.f32.mrb[213].mxu1 }
 0x57b   :  { %v3595_v6 = vadd.f32 %v4586_v22, %v3594_v30  ;;  %v7021_v25 = vpop.f32.mrb[214].mxu1 }
 0x57c   :  { %v7023_v51 = vpop.f32.mrb[215].mxu1 }
 0x57d   :  { %v4587_v38 = vpop.f32.mrb[160].mxu0  ;;  %v3704_v32 = vpack.c.bf16 %v3595_v6, %v3592_v27 }
 0x57e   :  { %v4588_v37 = vpop.f32.mrb[161].mxu0 }
 0x57f   :  { %v4589_v61 = vadd.f32 %v4588_v37, %v4587_v38  ;;  %v4590_v26 = vpop.f32.mrb[162].mxu0  ;;  %4919 = vmatprep.mubr.bf16.mxu0 %v3704_v32 }
 0x580   :  { %v4591_v56 = vpop.f32.mrb[163].mxu0 }
 0x581   :  { %v3600_v24 = vadd.f32 %v4873_v49, %v4589_v61  ;;  %v4592_v39 = vadd.f32 %v4591_v56, %v4590_v26  ;;  %v7025_v60 = vpop.f32.mrb[216].mxu1 }
 0x582   :  { %v7027_v54 = vpop.f32.mrb[217].mxu1 }
 0x583   :  { %v3603_v42 = vadd.f32 %v4874_v40, %v4592_v39  ;;  %v7029_v3 = vpop.f32.mrb[218].mxu1 }
 0x584   :  { %v7031_v59 = vpop.f32.mrb[219].mxu1 }
 0x585   :  { %v3705_v10 = vpack.c.bf16 %v3603_v42, %v3600_v24  ;;  %v4593_v1 = vpop.f32.mrb[164].mxu0 }
 0x586   :  { %v4594_v30 = vpop.f32.mrb[165].mxu0 }
 0x587   :  { %4920 = vmatmul.mubr.bf16.gmra.mrb[216].mxu0 %v3705_v10  ;;  %v4595_v20 = vadd.f32 %v4594_v30, %v4593_v1  ;;  %v4596_v41 = vpop.f32.mrb[166].mxu0 }
 0x588   :  { %v4597_v17 = vpop.f32.mrb[167].mxu0 }
 0x589   :  { %v4598_v58 = vadd.f32 %v4597_v17, %v4596_v41  ;;  %v3608_v49 = vadd.f32 %v4595_v20, %v6987_v34 }
 0x58b   :  { %v3611_v2 = vadd.f32 %v4598_v58, %v6991_v16 }
 0x58d   :  { %v4599_v9 = vpop.f32.mrb[168].mxu0  ;;  %v3706_v45 = vpack.c.bf16 %v3611_v2, %v3608_v49 }
 0x58e   :  { %v4600_v0 = vpop.f32.mrb[169].mxu0 }
 0x58f   :  { %v4601_v40 = vadd.f32 %v4600_v0, %v4599_v9  ;;  %v4602_v7 = vpop.f32.mrb[170].mxu0  ;;  %4923 = vmatprep.mubr.bf16.mxu0 %v3706_v45 }
 0x590   :  { %v4603_v15 = vpop.f32.mrb[171].mxu0 }
 0x591   :  { %v3616_v47 = vadd.f32 %v6985_v48, %v4601_v40  ;;  %v4604_v57 = vadd.f32 %v4603_v15, %v4602_v7 }
 0x593   :  { %v3619_v53 = vadd.f32 %v6989_v33, %v4604_v57 }
 0x595   :  { %v3707_v52 = vpack.c.bf16 %v3619_v53, %v3616_v47  ;;  %v4605_v50 = vpop.f32.mrb[172].mxu0 }
 0x596   :  { %v4606_v36 = vpop.f32.mrb[173].mxu0 }
 0x597   :  { %4924 = vmatmul.mubr.bf16.gmra.mrb[220].mxu0 %v3707_v52  ;;  %v4607_v23 = vadd.f32 %v4606_v36, %v4605_v50  ;;  %v4608_v34 = vpop.f32.mrb[174].mxu0 }
 0x598   :  { %v4609_v44 = vpop.f32.mrb[175].mxu0 }
 0x599   :  { %v4610_v16 = vadd.f32 %v4609_v44, %v4608_v34  ;;  %v3624_v29 = vadd.f32 %v4607_v23, %v6995_v11 }
 0x59b   :  { %v3627_v5 = vadd.f32 %v4610_v16, %v6999_v62 }
 0x59d   :  { %v4611_v13 = vpop.f32.mrb[176].mxu0  ;;  %v3708_v35 = vpack.c.bf16 %v3627_v5, %v3624_v29 }
 0x59e   :  { %v4612_v63 = vpop.f32.mrb[177].mxu0 }
 0x59f   :  { %v4613_v22 = vadd.f32 %v4612_v63, %v4611_v13  ;;  %v4614_v48 = vpop.f32.mrb[178].mxu0  ;;  %4927 = vmatprep.mubr.bf16.mxu0 %v3708_v35 }
 0x5a0   :  { %v4615_v27 = vpop.f32.mrb[179].mxu0 }
 0x5a1   :  { %v3632_v33 = vadd.f32 %v6993_v12, %v4613_v22  ;;  %v4616_v6 = vadd.f32 %v4615_v27, %v4614_v48 }
 0x5a3   :  { %v3635_v38 = vadd.f32 %v6997_v19, %v4616_v6 }
 0x5a5   :  { %v3709_v32 = vpack.c.bf16 %v3635_v38, %v3632_v33  ;;  %v4617_v37 = vpop.f32.mrb[180].mxu0 }
 0x5a6   :  { %v4618_v61 = vpop.f32.mrb[181].mxu0 }
 0x5a7   :  { %4928 = vmatmul.mubr.bf16.gmra.mrb[224].mxu0 %v3709_v32  ;;  %v4619_v26 = vadd.f32 %v4618_v61, %v4617_v37  ;;  %v4620_v11 = vpop.f32.mrb[182].mxu0 }
 0x5a8   :  { %v4621_v56 = vpop.f32.mrb[183].mxu0 }
 0x5a9   :  { %v4622_v62 = vadd.f32 %v4621_v56, %v4620_v11  ;;  %v3640_v24 = vadd.f32 %v4619_v26, %v7003_v18 }
 0x5ab   :  { %v3643_v39 = vadd.f32 %v4622_v62, %v7007_v21 }
 0x5ad   :  { %v4623_v42 = vpop.f32.mrb[184].mxu0  ;;  %v3710_v10 = vpack.c.bf16 %v3643_v39, %v3640_v24 }
 0x5ae   :  { %v4624_v1 = vpop.f32.mrb[185].mxu0 }
 0x5af   :  { %v4625_v30 = vadd.f32 %v4624_v1, %v4623_v42  ;;  %v4626_v12 = vpop.f32.mrb[186].mxu0  ;;  %4931 = vmatprep.mubr.bf16.mxu0 %v3710_v10 }
 0x5b0   :  { %v4627_v20 = vpop.f32.mrb[187].mxu0 }
 0x5b1   :  { %v3648_v19 = vadd.f32 %v7001_v14, %v4625_v30  ;;  %v4628_v41 = vadd.f32 %v4627_v20, %v4626_v12 }
 0x5b3   :  { %v3651_v17 = vadd.f32 %v7005_v4, %v4628_v41 }
 0x5b5   :  { %v3711_v58 = vpack.c.bf16 %v3651_v17, %v3648_v19  ;;  %v4629_v49 = vpop.f32.mrb[188].mxu0 }
 0x5b6   :  { %v4630_v2 = vpop.f32.mrb[189].mxu0 }
 0x5b7   :  { %4932 = vmatmul.mubr.bf16.gmra.mrb[228].mxu0 %v3711_v58  ;;  %v4631_v9 = vadd.f32 %v4630_v2, %v4629_v49  ;;  %v4632_v18 = vpop.f32.mrb[190].mxu0 }
 0x5b8   :  { %v4633_v45 = vpop.f32.mrb[191].mxu0 }
 0x5b9   :  { %v4634_v21 = vadd.f32 %v4633_v45, %v4632_v18  ;;  %v3656_v0 = vadd.f32 %v4631_v9, %v7011_v55 }
 0x5bb   :  { %v3659_v40 = vadd.f32 %v4634_v21, %v7015_v28 }
 0x5bd   :  { %v4635_v7 = vpop.f32.mrb[192].mxu0  ;;  %v3712_v15 = vpack.c.bf16 %v3659_v40, %v3656_v0 }
 0x5be   :  { %v4636_v47 = vpop.f32.mrb[193].mxu0 }
 0x5bf   :  { %v4637_v57 = vadd.f32 %v4636_v47, %v4635_v7  ;;  %v4638_v14 = vpop.f32.mrb[194].mxu0  ;;  %4935 = vmatprep.mubr.bf16.mxu0 %v3712_v15 }
 0x5c0   :  { %v4639_v53 = vpop.f32.mrb[195].mxu0 }
 0x5c1   :  { %v3664_v4 = vadd.f32 %v7009_v43, %v4637_v57  ;;  %v4640_v52 = vadd.f32 %v4639_v53, %v4638_v14 }
 0x5c3   :  { %v3667_v50 = vadd.f32 %v7013_v8, %v4640_v52 }
 0x5c5   :  { %v3713_v36 = vpack.c.bf16 %v3667_v50, %v3664_v4  ;;  %v4641_v23 = vpop.f32.mrb[196].mxu0 }
 0x5c6   :  { %v4642_v34 = vpop.f32.mrb[197].mxu0 }
 0x5c7   :  { %4936 = vmatmul.mubr.bf16.gmra.mrb[232].mxu0 %v3713_v36  ;;  %v4643_v44 = vadd.f32 %v4642_v34, %v4641_v23  ;;  %v4644_v55 = vpop.f32.mrb[198].mxu0 }
 0x5c8   :  { %v4645_v16 = vpop.f32.mrb[199].mxu0 }
 0x5c9   :  { %v4646_v28 = vadd.f32 %v4645_v16, %v4644_v55  ;;  %v3672_v29 = vadd.f32 %v4643_v44, %v7019_v46 }
 0x5cb   :  { %v3675_v5 = vadd.f32 %v4646_v28, %v7023_v51 }
 0x5cd   :  { %v4647_v13 = vpop.f32.mrb[200].mxu0  ;;  %v3714_v35 = vpack.c.bf16 %v3675_v5, %v3672_v29 }
 0x5ce   :  { %v4648_v63 = vpop.f32.mrb[201].mxu0 }
 0x5cf   :  { %v4649_v22 = vadd.f32 %v4648_v63, %v4647_v13  ;;  %v4650_v43 = vpop.f32.mrb[202].mxu0  ;;  %4939 = vmatprep.mubr.bf16.mxu0 %v3714_v35 }
 0x5d0   :  { %v4651_v48 = vpop.f32.mrb[203].mxu0 }
 0x5d1   :  { %v3680_v8 = vadd.f32 %v7017_v31, %v4649_v22  ;;  %v4652_v27 = vadd.f32 %v4651_v48, %v4650_v43 }
 0x5d3   :  { %v3683_v33 = vadd.f32 %v7021_v25, %v4652_v27 }
 0x5d5   :  { %v3715_v6 = vpack.c.bf16 %v3683_v33, %v3680_v8  ;;  %v4653_v38 = vpop.f32.mrb[204].mxu0 }
 0x5d6   :  { %v4654_v32 = vpop.f32.mrb[205].mxu0 }
 0x5d7   :  { %4940 = vmatmul.mubr.bf16.gmra.mrb[236].mxu0 %v3715_v6  ;;  %v4655_v37 = vadd.f32 %v4654_v32, %v4653_v38  ;;  %v4656_v46 = vpop.f32.mrb[206].mxu0 }
 0x5d8   :  { %v4657_v61 = vpop.f32.mrb[207].mxu0 }
 0x5d9   :  { %v4658_v51 = vadd.f32 %v4657_v61, %v4656_v46  ;;  %v3688_v26 = vadd.f32 %v4655_v37, %v7027_v54 }
 0x5db   :  { %v3691_v11 = vadd.f32 %v4658_v51, %v7031_v59 }
 0x5dd   :  { %v4659_v56 = vpop.f32.mrb[208].mxu0  ;;  %v3716_v62 = vpack.c.bf16 %v3691_v11, %v3688_v26 }
 0x5de   :  { %v4660_v24 = vpop.f32.mrb[209].mxu0 }
 0x5df   :  { %v4661_v39 = vadd.f32 %v4660_v24, %v4659_v56  ;;  %v4662_v31 = vpop.f32.mrb[210].mxu0  ;;  %4943 = vmatprep.mubr.bf16.mxu0 %v3716_v62 }
 0x5e0   :  { %v4663_v42 = vpop.f32.mrb[211].mxu0 }
 0x5e1   :  { %v3696_v25 = vadd.f32 %v7025_v60, %v4661_v39  ;;  %v4664_v10 = vadd.f32 %v4663_v42, %v4662_v31 }
 0x5e3   :  { %v3699_v1 = vadd.f32 %v7029_v3, %v4664_v10 }
 0x5e5   :  { %v3717_v30 = vpack.c.bf16 %v3699_v1, %v3696_v25 }
 0x5e7   :  { %4944 = vmatmul.mubr.bf16.gmra.mrb[240].mxu0 %v3717_v30 }
 0x64a   :  { %v4917_v12 = vpop.f32.mrb[212].mxu0 }
 0x64b   :  { %3945 = vst.msk [vmem:[#allocation4 + $0x110] sm:$0xff] %vm292_vm0, %v4917_v12  ;;  %v3816_v54 = vpop.f32.mrb[213].mxu0 }
 0x64c   :  { %3943 = vst.msk [vmem:[#allocation4 + $0x100] sm:$0xff] %vm292_vm0, %v3816_v54  ;;  %v4918_v59 = vpop.f32.mrb[214].mxu0 }
 0x64d   :  { %3946 = vst.msk [vmem:[#allocation4 + $0x118] sm:$0xff] %vm292_vm0, %v4918_v59  ;;  %v3819_v20 = vpop.f32.mrb[215].mxu0 }
 0x64e   :  { %3944 = vst.msk [vmem:[#allocation4 + $0x108] sm:$0xff] %vm292_vm0, %v3819_v20 }
 0x65a   :  { %v4921_v19 = vpop.f32.mrb[216].mxu0 }
 0x65b   :  { %3949 = vst.msk [vmem:[#allocation4 + $0x130] sm:$0xff] %vm292_vm0, %v4921_v19  ;;  %v3832_v60 = vpop.f32.mrb[217].mxu0 }
 0x65c   :  { %3947 = vst.msk [vmem:[#allocation4 + $0x120] sm:$0xff] %vm292_vm0, %v3832_v60  ;;  %v4922_v3 = vpop.f32.mrb[218].mxu0 }
 0x65d   :  { %3950 = vst.msk [vmem:[#allocation4 + $0x138] sm:$0xff] %vm292_vm0, %v4922_v3  ;;  %v3835_v41 = vpop.f32.mrb[219].mxu0 }
 0x65e   :  { %3948 = vst.msk [vmem:[#allocation4 + $0x128] sm:$0xff] %vm292_vm0, %v3835_v41 }
 0x66a   :  { %v4925_v17 = vpop.f32.mrb[220].mxu0 }
 0x66b   :  { %3953 = vst.msk [vmem:[#allocation4 + $0x150] sm:$0xff] %vm292_vm0, %v4925_v17  ;;  %v3848_v58 = vpop.f32.mrb[221].mxu0 }
 0x66c   :  { %3951 = vst.msk [vmem:[#allocation4 + $0x140] sm:$0xff] %vm292_vm0, %v3848_v58  ;;  %v4926_v49 = vpop.f32.mrb[222].mxu0 }
 0x66d   :  { %3954 = vst.msk [vmem:[#allocation4 + $0x158] sm:$0xff] %vm292_vm0, %v4926_v49  ;;  %v3851_v2 = vpop.f32.mrb[223].mxu0 }
 0x66e   :  { %3952 = vst.msk [vmem:[#allocation4 + $0x148] sm:$0xff] %vm292_vm0, %v3851_v2 }
 0x67a   :  { %v4929_v9 = vpop.f32.mrb[224].mxu0 }
 0x67b   :  { %3957 = vst.msk [vmem:[#allocation4 + $0x170] sm:$0xff] %vm292_vm0, %v4929_v9  ;;  %v3864_v18 = vpop.f32.mrb[225].mxu0 }
 0x67c   :  { %3955 = vst.msk [vmem:[#allocation4 + $0x160] sm:$0xff] %vm292_vm0, %v3864_v18  ;;  %v4930_v45 = vpop.f32.mrb[226].mxu0 }
 0x67d   :  { %3958 = vst.msk [vmem:[#allocation4 + $0x178] sm:$0xff] %vm292_vm0, %v4930_v45  ;;  %v3867_v21 = vpop.f32.mrb[227].mxu0 }
 0x67e   :  { %3956 = vst.msk [vmem:[#allocation4 + $0x168] sm:$0xff] %vm292_vm0, %v3867_v21 }
 0x68a   :  { %v4933_v0 = vpop.f32.mrb[228].mxu0 }
 0x68b   :  { %3961 = vst.msk [vmem:[#allocation4 + $0x190] sm:$0xff] %vm292_vm0, %v4933_v0  ;;  %v3880_v40 = vpop.f32.mrb[229].mxu0 }
 0x68c   :  { %3959 = vst.msk [vmem:[#allocation4 + $0x180] sm:$0xff] %vm292_vm0, %v3880_v40  ;;  %v4934_v7 = vpop.f32.mrb[230].mxu0 }
 0x68d   :  { %3962 = vst.msk [vmem:[#allocation4 + $0x198] sm:$0xff] %vm292_vm0, %v4934_v7  ;;  %v3883_v15 = vpop.f32.mrb[231].mxu0 }
 0x68e   :  { %3960 = vst.msk [vmem:[#allocation4 + $0x188] sm:$0xff] %vm292_vm0, %v3883_v15 }
 0x69a   :  { %v4937_v47 = vpop.f32.mrb[232].mxu0 }
 0x69b   :  { %3965 = vst.msk [vmem:[#allocation4 + $0x1b0] sm:$0xff] %vm292_vm0, %v4937_v47  ;;  %v3896_v57 = vpop.f32.mrb[233].mxu0 }
 0x69c   :  { %3963 = vst.msk [vmem:[#allocation4 + $0x1a0] sm:$0xff] %vm292_vm0, %v3896_v57  ;;  %v4938_v14 = vpop.f32.mrb[234].mxu0 }
 0x69d   :  { %3966 = vst.msk [vmem:[#allocation4 + $0x1b8] sm:$0xff] %vm292_vm0, %v4938_v14  ;;  %v3899_v53 = vpop.f32.mrb[235].mxu0 }
 0x69e   :  { %3964 = vst.msk [vmem:[#allocation4 + $0x1a8] sm:$0xff] %vm292_vm0, %v3899_v53 }
 0x6aa   :  { %v4941_v4 = vpop.f32.mrb[236].mxu0 }
 0x6ab   :  { %3969 = vst.msk [vmem:[#allocation4 + $0x1d0] sm:$0xff] %vm292_vm0, %v4941_v4  ;;  %v3912_v52 = vpop.f32.mrb[237].mxu0 }
 0x6ac   :  { %3967 = vst.msk [vmem:[#allocation4 + $0x1c0] sm:$0xff] %vm292_vm0, %v3912_v52  ;;  %v4942_v50 = vpop.f32.mrb[238].mxu0 }
 0x6ad   :  { %3970 = vst.msk [vmem:[#allocation4 + $0x1d8] sm:$0xff] %vm292_vm0, %v4942_v50  ;;  %v3915_v36 = vpop.f32.mrb[239].mxu0 }
 0x6ae   :  { %3968 = vst.msk [vmem:[#allocation4 + $0x1c8] sm:$0xff] %vm292_vm0, %v3915_v36 }
 0x6ba   :  { %v4945_v23 = vpop.f32.mrb[240].mxu0 }
 0x6bb   :  { %3973 = vst.msk [vmem:[#allocation4 + $0x1f0] sm:$0xff] %vm292_vm0, %v4945_v23  ;;  %v3928_v34 = vpop.f32.mrb[241].mxu0 }
 0x6bc   :  { %3971 = vst.msk [vmem:[#allocation4 + $0x1e0] sm:$0xff] %vm292_vm0, %v3928_v34  ;;  %v4946_v44 = vpop.f32.mrb[242].mxu0 }
 0x6bd   :  { %3974 = vst.msk [vmem:[#allocation4 + $0x1f8] sm:$0xff] %vm292_vm0, %v4946_v44  ;;  %v3931_v55 = vpop.f32.mrb[243].mxu0 }
 0x6be   :  { %3972 = vst.msk [vmem:[#allocation4 + $0x1e8] sm:$0xff] %vm292_vm0, %v3931_v55 }
 0x6bf   :  { %5266 = shalt.err (!%p5263_p4)
}
 0x6c0   :  { %s5267_s22 = scalar_lea.hbm %s7110_s9, 8192 }
 0x6c1   :  { %p5268_p5 = scmp.ne.s32.totalorder %s7110_s9, %s5267_s22  ;;  %p5271_p6 = scmp.lt.u32.totalorder %s5267_s22, %s7110_s9 }
 0x6c3   :  { %p5273_p7 = pnand %p5271_p6, %p5268_p5 }
 0x6c5   :  { %5276 = shalt.err (!%p5273_p7)
}
 0x6c6   :  { %s5281_s26 = smov 128   ;;  %s5282_s27 = smov 8  }
 0x6c7   :  { %3986 = dma.vmem_to_hbm [thread:$0]  %s3981_s19, 8192, %s7110_s9, [#allocation5], %s5281_s26, %s5281_s26, %s5282_s27  }
 0x6c8   :  { %5277 = dma.done.wait [#allocation5], 8192  }
 0x6c9   :  { %5278 = vsyncadd [#allocation5], 4294959104 }
 0x6ca   :  { %3990 = vsyncpa [#allocation5], 1 }

</bundles_post_ra>
